<compile_context>
chip_gen: v7x
topology: tpu7x:2x2x1
jax: 0.10.0
libtpu: 0.0.40
codegen_flags: <defaults>
</compile_context>

<pallas_src>
import jax
import jax.numpy as jnp
from jax import lax
from jax.experimental import pallas as pl
from jax.experimental.pallas import tpu as pltpu


def policy_head_kernel(p_ref, wk_ref, w1_ref, w2_ref, b_ref, out_ref, y_ref):
    """One batch tile (NB samples) per grid step.

    p_ref   : VMEM bf16[HW*NB, K]      im2col patches, pixel-major (row = s*NB + b), K = 9*C_in
    wk_ref  : VMEM bf16[K, C_OUT]      3x3 conv weight with BN scale folded in
    w1_ref  : VMEM bf16[HW, C_OUT, HID] fc1 weight, permuted: w1_ref[s, c, j] = w1[j, c*HW + s]
    w2_ref  : VMEM bf16[HID, A]        fc2 weight, transposed
    b_ref   : VMEM f32[3, BW]          row0 = conv-bias+BN shift, row1 = fc1 bias, row2 = fc2 bias
    out_ref : VMEM f32[NB, A]          policy logits for this tile
    y_ref   : VMEM f32[HW*NB, C_OUT]   scratch for the post-ReLU conv activations
    """
    nb, a = out_ref.shape
    hw = w1_ref.shape[0]
    c_out = wk_ref.shape[1]
    hid = w1_ref.shape[2]

    # ---- 3x3 conv (im2col) + folded BN + ReLU: one lane-dense MXU matmul ----
    # (HW*NB, K) @ (K, C_OUT), f32 accumulation; epilogue (bias + ReLU) stays f32.
    y = jnp.dot(p_ref[...], wk_ref[...], preferred_element_type=jnp.float32)
    y_ref[...] = jnp.maximum(y + b_ref[0:1, :c_out], 0.0)

    # ---- fc1: contraction over (pixel, channel) as HW accumulated MXU matmuls ----
    # Each step: (NB, C_OUT) @ (C_OUT, HID).  Weight slab pushed once per batch tile.
    def fc1_step(s, acc):
        row0 = s * nb
        if nb % 8 == 0:                     # static hint, only when it is actually true
            row0 = pl.multiple_of(row0, nb)
        ys = y_ref[pl.ds(row0, nb), :].astype(jnp.bfloat16)      # (NB, C_OUT)
        return acc + jnp.dot(ys, w1_ref[s], preferred_element_type=jnp.float32)

    acc = lax.fori_loop(0, hw, fc1_step, jnp.zeros((nb, hid), jnp.float32),
                        unroll=True)

    # ---- fc1 bias + ReLU (f32 epilogue) ----
    h = jnp.maximum(acc + b_ref[1:2, :hid], 0.0)

    # ---- fc2: (NB, HID) @ (HID, A), lane-dense output, dense (NB, A) store ----
    logits = jnp.dot(h.astype(jnp.bfloat16), w2_ref[...],
                     preferred_element_type=jnp.float32) + b_ref[2:3, :a]
    out_ref[...] = logits


def _pick_batch_block(n):
    if n <= 1:
        return 1
    # Keep the grid length >= 2 (feeds both TensorCores on v7x under
    # dimension_semantics=("parallel",)) and cap the tile at 128 rows
    # (a full MXU tile of M on every generation).
    return int(min(128, pl.cdiv(n, 2)))


def policy_head_forward(conv_features, piece_type, params, batch_block=None):
    """Wrapper: concat inputs, build im2col patches, fold BN, permute weights, launch kernel."""
    x = jnp.concatenate([conv_features, piece_type], axis=1).astype(jnp.float32)  # (N, C_in, H, W)
    n, c_in, hgt, wid = x.shape
    hw = hgt * wid
    k = 9 * c_in

    conv_w = params["conv_w"].astype(jnp.float32)          # (C_OUT, C_in, 3, 3)
    c_out = conv_w.shape[0]
    w1 = params["w1"].astype(jnp.float32)                  # (HID, C_OUT*HW)
    hid = w1.shape[0]
    w2 = params["w2"].astype(jnp.float32)                  # (A, HID)
    a = w2.shape[0]

    nb = batch_block if batch_block is not None else _pick_batch_block(n)
    g = int(pl.cdiv(n, nb))
    n_pad = g * nb

    # ---- im2col patches (layout plumbing only; all FLOPs stay in the kernel) ----
    # TODO(synk): for large boards / channel counts, skip HBM im2col (9x activation bytes)
    # and instead DMA padded activations once per tile, accumulating 9 shifted matmuls.
    x_pad = jnp.pad(x, ((0, 0), (0, 0), (1, 1), (1, 1)))
    taps = [x_pad[:, :, dy:dy + hgt, dx:dx + wid] for dy in range(3) for dx in range(3)]
    patches = jnp.stack(taps, axis=2)                               # (N, C_in, 9, H, W)
    patches = patches.reshape(n, c_in * 9, hw).transpose(0, 2, 1)   # (N, HW, K); k = c*9 + dy*3 + dx
    if n_pad != n:
        patches = jnp.pad(patches, ((0, n_pad - n), (0, 0), (0, 0)))
    # Pixel-major within each batch tile: row index inside a tile = s*NB + b.
    patches_t = (patches.reshape(g, nb, hw, k)
                        .transpose(0, 2, 1, 3)
                        .reshape(g, hw * nb, k)
                        .astype(jnp.bfloat16))

    # ---- fold eval-mode BN into conv weight / bias (exact) ----
    scale = params["bn_gamma"] * lax.rsqrt(params["bn_var"] + params["bn_eps"])   # (C_OUT,)
    wk = (conv_w.reshape(c_out, k) * scale[:, None]).T.astype(jnp.bfloat16)       # (K, C_OUT)
    shift = (params["conv_b"] - params["bn_mean"]) * scale + params["bn_beta"]    # (C_OUT,)

    # ---- permute fc weights ----
    # PyTorch flatten index of the conv output is c*HW + s  =>  w1p[s, c, j] = w1[j, c*HW + s]
    w1p = w1.reshape(hid, c_out, hw).transpose(2, 1, 0).astype(jnp.bfloat16)      # (HW, C_OUT, HID)
    w2t = w2.T.astype(jnp.bfloat16)                                               # (HID, A)

    # ---- pack the three small bias rows into a single f32 VMEM operand ----
    bw = max(c_out, hid, a)
    bias_pack = jnp.zeros((3, bw), jnp.float32)
    bias_pack = bias_pack.at[0, :c_out].set(shift.astype(jnp.float32))
    bias_pack = bias_pack.at[1, :hid].set(params["b1"].astype(jnp.float32))
    bias_pack = bias_pack.at[2, :a].set(params["b2"].astype(jnp.float32))

    out = pl.pallas_call(
        policy_head_kernel,
        out_shape=jax.ShapeDtypeStruct((g, nb, a), jnp.float32),
        grid=(g,),
        in_specs=[
            pl.BlockSpec((None, hw * nb, k), lambda i: (i, 0, 0)),   # per-tile patches
            pl.BlockSpec((k, c_out), lambda i: (0, 0)),              # conv weight (resident)
            pl.BlockSpec((hw, c_out, hid), lambda i: (0, 0, 0)),     # fc1 weight (resident)
            pl.BlockSpec((hid, a), lambda i: (0, 0)),                # fc2 weight (resident)
            pl.BlockSpec((3, bw), lambda i: (0, 0)),                 # packed biases (resident)
        ],
        out_specs=pl.BlockSpec((None, nb, a), lambda i: (i, 0, 0)),
        scratch_shapes=[pltpu.VMEM((hw * nb, c_out), jnp.float32)],
        compiler_params=pltpu.CompilerParams(
            dimension_semantics=("parallel",),
            # Keep headroom over v5e's small default scoped-VMEM; 32 MiB fits every gen.
            vmem_limit_bytes=32 * 1024 * 1024,
        ),
    )(patches_t, wk, w1p, w2t, bias_pack)

    return out.reshape(n_pad, a)[:n]


def policy_head_reference(conv_features, piece_type, params):
    """Pure-JAX f32 reference matching the PyTorch forward (BN in eval mode)."""
    x = jnp.concatenate([conv_features, piece_type], axis=1).astype(jnp.float32)
    y = lax.conv_general_dilated(
        x, params["conv_w"].astype(jnp.float32), window_strides=(1, 1),
        padding=((1, 1), (1, 1)), dimension_numbers=("NCHW", "OIHW", "NCHW"),
        precision=lax.Precision.HIGHEST)
    y = y + params["conv_b"][None, :, None, None]
    rstd = lax.rsqrt(params["bn_var"] + params["bn_eps"])
    y = (y - params["bn_mean"][None, :, None, None]) * (params["bn_gamma"] * rstd)[None, :, None, None]
    y = y + params["bn_beta"][None, :, None, None]
    y = jnp.maximum(y, 0.0).reshape(x.shape[0], -1)                      # (N, C_OUT*HW)
    h = jnp.maximum(jnp.dot(y, params["w1"].T, precision=lax.Precision.HIGHEST) + params["b1"], 0.0)
    return jnp.dot(h, params["w2"].T, precision=lax.Precision.HIGHEST) + params["b2"]


if __name__ == "__main__":
    # Shapes consistent with the module: PolicyHead(num_channels=4, dim_piece_type=3,
    # action_space_size=128, board 8x8). Conv out-channels and fc hidden are fixed at 128
    # by the module; action_space_size=128 keeps the output lane-dense (assert below).
    N = 2
    num_channels = 4
    dim_piece_type = 3
    H = W = 8
    C_OUT = 128
    HID = 128
    A = 128
    C_in = num_channels + dim_piece_type + 1
    assert A % 128 == 0, "non-multiple-of-128 action space => lane-masked output stores"

    key = jax.random.PRNGKey(0)
    ks = jax.random.split(key, 12)

    conv_features = jax.random.normal(ks[0], (N, num_channels, H, W), jnp.float32)
    piece_type = jax.random.normal(ks[1], (N, dim_piece_type + 1, H, W), jnp.float32)

    params = {
        "conv_w": 0.1 * jax.random.normal(ks[2], (C_OUT, C_in, 3, 3), jnp.float32),
        "conv_b": 0.1 * jax.random.normal(ks[3], (C_OUT,), jnp.float32),
        "bn_gamma": 1.0 + 0.1 * jax.random.normal(ks[4], (C_OUT,), jnp.float32),
        "bn_beta": 0.1 * jax.random.normal(ks[5], (C_OUT,), jnp.float32),
        "bn_mean": 0.1 * jax.random.normal(ks[6], (C_OUT,), jnp.float32),
        "bn_var": jnp.abs(jax.random.normal(ks[7], (C_OUT,), jnp.float32)) + 0.5,
        "bn_eps": 1e-5,
        "w1": 0.02 * jax.random.normal(ks[8], (HID, C_OUT * H * W), jnp.float32),
        "b1": 0.05 * jax.random.normal(ks[9], (HID,), jnp.float32),
        "w2": 0.05 * jax.random.normal(ks[10], (A, HID), jnp.float32),
        "b2": 0.05 * jax.random.normal(ks[11], (A,), jnp.float32),
    }

    out = policy_head_forward(conv_features, piece_type, params)
    out = jax.block_until_ready(out)

    ref = policy_head_reference(conv_features, piece_type, params)
    assert out.shape == (N, A), out.shape
    # Tolerance covers bf16 matmul operands (f32 accumulation) vs. the f32 reference.
    assert jnp.allclose(out, ref, atol=1e-2, rtol=1e-2), (out, ref)

    print("KERNEL_OK")
</pallas_src>

<mosaic_0001>
module attributes {stable_mosaic.version = 11 : i64} {
  func.func @policy_head_kernel(%arg0: i32, %arg1: memref<1x64x72xbf16, #tpu.memory_space<vmem>>, %arg2: memref<72x128xbf16, #tpu.memory_space<vmem>>, %arg3: memref<64x128x128xbf16, #tpu.memory_space<vmem>>, %arg4: memref<128x128xbf16, #tpu.memory_space<vmem>>, %arg5: memref<3x128xf32, #tpu.memory_space<vmem>>, %arg6: memref<1x1x128xf32, #tpu.memory_space<vmem>>, %arg7: memref<64x128xf32, #tpu.memory_space<vmem>>) attributes {dimension_semantics = [#tpu.dimension_semantics<parallel>], iteration_bounds = array<i64: 2>, scalar_prefetch = 0 : i64, scratch_operands = 1 : i64, tpu.core_type = #tpu.core_type<tc>, window_params = [{transform_indices = @transform_0, window_bounds = array<i64: 1, 64, 72>}, {pipeline_mode = #tpu.pipeline_mode<synchronous>, transform_indices = @transform_1, window_bounds = array<i64: 72, 128>}, {pipeline_mode = #tpu.pipeline_mode<synchronous>, transform_indices = @transform_2, window_bounds = array<i64: 64, 128, 128>}, {pipeline_mode = #tpu.pipeline_mode<synchronous>, transform_indices = @transform_3, window_bounds = array<i64: 128, 128>}, {pipeline_mode = #tpu.pipeline_mode<synchronous>, transform_indices = @transform_4, window_bounds = array<i64: 3, 128>}, {transform_indices = @transform_5, window_bounds = array<i64: 1, 1, 128>}]} {
    %c0 = arith.constant 0 : index
    %c0_0 = arith.constant 0 : index
    %c0_1 = arith.constant 0 : index
    %0 = vector.load %arg1[%c0, %c0_0, %c0_1] : memref<1x64x72xbf16, #tpu.memory_space<vmem>>, vector<1x64x72xbf16>
    %1 = vector.shape_cast %0 : vector<1x64x72xbf16> to vector<64x72xbf16>
    %c0_2 = arith.constant 0 : index
    %c0_3 = arith.constant 0 : index
    %2 = vector.load %arg2[%c0_2, %c0_3] : memref<72x128xbf16, #tpu.memory_space<vmem>>, vector<72x128xbf16>
    %cst = arith.constant dense<0.000000e+00> : vector<64x128xf32>
    %3 = tpu.matmul %1, %2, %cst {dimension_numbers = #tpu.dot_dimension_numbers<[1], [0], [0], [1], [0, 0, 1, 1], [], []>} : vector<64x72xbf16>, vector<72x128xbf16>, vector<64x128xf32> -> vector<64x128xf32>
    %c0_4 = arith.constant 0 : index
    %c0_5 = arith.constant 0 : index
    %4 = vector.load %arg5[%c0_4, %c0_5] : memref<3x128xf32, #tpu.memory_space<vmem>>, vector<1x128xf32>
    %5 = vector.broadcast %4 : vector<1x128xf32> to vector<64x128xf32>
    %6 = arith.addf %3, %5 : vector<64x128xf32>
    %cst_6 = arith.constant 0.000000e+00 : f32
    %7 = vector.broadcast %cst_6 : f32 to vector<64x128xf32>
    %8 = arith.maximumf %6, %7 : vector<64x128xf32>
    %c0_7 = arith.constant 0 : index
    %c0_8 = arith.constant 0 : index
    %9 = vector.load %arg7[%c0_7, %c0_8] : memref<64x128xf32, #tpu.memory_space<vmem>>, vector<64x128xf32>
    tpu.vector_store %arg7[%c0_7, %c0_8], %8 {strides = array<i32>} : memref<64x128xf32, #tpu.memory_space<vmem>>, vector<64x128xf32>,
    %cst_9 = arith.constant 0.000000e+00 : f32
    %10 = vector.broadcast %cst_9 : f32 to vector<1x128xf32>
    %c0_i32 = arith.constant 0 : i32
    %c1_i32 = arith.constant 1 : i32
    %11 = arith.muli %c0_i32, %c1_i32 : i32
    %12 = arith.index_cast %11 : i32 to index
    %c0_10 = arith.constant 0 : index
    %13 = vector.load %arg7[%12, %c0_10] : memref<64x128xf32, #tpu.memory_space<vmem>>, vector<1x128xf32>
    %14 = arith.truncf %13 : vector<1x128xf32> to vector<1x128xbf16>
    %15 = arith.index_cast %c0_i32 : i32 to index
    %c0_11 = arith.constant 0 : index
    %c0_12 = arith.constant 0 : index
    %16 = vector.load %arg3[%15, %c0_11, %c0_12] : memref<64x128x128xbf16, #tpu.memory_space<vmem>>, vector<1x128x128xbf16>
    %17 = vector.shape_cast %16 : vector<1x128x128xbf16> to vector<128x128xbf16>
    %cst_13 = arith.constant dense<0.000000e+00> : vector<1x128xf32>
    %18 = tpu.matmul %14, %17, %cst_13 {dimension_numbers = #tpu.dot_dimension_numbers<[1], [0], [0], [1], [0, 0, 1, 1], [], []>} : vector<1x128xbf16>, vector<128x128xbf16>, vector<1x128xf32> -> vector<1x128xf32>
    %19 = arith.addf %10, %18 : vector<1x128xf32>
    %c1_i32_14 = arith.constant 1 : i32
    %c1_i32_15 = arith.constant 1 : i32
    %20 = arith.muli %c1_i32_14, %c1_i32_15 : i32
    %21 = arith.index_cast %20 : i32 to index
    %c0_16 = arith.constant 0 : index
    %22 = vector.load %arg7[%21, %c0_16] : memref<64x128xf32, #tpu.memory_space<vmem>>, vector<1x128xf32>
    %23 = arith.truncf %22 : vector<1x128xf32> to vector<1x128xbf16>
    %24 = arith.index_cast %c1_i32_14 : i32 to index
    %c0_17 = arith.constant 0 : index
    %c0_18 = arith.constant 0 : index
    %25 = vector.load %arg3[%24, %c0_17, %c0_18] : memref<64x128x128xbf16, #tpu.memory_space<vmem>>, vector<1x128x128xbf16>
    %26 = vector.shape_cast %25 : vector<1x128x128xbf16> to vector<128x128xbf16>
    %cst_19 = arith.constant dense<0.000000e+00> : vector<1x128xf32>
    %27 = tpu.matmul %23, %26, %cst_19 {dimension_numbers = #tpu.dot_dimension_numbers<[1], [0], [0], [1], [0, 0, 1, 1], [], []>} : vector<1x128xbf16>, vector<128x128xbf16>, vector<1x128xf32> -> vector<1x128xf32>
    %28 = arith.addf %19, %27 : vector<1x128xf32>
    %c2_i32 = arith.constant 2 : i32
    %c1_i32_20 = arith.constant 1 : i32
    %29 = arith.muli %c2_i32, %c1_i32_20 : i32
    %30 = arith.index_cast %29 : i32 to index
    %c0_21 = arith.constant 0 : index
    %31 = vector.load %arg7[%30, %c0_21] : memref<64x128xf32, #tpu.memory_space<vmem>>, vector<1x128xf32>
    %32 = arith.truncf %31 : vector<1x128xf32> to vector<1x128xbf16>
    %33 = arith.index_cast %c2_i32 : i32 to index
    %c0_22 = arith.constant 0 : index
    %c0_23 = arith.constant 0 : index
    %34 = vector.load %arg3[%33, %c0_22, %c0_23] : memref<64x128x128xbf16, #tpu.memory_space<vmem>>, vector<1x128x128xbf16>
    %35 = vector.shape_cast %34 : vector<1x128x128xbf16> to vector<128x128xbf16>
    %cst_24 = arith.constant dense<0.000000e+00> : vector<1x128xf32>
    %36 = tpu.matmul %32, %35, %cst_24 {dimension_numbers = #tpu.dot_dimension_numbers<[1], [0], [0], [1], [0, 0, 1, 1], [], []>} : vector<1x128xbf16>, vector<128x128xbf16>, vector<1x128xf32> -> vector<1x128xf32>
    %37 = arith.addf %28, %36 : vector<1x128xf32>
    %c3_i32 = arith.constant 3 : i32
    %c1_i32_25 = arith.constant 1 : i32
    %38 = arith.muli %c3_i32, %c1_i32_25 : i32
    %39 = arith.index_cast %38 : i32 to index
    %c0_26 = arith.constant 0 : index
    %40 = vector.load %arg7[%39, %c0_26] : memref<64x128xf32, #tpu.memory_space<vmem>>, vector<1x128xf32>
    %41 = arith.truncf %40 : vector<1x128xf32> to vector<1x128xbf16>
    %42 = arith.index_cast %c3_i32 : i32 to index
    %c0_27 = arith.constant 0 : index
    %c0_28 = arith.constant 0 : index
    %43 = vector.load %arg3[%42, %c0_27, %c0_28] : memref<64x128x128xbf16, #tpu.memory_space<vmem>>, vector<1x128x128xbf16>
    %44 = vector.shape_cast %43 : vector<1x128x128xbf16> to vector<128x128xbf16>
    %cst_29 = arith.constant dense<0.000000e+00> : vector<1x128xf32>
    %45 = tpu.matmul %41, %44, %cst_29 {dimension_numbers = #tpu.dot_dimension_numbers<[1], [0], [0], [1], [0, 0, 1, 1], [], []>} : vector<1x128xbf16>, vector<128x128xbf16>, vector<1x128xf32> -> vector<1x128xf32>
    %46 = arith.addf %37, %45 : vector<1x128xf32>
    %c4_i32 = arith.constant 4 : i32
    %c1_i32_30 = arith.constant 1 : i32
    %47 = arith.muli %c4_i32, %c1_i32_30 : i32
    %48 = arith.index_cast %47 : i32 to index
    %c0_31 = arith.constant 0 : index
    %49 = vector.load %arg7[%48, %c0_31] : memref<64x128xf32, #tpu.memory_space<vmem>>, vector<1x128xf32>
    %50 = arith.truncf %49 : vector<1x128xf32> to vector<1x128xbf16>
    %51 = arith.index_cast %c4_i32 : i32 to index
    %c0_32 = arith.constant 0 : index
    %c0_33 = arith.constant 0 : index
    %52 = vector.load %arg3[%51, %c0_32, %c0_33] : memref<64x128x128xbf16, #tpu.memory_space<vmem>>, vector<1x128x128xbf16>
    %53 = vector.shape_cast %52 : vector<1x128x128xbf16> to vector<128x128xbf16>
    %cst_34 = arith.constant dense<0.000000e+00> : vector<1x128xf32>
    %54 = tpu.matmul %50, %53, %cst_34 {dimension_numbers = #tpu.dot_dimension_numbers<[1], [0], [0], [1], [0, 0, 1, 1], [], []>} : vector<1x128xbf16>, vector<128x128xbf16>, vector<1x128xf32> -> vector<1x128xf32>
    %55 = arith.addf %46, %54 : vector<1x128xf32>
    %c5_i32 = arith.constant 5 : i32
    %c1_i32_35 = arith.constant 1 : i32
    %56 = arith.muli %c5_i32, %c1_i32_35 : i32
    %57 = arith.index_cast %56 : i32 to index
    %c0_36 = arith.constant 0 : index
    %58 = vector.load %arg7[%57, %c0_36] : memref<64x128xf32, #tpu.memory_space<vmem>>, vector<1x128xf32>
    %59 = arith.truncf %58 : vector<1x128xf32> to vector<1x128xbf16>
    %60 = arith.index_cast %c5_i32 : i32 to index
    %c0_37 = arith.constant 0 : index
    %c0_38 = arith.constant 0 : index
    %61 = vector.load %arg3[%60, %c0_37, %c0_38] : memref<64x128x128xbf16, #tpu.memory_space<vmem>>, vector<1x128x128xbf16>
    %62 = vector.shape_cast %61 : vector<1x128x128xbf16> to vector<128x128xbf16>
    %cst_39 = arith.constant dense<0.000000e+00> : vector<1x128xf32>
    %63 = tpu.matmul %59, %62, %cst_39 {dimension_numbers = #tpu.dot_dimension_numbers<[1], [0], [0], [1], [0, 0, 1, 1], [], []>} : vector<1x128xbf16>, vector<128x128xbf16>, vector<1x128xf32> -> vector<1x128xf32>
    %64 = arith.addf %55, %63 : vector<1x128xf32>
    %c6_i32 = arith.constant 6 : i32
    %c1_i32_40 = arith.constant 1 : i32
    %65 = arith.muli %c6_i32, %c1_i32_40 : i32
    %66 = arith.index_cast %65 : i32 to index
    %c0_41 = arith.constant 0 : index
    %67 = vector.load %arg7[%66, %c0_41] : memref<64x128xf32, #tpu.memory_space<vmem>>, vector<1x128xf32>
    %68 = arith.truncf %67 : vector<1x128xf32> to vector<1x128xbf16>
    %69 = arith.index_cast %c6_i32 : i32 to index
    %c0_42 = arith.constant 0 : index
    %c0_43 = arith.constant 0 : index
    %70 = vector.load %arg3[%69, %c0_42, %c0_43] : memref<64x128x128xbf16, #tpu.memory_space<vmem>>, vector<1x128x128xbf16>
    %71 = vector.shape_cast %70 : vector<1x128x128xbf16> to vector<128x128xbf16>
    %cst_44 = arith.constant dense<0.000000e+00> : vector<1x128xf32>
    %72 = tpu.matmul %68, %71, %cst_44 {dimension_numbers = #tpu.dot_dimension_numbers<[1], [0], [0], [1], [0, 0, 1, 1], [], []>} : vector<1x128xbf16>, vector<128x128xbf16>, vector<1x128xf32> -> vector<1x128xf32>
    %73 = arith.addf %64, %72 : vector<1x128xf32>
    %c7_i32 = arith.constant 7 : i32
    %c1_i32_45 = arith.constant 1 : i32
    %74 = arith.muli %c7_i32, %c1_i32_45 : i32
    %75 = arith.index_cast %74 : i32 to index
    %c0_46 = arith.constant 0 : index
    %76 = vector.load %arg7[%75, %c0_46] : memref<64x128xf32, #tpu.memory_space<vmem>>, vector<1x128xf32>
    %77 = arith.truncf %76 : vector<1x128xf32> to vector<1x128xbf16>
    %78 = arith.index_cast %c7_i32 : i32 to index
    %c0_47 = arith.constant 0 : index
    %c0_48 = arith.constant 0 : index
    %79 = vector.load %arg3[%78, %c0_47, %c0_48] : memref<64x128x128xbf16, #tpu.memory_space<vmem>>, vector<1x128x128xbf16>
    %80 = vector.shape_cast %79 : vector<1x128x128xbf16> to vector<128x128xbf16>
    %cst_49 = arith.constant dense<0.000000e+00> : vector<1x128xf32>
    %81 = tpu.matmul %77, %80, %cst_49 {dimension_numbers = #tpu.dot_dimension_numbers<[1], [0], [0], [1], [0, 0, 1, 1], [], []>} : vector<1x128xbf16>, vector<128x128xbf16>, vector<1x128xf32> -> vector<1x128xf32>
    %82 = arith.addf %73, %81 : vector<1x128xf32>
    %c8_i32 = arith.constant 8 : i32
    %c1_i32_50 = arith.constant 1 : i32
    %83 = arith.muli %c8_i32, %c1_i32_50 : i32
    %84 = arith.index_cast %83 : i32 to index
    %c0_51 = arith.constant 0 : index
    %85 = vector.load %arg7[%84, %c0_51] : memref<64x128xf32, #tpu.memory_space<vmem>>, vector<1x128xf32>
    %86 = arith.truncf %85 : vector<1x128xf32> to vector<1x128xbf16>
    %87 = arith.index_cast %c8_i32 : i32 to index
    %c0_52 = arith.constant 0 : index
    %c0_53 = arith.constant 0 : index
    %88 = vector.load %arg3[%87, %c0_52, %c0_53] : memref<64x128x128xbf16, #tpu.memory_space<vmem>>, vector<1x128x128xbf16>
    %89 = vector.shape_cast %88 : vector<1x128x128xbf16> to vector<128x128xbf16>
    %cst_54 = arith.constant dense<0.000000e+00> : vector<1x128xf32>
    %90 = tpu.matmul %86, %89, %cst_54 {dimension_numbers = #tpu.dot_dimension_numbers<[1], [0], [0], [1], [0, 0, 1, 1], [], []>} : vector<1x128xbf16>, vector<128x128xbf16>, vector<1x128xf32> -> vector<1x128xf32>
    %91 = arith.addf %82, %90 : vector<1x128xf32>
    %c9_i32 = arith.constant 9 : i32
    %c1_i32_55 = arith.constant 1 : i32
    %92 = arith.muli %c9_i32, %c1_i32_55 : i32
    %93 = arith.index_cast %92 : i32 to index
    %c0_56 = arith.constant 0 : index
    %94 = vector.load %arg7[%93, %c0_56] : memref<64x128xf32, #tpu.memory_space<vmem>>, vector<1x128xf32>
    %95 = arith.truncf %94 : vector<1x128xf32> to vector<1x128xbf16>
    %96 = arith.index_cast %c9_i32 : i32 to index
    %c0_57 = arith.constant 0 : index
    %c0_58 = arith.constant 0 : index
    %97 = vector.load %arg3[%96, %c0_57, %c0_58] : memref<64x128x128xbf16, #tpu.memory_space<vmem>>, vector<1x128x128xbf16>
    %98 = vector.shape_cast %97 : vector<1x128x128xbf16> to vector<128x128xbf16>
    %cst_59 = arith.constant dense<0.000000e+00> : vector<1x128xf32>
    %99 = tpu.matmul %95, %98, %cst_59 {dimension_numbers = #tpu.dot_dimension_numbers<[1], [0], [0], [1], [0, 0, 1, 1], [], []>} : vector<1x128xbf16>, vector<128x128xbf16>, vector<1x128xf32> -> vector<1x128xf32>
    %100 = arith.addf %91, %99 : vector<1x128xf32>
    %c10_i32 = arith.constant 10 : i32
    %c1_i32_60 = arith.constant 1 : i32
    %101 = arith.muli %c10_i32, %c1_i32_60 : i32
    %102 = arith.index_cast %101 : i32 to index
    %c0_61 = arith.constant 0 : index
    %103 = vector.load %arg7[%102, %c0_61] : memref<64x128xf32, #tpu.memory_space<vmem>>, vector<1x128xf32>
    %104 = arith.truncf %103 : vector<1x128xf32> to vector<1x128xbf16>
    %105 = arith.index_cast %c10_i32 : i32 to index
    %c0_62 = arith.constant 0 : index
    %c0_63 = arith.constant 0 : index
    %106 = vector.load %arg3[%105, %c0_62, %c0_63] : memref<64x128x128xbf16, #tpu.memory_space<vmem>>, vector<1x128x128xbf16>
    %107 = vector.shape_cast %106 : vector<1x128x128xbf16> to vector<128x128xbf16>
    %cst_64 = arith.constant dense<0.000000e+00> : vector<1x128xf32>
    %108 = tpu.matmul %104, %107, %cst_64 {dimension_numbers = #tpu.dot_dimension_numbers<[1], [0], [0], [1], [0, 0, 1, 1], [], []>} : vector<1x128xbf16>, vector<128x128xbf16>, vector<1x128xf32> -> vector<1x128xf32>
    %109 = arith.addf %100, %108 : vector<1x128xf32>
    %c11_i32 = arith.constant 11 : i32
    %c1_i32_65 = arith.constant 1 : i32
    %110 = arith.muli %c11_i32, %c1_i32_65 : i32
    %111 = arith.index_cast %110 : i32 to index
    %c0_66 = arith.constant 0 : index
    %112 = vector.load %arg7[%111, %c0_66] : memref<64x128xf32, #tpu.memory_space<vmem>>, vector<1x128xf32>
    %113 = arith.truncf %112 : vector<1x128xf32> to vector<1x128xbf16>
    %114 = arith.index_cast %c11_i32 : i32 to index
    %c0_67 = arith.constant 0 : index
    %c0_68 = arith.constant 0 : index
    %115 = vector.load %arg3[%114, %c0_67, %c0_68] : memref<64x128x128xbf16, #tpu.memory_space<vmem>>, vector<1x128x128xbf16>
    %116 = vector.shape_cast %115 : vector<1x128x128xbf16> to vector<128x128xbf16>
    %cst_69 = arith.constant dense<0.000000e+00> : vector<1x128xf32>
    %117 = tpu.matmul %113, %116, %cst_69 {dimension_numbers = #tpu.dot_dimension_numbers<[1], [0], [0], [1], [0, 0, 1, 1], [], []>} : vector<1x128xbf16>, vector<128x128xbf16>, vector<1x128xf32> -> vector<1x128xf32>
    %118 = arith.addf %109, %117 : vector<1x128xf32>
    %c12_i32 = arith.constant 12 : i32
    %c1_i32_70 = arith.constant 1 : i32
    %119 = arith.muli %c12_i32, %c1_i32_70 : i32
    %120 = arith.index_cast %119 : i32 to index
    %c0_71 = arith.constant 0 : index
    %121 = vector.load %arg7[%120, %c0_71] : memref<64x128xf32, #tpu.memory_space<vmem>>, vector<1x128xf32>
    %122 = arith.truncf %121 : vector<1x128xf32> to vector<1x128xbf16>
    %123 = arith.index_cast %c12_i32 : i32 to index
    %c0_72 = arith.constant 0 : index
    %c0_73 = arith.constant 0 : index
    %124 = vector.load %arg3[%123, %c0_72, %c0_73] : memref<64x128x128xbf16, #tpu.memory_space<vmem>>, vector<1x128x128xbf16>
    %125 = vector.shape_cast %124 : vector<1x128x128xbf16> to vector<128x128xbf16>
    %cst_74 = arith.constant dense<0.000000e+00> : vector<1x128xf32>
    %126 = tpu.matmul %122, %125, %cst_74 {dimension_numbers = #tpu.dot_dimension_numbers<[1], [0], [0], [1], [0, 0, 1, 1], [], []>} : vector<1x128xbf16>, vector<128x128xbf16>, vector<1x128xf32> -> vector<1x128xf32>
    %127 = arith.addf %118, %126 : vector<1x128xf32>
    %c13_i32 = arith.constant 13 : i32
    %c1_i32_75 = arith.constant 1 : i32
    %128 = arith.muli %c13_i32, %c1_i32_75 : i32
    %129 = arith.index_cast %128 : i32 to index
    %c0_76 = arith.constant 0 : index
    %130 = vector.load %arg7[%129, %c0_76] : memref<64x128xf32, #tpu.memory_space<vmem>>, vector<1x128xf32>
    %131 = arith.truncf %130 : vector<1x128xf32> to vector<1x128xbf16>
    %132 = arith.index_cast %c13_i32 : i32 to index
    %c0_77 = arith.constant 0 : index
    %c0_78 = arith.constant 0 : index
    %133 = vector.load %arg3[%132, %c0_77, %c0_78] : memref<64x128x128xbf16, #tpu.memory_space<vmem>>, vector<1x128x128xbf16>
    %134 = vector.shape_cast %133 : vector<1x128x128xbf16> to vector<128x128xbf16>
    %cst_79 = arith.constant dense<0.000000e+00> : vector<1x128xf32>
    %135 = tpu.matmul %131, %134, %cst_79 {dimension_numbers = #tpu.dot_dimension_numbers<[1], [0], [0], [1], [0, 0, 1, 1], [], []>} : vector<1x128xbf16>, vector<128x128xbf16>, vector<1x128xf32> -> vector<1x128xf32>
    %136 = arith.addf %127, %135 : vector<1x128xf32>
    %c14_i32 = arith.constant 14 : i32
    %c1_i32_80 = arith.constant 1 : i32
    %137 = arith.muli %c14_i32, %c1_i32_80 : i32
    %138 = arith.index_cast %137 : i32 to index
    %c0_81 = arith.constant 0 : index
    %139 = vector.load %arg7[%138, %c0_81] : memref<64x128xf32, #tpu.memory_space<vmem>>, vector<1x128xf32>
    %140 = arith.truncf %139 : vector<1x128xf32> to vector<1x128xbf16>
    %141 = arith.index_cast %c14_i32 : i32 to index
    %c0_82 = arith.constant 0 : index
    %c0_83 = arith.constant 0 : index
    %142 = vector.load %arg3[%141, %c0_82, %c0_83] : memref<64x128x128xbf16, #tpu.memory_space<vmem>>, vector<1x128x128xbf16>
    %143 = vector.shape_cast %142 : vector<1x128x128xbf16> to vector<128x128xbf16>
    %cst_84 = arith.constant dense<0.000000e+00> : vector<1x128xf32>
    %144 = tpu.matmul %140, %143, %cst_84 {dimension_numbers = #tpu.dot_dimension_numbers<[1], [0], [0], [1], [0, 0, 1, 1], [], []>} : vector<1x128xbf16>, vector<128x128xbf16>, vector<1x128xf32> -> vector<1x128xf32>
    %145 = arith.addf %136, %144 : vector<1x128xf32>
    %c15_i32 = arith.constant 15 : i32
    %c1_i32_85 = arith.constant 1 : i32
    %146 = arith.muli %c15_i32, %c1_i32_85 : i32
    %147 = arith.index_cast %146 : i32 to index
    %c0_86 = arith.constant 0 : index
    %148 = vector.load %arg7[%147, %c0_86] : memref<64x128xf32, #tpu.memory_space<vmem>>, vector<1x128xf32>
    %149 = arith.truncf %148 : vector<1x128xf32> to vector<1x128xbf16>
    %150 = arith.index_cast %c15_i32 : i32 to index
    %c0_87 = arith.constant 0 : index
    %c0_88 = arith.constant 0 : index
    %151 = vector.load %arg3[%150, %c0_87, %c0_88] : memref<64x128x128xbf16, #tpu.memory_space<vmem>>, vector<1x128x128xbf16>
    %152 = vector.shape_cast %151 : vector<1x128x128xbf16> to vector<128x128xbf16>
    %cst_89 = arith.constant dense<0.000000e+00> : vector<1x128xf32>
    %153 = tpu.matmul %149, %152, %cst_89 {dimension_numbers = #tpu.dot_dimension_numbers<[1], [0], [0], [1], [0, 0, 1, 1], [], []>} : vector<1x128xbf16>, vector<128x128xbf16>, vector<1x128xf32> -> vector<1x128xf32>
    %154 = arith.addf %145, %153 : vector<1x128xf32>
    %c16_i32 = arith.constant 16 : i32
    %c1_i32_90 = arith.constant 1 : i32
    %155 = arith.muli %c16_i32, %c1_i32_90 : i32
    %156 = arith.index_cast %155 : i32 to index
    %c0_91 = arith.constant 0 : index
    %157 = vector.load %arg7[%156, %c0_91] : memref<64x128xf32, #tpu.memory_space<vmem>>, vector<1x128xf32>
    %158 = arith.truncf %157 : vector<1x128xf32> to vector<1x128xbf16>
    %159 = arith.index_cast %c16_i32 : i32 to index
    %c0_92 = arith.constant 0 : index
    %c0_93 = arith.constant 0 : index
    %160 = vector.load %arg3[%159, %c0_92, %c0_93] : memref<64x128x128xbf16, #tpu.memory_space<vmem>>, vector<1x128x128xbf16>
    %161 = vector.shape_cast %160 : vector<1x128x128xbf16> to vector<128x128xbf16>
    %cst_94 = arith.constant dense<0.000000e+00> : vector<1x128xf32>
    %162 = tpu.matmul %158, %161, %cst_94 {dimension_numbers = #tpu.dot_dimension_numbers<[1], [0], [0], [1], [0, 0, 1, 1], [], []>} : vector<1x128xbf16>, vector<128x128xbf16>, vector<1x128xf32> -> vector<1x128xf32>
    %163 = arith.addf %154, %162 : vector<1x128xf32>
    %c17_i32 = arith.constant 17 : i32
    %c1_i32_95 = arith.constant 1 : i32
    %164 = arith.muli %c17_i32, %c1_i32_95 : i32
    %165 = arith.index_cast %164 : i32 to index
    %c0_96 = arith.constant 0 : index
    %166 = vector.load %arg7[%165, %c0_96] : memref<64x128xf32, #tpu.memory_space<vmem>>, vector<1x128xf32>
    %167 = arith.truncf %166 : vector<1x128xf32> to vector<1x128xbf16>
    %168 = arith.index_cast %c17_i32 : i32 to index
    %c0_97 = arith.constant 0 : index
    %c0_98 = arith.constant 0 : index
    %169 = vector.load %arg3[%168, %c0_97, %c0_98] : memref<64x128x128xbf16, #tpu.memory_space<vmem>>, vector<1x128x128xbf16>
    %170 = vector.shape_cast %169 : vector<1x128x128xbf16> to vector<128x128xbf16>
    %cst_99 = arith.constant dense<0.000000e+00> : vector<1x128xf32>
    %171 = tpu.matmul %167, %170, %cst_99 {dimension_numbers = #tpu.dot_dimension_numbers<[1], [0], [0], [1], [0, 0, 1, 1], [], []>} : vector<1x128xbf16>, vector<128x128xbf16>, vector<1x128xf32> -> vector<1x128xf32>
    %172 = arith.addf %163, %171 : vector<1x128xf32>
    %c18_i32 = arith.constant 18 : i32
    %c1_i32_100 = arith.constant 1 : i32
    %173 = arith.muli %c18_i32, %c1_i32_100 : i32
    %174 = arith.index_cast %173 : i32 to index
    %c0_101 = arith.constant 0 : index
    %175 = vector.load %arg7[%174, %c0_101] : memref<64x128xf32, #tpu.memory_space<vmem>>, vector<1x128xf32>
    %176 = arith.truncf %175 : vector<1x128xf32> to vector<1x128xbf16>
    %177 = arith.index_cast %c18_i32 : i32 to index
    %c0_102 = arith.constant 0 : index
    %c0_103 = arith.constant 0 : index
    %178 = vector.load %arg3[%177, %c0_102, %c0_103] : memref<64x128x128xbf16, #tpu.memory_space<vmem>>, vector<1x128x128xbf16>
    %179 = vector.shape_cast %178 : vector<1x128x128xbf16> to vector<128x128xbf16>
    %cst_104 = arith.constant dense<0.000000e+00> : vector<1x128xf32>
    %180 = tpu.matmul %176, %179, %cst_104 {dimension_numbers = #tpu.dot_dimension_numbers<[1], [0], [0], [1], [0, 0, 1, 1], [], []>} : vector<1x128xbf16>, vector<128x128xbf16>, vector<1x128xf32> -> vector<1x128xf32>
    %181 = arith.addf %172, %180 : vector<1x128xf32>
    %c19_i32 = arith.constant 19 : i32
    %c1_i32_105 = arith.constant 1 : i32
    %182 = arith.muli %c19_i32, %c1_i32_105 : i32
    %183 = arith.index_cast %182 : i32 to index
    %c0_106 = arith.constant 0 : index
    %184 = vector.load %arg7[%183, %c0_106] : memref<64x128xf32, #tpu.memory_space<vmem>>, vector<1x128xf32>
    %185 = arith.truncf %184 : vector<1x128xf32> to vector<1x128xbf16>
    %186 = arith.index_cast %c19_i32 : i32 to index
    %c0_107 = arith.constant 0 : index
    %c0_108 = arith.constant 0 : index
    %187 = vector.load %arg3[%186, %c0_107, %c0_108] : memref<64x128x128xbf16, #tpu.memory_space<vmem>>, vector<1x128x128xbf16>
    %188 = vector.shape_cast %187 : vector<1x128x128xbf16> to vector<128x128xbf16>
    %cst_109 = arith.constant dense<0.000000e+00> : vector<1x128xf32>
    %189 = tpu.matmul %185, %188, %cst_109 {dimension_numbers = #tpu.dot_dimension_numbers<[1], [0], [0], [1], [0, 0, 1, 1], [], []>} : vector<1x128xbf16>, vector<128x128xbf16>, vector<1x128xf32> -> vector<1x128xf32>
    %190 = arith.addf %181, %189 : vector<1x128xf32>
    %c20_i32 = arith.constant 20 : i32
    %c1_i32_110 = arith.constant 1 : i32
    %191 = arith.muli %c20_i32, %c1_i32_110 : i32
    %192 = arith.index_cast %191 : i32 to index
    %c0_111 = arith.constant 0 : index
    %193 = vector.load %arg7[%192, %c0_111] : memref<64x128xf32, #tpu.memory_space<vmem>>, vector<1x128xf32>
    %194 = arith.truncf %193 : vector<1x128xf32> to vector<1x128xbf16>
    %195 = arith.index_cast %c20_i32 : i32 to index
    %c0_112 = arith.constant 0 : index
    %c0_113 = arith.constant 0 : index
    %196 = vector.load %arg3[%195, %c0_112, %c0_113] : memref<64x128x128xbf16, #tpu.memory_space<vmem>>, vector<1x128x128xbf16>
    %197 = vector.shape_cast %196 : vector<1x128x128xbf16> to vector<128x128xbf16>
    %cst_114 = arith.constant dense<0.000000e+00> : vector<1x128xf32>
    %198 = tpu.matmul %194, %197, %cst_114 {dimension_numbers = #tpu.dot_dimension_numbers<[1], [0], [0], [1], [0, 0, 1, 1], [], []>} : vector<1x128xbf16>, vector<128x128xbf16>, vector<1x128xf32> -> vector<1x128xf32>
    %199 = arith.addf %190, %198 : vector<1x128xf32>
    %c21_i32 = arith.constant 21 : i32
    %c1_i32_115 = arith.constant 1 : i32
    %200 = arith.muli %c21_i32, %c1_i32_115 : i32
    %201 = arith.index_cast %200 : i32 to index
    %c0_116 = arith.constant 0 : index
    %202 = vector.load %arg7[%201, %c0_116] : memref<64x128xf32, #tpu.memory_space<vmem>>, vector<1x128xf32>
    %203 = arith.truncf %202 : vector<1x128xf32> to vector<1x128xbf16>
    %204 = arith.index_cast %c21_i32 : i32 to index
    %c0_117 = arith.constant 0 : index
    %c0_118 = arith.constant 0 : index
    %205 = vector.load %arg3[%204, %c0_117, %c0_118] : memref<64x128x128xbf16, #tpu.memory_space<vmem>>, vector<1x128x128xbf16>
    %206 = vector.shape_cast %205 : vector<1x128x128xbf16> to vector<128x128xbf16>
    %cst_119 = arith.constant dense<0.000000e+00> : vector<1x128xf32>
    %207 = tpu.matmul %203, %206, %cst_119 {dimension_numbers = #tpu.dot_dimension_numbers<[1], [0], [0], [1], [0, 0, 1, 1], [], []>} : vector<1x128xbf16>, vector<128x128xbf16>, vector<1x128xf32> -> vector<1x128xf32>
    %208 = arith.addf %199, %207 : vector<1x128xf32>
    %c22_i32 = arith.constant 22 : i32
    %c1_i32_120 = arith.constant 1 : i32
    %209 = arith.muli %c22_i32, %c1_i32_120 : i32
    %210 = arith.index_cast %209 : i32 to index
    %c0_121 = arith.constant 0 : index
    %211 = vector.load %arg7[%210, %c0_121] : memref<64x128xf32, #tpu.memory_space<vmem>>, vector<1x128xf32>
    %212 = arith.truncf %211 : vector<1x128xf32> to vector<1x128xbf16>
    %213 = arith.index_cast %c22_i32 : i32 to index
    %c0_122 = arith.constant 0 : index
    %c0_123 = arith.constant 0 : index
    %214 = vector.load %arg3[%213, %c0_122, %c0_123] : memref<64x128x128xbf16, #tpu.memory_space<vmem>>, vector<1x128x128xbf16>
    %215 = vector.shape_cast %214 : vector<1x128x128xbf16> to vector<128x128xbf16>
    %cst_124 = arith.constant dense<0.000000e+00> : vector<1x128xf32>
    %216 = tpu.matmul %212, %215, %cst_124 {dimension_numbers = #tpu.dot_dimension_numbers<[1], [0], [0], [1], [0, 0, 1, 1], [], []>} : vector<1x128xbf16>, vector<128x128xbf16>, vector<1x128xf32> -> vector<1x128xf32>
    %217 = arith.addf %208, %216 : vector<1x128xf32>
    %c23_i32 = arith.constant 23 : i32
    %c1_i32_125 = arith.constant 1 : i32
    %218 = arith.muli %c23_i32, %c1_i32_125 : i32
    %219 = arith.index_cast %218 : i32 to index
    %c0_126 = arith.constant 0 : index
    %220 = vector.load %arg7[%219, %c0_126] : memref<64x128xf32, #tpu.memory_space<vmem>>, vector<1x128xf32>
    %221 = arith.truncf %220 : vector<1x128xf32> to vector<1x128xbf16>
    %222 = arith.index_cast %c23_i32 : i32 to index
    %c0_127 = arith.constant 0 : index
    %c0_128 = arith.constant 0 : index
    %223 = vector.load %arg3[%222, %c0_127, %c0_128] : memref<64x128x128xbf16, #tpu.memory_space<vmem>>, vector<1x128x128xbf16>
    %224 = vector.shape_cast %223 : vector<1x128x128xbf16> to vector<128x128xbf16>
    %cst_129 = arith.constant dense<0.000000e+00> : vector<1x128xf32>
    %225 = tpu.matmul %221, %224, %cst_129 {dimension_numbers = #tpu.dot_dimension_numbers<[1], [0], [0], [1], [0, 0, 1, 1], [], []>} : vector<1x128xbf16>, vector<128x128xbf16>, vector<1x128xf32> -> vector<1x128xf32>
    %226 = arith.addf %217, %225 : vector<1x128xf32>
    %c24_i32 = arith.constant 24 : i32
    %c1_i32_130 = arith.constant 1 : i32
    %227 = arith.muli %c24_i32, %c1_i32_130 : i32
    %228 = arith.index_cast %227 : i32 to index
    %c0_131 = arith.constant 0 : index
    %229 = vector.load %arg7[%228, %c0_131] : memref<64x128xf32, #tpu.memory_space<vmem>>, vector<1x128xf32>
    %230 = arith.truncf %229 : vector<1x128xf32> to vector<1x128xbf16>
    %231 = arith.index_cast %c24_i32 : i32 to index
    %c0_132 = arith.constant 0 : index
    %c0_133 = arith.constant 0 : index
    %232 = vector.load %arg3[%231, %c0_132, %c0_133] : memref<64x128x128xbf16, #tpu.memory_space<vmem>>, vector<1x128x128xbf16>
    %233 = vector.shape_cast %232 : vector<1x128x128xbf16> to vector<128x128xbf16>
    %cst_134 = arith.constant dense<0.000000e+00> : vector<1x128xf32>
    %234 = tpu.matmul %230, %233, %cst_134 {dimension_numbers = #tpu.dot_dimension_numbers<[1], [0], [0], [1], [0, 0, 1, 1], [], []>} : vector<1x128xbf16>, vector<128x128xbf16>, vector<1x128xf32> -> vector<1x128xf32>
    %235 = arith.addf %226, %234 : vector<1x128xf32>
    %c25_i32 = arith.constant 25 : i32
    %c1_i32_135 = arith.constant 1 : i32
    %236 = arith.muli %c25_i32, %c1_i32_135 : i32
    %237 = arith.index_cast %236 : i32 to index
    %c0_136 = arith.constant 0 : index
    %238 = vector.load %arg7[%237, %c0_136] : memref<64x128xf32, #tpu.memory_space<vmem>>, vector<1x128xf32>
    %239 = arith.truncf %238 : vector<1x128xf32> to vector<1x128xbf16>
    %240 = arith.index_cast %c25_i32 : i32 to index
    %c0_137 = arith.constant 0 : index
    %c0_138 = arith.constant 0 : index
    %241 = vector.load %arg3[%240, %c0_137, %c0_138] : memref<64x128x128xbf16, #tpu.memory_space<vmem>>, vector<1x128x128xbf16>
    %242 = vector.shape_cast %241 : vector<1x128x128xbf16> to vector<128x128xbf16>
    %cst_139 = arith.constant dense<0.000000e+00> : vector<1x128xf32>
    %243 = tpu.matmul %239, %242, %cst_139 {dimension_numbers = #tpu.dot_dimension_numbers<[1], [0], [0], [1], [0, 0, 1, 1], [], []>} : vector<1x128xbf16>, vector<128x128xbf16>, vector<1x128xf32> -> vector<1x128xf32>
    %244 = arith.addf %235, %243 : vector<1x128xf32>
    %c26_i32 = arith.constant 26 : i32
    %c1_i32_140 = arith.constant 1 : i32
    %245 = arith.muli %c26_i32, %c1_i32_140 : i32
    %246 = arith.index_cast %245 : i32 to index
    %c0_141 = arith.constant 0 : index
    %247 = vector.load %arg7[%246, %c0_141] : memref<64x128xf32, #tpu.memory_space<vmem>>, vector<1x128xf32>
    %248 = arith.truncf %247 : vector<1x128xf32> to vector<1x128xbf16>
    %249 = arith.index_cast %c26_i32 : i32 to index
    %c0_142 = arith.constant 0 : index
    %c0_143 = arith.constant 0 : index
    %250 = vector.load %arg3[%249, %c0_142, %c0_143] : memref<64x128x128xbf16, #tpu.memory_space<vmem>>, vector<1x128x128xbf16>
    %251 = vector.shape_cast %250 : vector<1x128x128xbf16> to vector<128x128xbf16>
    %cst_144 = arith.constant dense<0.000000e+00> : vector<1x128xf32>
    %252 = tpu.matmul %248, %251, %cst_144 {dimension_numbers = #tpu.dot_dimension_numbers<[1], [0], [0], [1], [0, 0, 1, 1], [], []>} : vector<1x128xbf16>, vector<128x128xbf16>, vector<1x128xf32> -> vector<1x128xf32>
    %253 = arith.addf %244, %252 : vector<1x128xf32>
    %c27_i32 = arith.constant 27 : i32
    %c1_i32_145 = arith.constant 1 : i32
    %254 = arith.muli %c27_i32, %c1_i32_145 : i32
    %255 = arith.index_cast %254 : i32 to index
    %c0_146 = arith.constant 0 : index
    %256 = vector.load %arg7[%255, %c0_146] : memref<64x128xf32, #tpu.memory_space<vmem>>, vector<1x128xf32>
    %257 = arith.truncf %256 : vector<1x128xf32> to vector<1x128xbf16>
    %258 = arith.index_cast %c27_i32 : i32 to index
    %c0_147 = arith.constant 0 : index
    %c0_148 = arith.constant 0 : index
    %259 = vector.load %arg3[%258, %c0_147, %c0_148] : memref<64x128x128xbf16, #tpu.memory_space<vmem>>, vector<1x128x128xbf16>
    %260 = vector.shape_cast %259 : vector<1x128x128xbf16> to vector<128x128xbf16>
    %cst_149 = arith.constant dense<0.000000e+00> : vector<1x128xf32>
    %261 = tpu.matmul %257, %260, %cst_149 {dimension_numbers = #tpu.dot_dimension_numbers<[1], [0], [0], [1], [0, 0, 1, 1], [], []>} : vector<1x128xbf16>, vector<128x128xbf16>, vector<1x128xf32> -> vector<1x128xf32>
    %262 = arith.addf %253, %261 : vector<1x128xf32>
    %c28_i32 = arith.constant 28 : i32
    %c1_i32_150 = arith.constant 1 : i32
    %263 = arith.muli %c28_i32, %c1_i32_150 : i32
    %264 = arith.index_cast %263 : i32 to index
    %c0_151 = arith.constant 0 : index
    %265 = vector.load %arg7[%264, %c0_151] : memref<64x128xf32, #tpu.memory_space<vmem>>, vector<1x128xf32>
    %266 = arith.truncf %265 : vector<1x128xf32> to vector<1x128xbf16>
    %267 = arith.index_cast %c28_i32 : i32 to index
    %c0_152 = arith.constant 0 : index
    %c0_153 = arith.constant 0 : index
    %268 = vector.load %arg3[%267, %c0_152, %c0_153] : memref<64x128x128xbf16, #tpu.memory_space<vmem>>, vector<1x128x128xbf16>
    %269 = vector.shape_cast %268 : vector<1x128x128xbf16> to vector<128x128xbf16>
    %cst_154 = arith.constant dense<0.000000e+00> : vector<1x128xf32>
    %270 = tpu.matmul %266, %269, %cst_154 {dimension_numbers = #tpu.dot_dimension_numbers<[1], [0], [0], [1], [0, 0, 1, 1], [], []>} : vector<1x128xbf16>, vector<128x128xbf16>, vector<1x128xf32> -> vector<1x128xf32>
    %271 = arith.addf %262, %270 : vector<1x128xf32>
    %c29_i32 = arith.constant 29 : i32
    %c1_i32_155 = arith.constant 1 : i32
    %272 = arith.muli %c29_i32, %c1_i32_155 : i32
    %273 = arith.index_cast %272 : i32 to index
    %c0_156 = arith.constant 0 : index
    %274 = vector.load %arg7[%273, %c0_156] : memref<64x128xf32, #tpu.memory_space<vmem>>, vector<1x128xf32>
    %275 = arith.truncf %274 : vector<1x128xf32> to vector<1x128xbf16>
    %276 = arith.index_cast %c29_i32 : i32 to index
    %c0_157 = arith.constant 0 : index
    %c0_158 = arith.constant 0 : index
    %277 = vector.load %arg3[%276, %c0_157, %c0_158] : memref<64x128x128xbf16, #tpu.memory_space<vmem>>, vector<1x128x128xbf16>
    %278 = vector.shape_cast %277 : vector<1x128x128xbf16> to vector<128x128xbf16>
    %cst_159 = arith.constant dense<0.000000e+00> : vector<1x128xf32>
    %279 = tpu.matmul %275, %278, %cst_159 {dimension_numbers = #tpu.dot_dimension_numbers<[1], [0], [0], [1], [0, 0, 1, 1], [], []>} : vector<1x128xbf16>, vector<128x128xbf16>, vector<1x128xf32> -> vector<1x128xf32>
    %280 = arith.addf %271, %279 : vector<1x128xf32>
    %c30_i32 = arith.constant 30 : i32
    %c1_i32_160 = arith.constant 1 : i32
    %281 = arith.muli %c30_i32, %c1_i32_160 : i32
    %282 = arith.index_cast %281 : i32 to index
    %c0_161 = arith.constant 0 : index
    %283 = vector.load %arg7[%282, %c0_161] : memref<64x128xf32, #tpu.memory_space<vmem>>, vector<1x128xf32>
    %284 = arith.truncf %283 : vector<1x128xf32> to vector<1x128xbf16>
    %285 = arith.index_cast %c30_i32 : i32 to index
    %c0_162 = arith.constant 0 : index
    %c0_163 = arith.constant 0 : index
    %286 = vector.load %arg3[%285, %c0_162, %c0_163] : memref<64x128x128xbf16, #tpu.memory_space<vmem>>, vector<1x128x128xbf16>
    %287 = vector.shape_cast %286 : vector<1x128x128xbf16> to vector<128x128xbf16>
    %cst_164 = arith.constant dense<0.000000e+00> : vector<1x128xf32>
    %288 = tpu.matmul %284, %287, %cst_164 {dimension_numbers = #tpu.dot_dimension_numbers<[1], [0], [0], [1], [0, 0, 1, 1], [], []>} : vector<1x128xbf16>, vector<128x128xbf16>, vector<1x128xf32> -> vector<1x128xf32>
    %289 = arith.addf %280, %288 : vector<1x128xf32>
    %c31_i32 = arith.constant 31 : i32
    %c1_i32_165 = arith.constant 1 : i32
    %290 = arith.muli %c31_i32, %c1_i32_165 : i32
    %291 = arith.index_cast %290 : i32 to index
    %c0_166 = arith.constant 0 : index
    %292 = vector.load %arg7[%291, %c0_166] : memref<64x128xf32, #tpu.memory_space<vmem>>, vector<1x128xf32>
    %293 = arith.truncf %292 : vector<1x128xf32> to vector<1x128xbf16>
    %294 = arith.index_cast %c31_i32 : i32 to index
    %c0_167 = arith.constant 0 : index
    %c0_168 = arith.constant 0 : index
    %295 = vector.load %arg3[%294, %c0_167, %c0_168] : memref<64x128x128xbf16, #tpu.memory_space<vmem>>, vector<1x128x128xbf16>
    %296 = vector.shape_cast %295 : vector<1x128x128xbf16> to vector<128x128xbf16>
    %cst_169 = arith.constant dense<0.000000e+00> : vector<1x128xf32>
    %297 = tpu.matmul %293, %296, %cst_169 {dimension_numbers = #tpu.dot_dimension_numbers<[1], [0], [0], [1], [0, 0, 1, 1], [], []>} : vector<1x128xbf16>, vector<128x128xbf16>, vector<1x128xf32> -> vector<1x128xf32>
    %298 = arith.addf %289, %297 : vector<1x128xf32>
    %c32_i32 = arith.constant 32 : i32
    %c1_i32_170 = arith.constant 1 : i32
    %299 = arith.muli %c32_i32, %c1_i32_170 : i32
    %300 = arith.index_cast %299 : i32 to index
    %c0_171 = arith.constant 0 : index
    %301 = vector.load %arg7[%300, %c0_171] : memref<64x128xf32, #tpu.memory_space<vmem>>, vector<1x128xf32>
    %302 = arith.truncf %301 : vector<1x128xf32> to vector<1x128xbf16>
    %303 = arith.index_cast %c32_i32 : i32 to index
    %c0_172 = arith.constant 0 : index
    %c0_173 = arith.constant 0 : index
    %304 = vector.load %arg3[%303, %c0_172, %c0_173] : memref<64x128x128xbf16, #tpu.memory_space<vmem>>, vector<1x128x128xbf16>
    %305 = vector.shape_cast %304 : vector<1x128x128xbf16> to vector<128x128xbf16>
    %cst_174 = arith.constant dense<0.000000e+00> : vector<1x128xf32>
    %306 = tpu.matmul %302, %305, %cst_174 {dimension_numbers = #tpu.dot_dimension_numbers<[1], [0], [0], [1], [0, 0, 1, 1], [], []>} : vector<1x128xbf16>, vector<128x128xbf16>, vector<1x128xf32> -> vector<1x128xf32>
    %307 = arith.addf %298, %306 : vector<1x128xf32>
    %c33_i32 = arith.constant 33 : i32
    %c1_i32_175 = arith.constant 1 : i32
    %308 = arith.muli %c33_i32, %c1_i32_175 : i32
    %309 = arith.index_cast %308 : i32 to index
    %c0_176 = arith.constant 0 : index
    %310 = vector.load %arg7[%309, %c0_176] : memref<64x128xf32, #tpu.memory_space<vmem>>, vector<1x128xf32>
    %311 = arith.truncf %310 : vector<1x128xf32> to vector<1x128xbf16>
    %312 = arith.index_cast %c33_i32 : i32 to index
    %c0_177 = arith.constant 0 : index
    %c0_178 = arith.constant 0 : index
    %313 = vector.load %arg3[%312, %c0_177, %c0_178] : memref<64x128x128xbf16, #tpu.memory_space<vmem>>, vector<1x128x128xbf16>
    %314 = vector.shape_cast %313 : vector<1x128x128xbf16> to vector<128x128xbf16>
    %cst_179 = arith.constant dense<0.000000e+00> : vector<1x128xf32>
    %315 = tpu.matmul %311, %314, %cst_179 {dimension_numbers = #tpu.dot_dimension_numbers<[1], [0], [0], [1], [0, 0, 1, 1], [], []>} : vector<1x128xbf16>, vector<128x128xbf16>, vector<1x128xf32> -> vector<1x128xf32>
    %316 = arith.addf %307, %315 : vector<1x128xf32>
    %c34_i32 = arith.constant 34 : i32
    %c1_i32_180 = arith.constant 1 : i32
    %317 = arith.muli %c34_i32, %c1_i32_180 : i32
    %318 = arith.index_cast %317 : i32 to index
    %c0_181 = arith.constant 0 : index
    %319 = vector.load %arg7[%318, %c0_181] : memref<64x128xf32, #tpu.memory_space<vmem>>, vector<1x128xf32>
    %320 = arith.truncf %319 : vector<1x128xf32> to vector<1x128xbf16>
    %321 = arith.index_cast %c34_i32 : i32 to index
    %c0_182 = arith.constant 0 : index
    %c0_183 = arith.constant 0 : index
    %322 = vector.load %arg3[%321, %c0_182, %c0_183] : memref<64x128x128xbf16, #tpu.memory_space<vmem>>, vector<1x128x128xbf16>
    %323 = vector.shape_cast %322 : vector<1x128x128xbf16> to vector<128x128xbf16>
    %cst_184 = arith.constant dense<0.000000e+00> : vector<1x128xf32>
    %324 = tpu.matmul %320, %323, %cst_184 {dimension_numbers = #tpu.dot_dimension_numbers<[1], [0], [0], [1], [0, 0, 1, 1], [], []>} : vector<1x128xbf16>, vector<128x128xbf16>, vector<1x128xf32> -> vector<1x128xf32>
    %325 = arith.addf %316, %324 : vector<1x128xf32>
    %c35_i32 = arith.constant 35 : i32
    %c1_i32_185 = arith.constant 1 : i32
    %326 = arith.muli %c35_i32, %c1_i32_185 : i32
    %327 = arith.index_cast %326 : i32 to index
    %c0_186 = arith.constant 0 : index
    %328 = vector.load %arg7[%327, %c0_186] : memref<64x128xf32, #tpu.memory_space<vmem>>, vector<1x128xf32>
    %329 = arith.truncf %328 : vector<1x128xf32> to vector<1x128xbf16>
    %330 = arith.index_cast %c35_i32 : i32 to index
    %c0_187 = arith.constant 0 : index
    %c0_188 = arith.constant 0 : index
    %331 = vector.load %arg3[%330, %c0_187, %c0_188] : memref<64x128x128xbf16, #tpu.memory_space<vmem>>, vector<1x128x128xbf16>
    %332 = vector.shape_cast %331 : vector<1x128x128xbf16> to vector<128x128xbf16>
    %cst_189 = arith.constant dense<0.000000e+00> : vector<1x128xf32>
    %333 = tpu.matmul %329, %332, %cst_189 {dimension_numbers = #tpu.dot_dimension_numbers<[1], [0], [0], [1], [0, 0, 1, 1], [], []>} : vector<1x128xbf16>, vector<128x128xbf16>, vector<1x128xf32> -> vector<1x128xf32>
    %334 = arith.addf %325, %333 : vector<1x128xf32>
    %c36_i32 = arith.constant 36 : i32
    %c1_i32_190 = arith.constant 1 : i32
    %335 = arith.muli %c36_i32, %c1_i32_190 : i32
    %336 = arith.index_cast %335 : i32 to index
    %c0_191 = arith.constant 0 : index
    %337 = vector.load %arg7[%336, %c0_191] : memref<64x128xf32, #tpu.memory_space<vmem>>, vector<1x128xf32>
    %338 = arith.truncf %337 : vector<1x128xf32> to vector<1x128xbf16>
    %339 = arith.index_cast %c36_i32 : i32 to index
    %c0_192 = arith.constant 0 : index
    %c0_193 = arith.constant 0 : index
    %340 = vector.load %arg3[%339, %c0_192, %c0_193] : memref<64x128x128xbf16, #tpu.memory_space<vmem>>, vector<1x128x128xbf16>
    %341 = vector.shape_cast %340 : vector<1x128x128xbf16> to vector<128x128xbf16>
    %cst_194 = arith.constant dense<0.000000e+00> : vector<1x128xf32>
    %342 = tpu.matmul %338, %341, %cst_194 {dimension_numbers = #tpu.dot_dimension_numbers<[1], [0], [0], [1], [0, 0, 1, 1], [], []>} : vector<1x128xbf16>, vector<128x128xbf16>, vector<1x128xf32> -> vector<1x128xf32>
    %343 = arith.addf %334, %342 : vector<1x128xf32>
    %c37_i32 = arith.constant 37 : i32
    %c1_i32_195 = arith.constant 1 : i32
    %344 = arith.muli %c37_i32, %c1_i32_195 : i32
    %345 = arith.index_cast %344 : i32 to index
    %c0_196 = arith.constant 0 : index
    %346 = vector.load %arg7[%345, %c0_196] : memref<64x128xf32, #tpu.memory_space<vmem>>, vector<1x128xf32>
    %347 = arith.truncf %346 : vector<1x128xf32> to vector<1x128xbf16>
    %348 = arith.index_cast %c37_i32 : i32 to index
    %c0_197 = arith.constant 0 : index
    %c0_198 = arith.constant 0 : index
    %349 = vector.load %arg3[%348, %c0_197, %c0_198] : memref<64x128x128xbf16, #tpu.memory_space<vmem>>, vector<1x128x128xbf16>
    %350 = vector.shape_cast %349 : vector<1x128x128xbf16> to vector<128x128xbf16>
    %cst_199 = arith.constant dense<0.000000e+00> : vector<1x128xf32>
    %351 = tpu.matmul %347, %350, %cst_199 {dimension_numbers = #tpu.dot_dimension_numbers<[1], [0], [0], [1], [0, 0, 1, 1], [], []>} : vector<1x128xbf16>, vector<128x128xbf16>, vector<1x128xf32> -> vector<1x128xf32>
    %352 = arith.addf %343, %351 : vector<1x128xf32>
    %c38_i32 = arith.constant 38 : i32
    %c1_i32_200 = arith.constant 1 : i32
    %353 = arith.muli %c38_i32, %c1_i32_200 : i32
    %354 = arith.index_cast %353 : i32 to index
    %c0_201 = arith.constant 0 : index
    %355 = vector.load %arg7[%354, %c0_201] : memref<64x128xf32, #tpu.memory_space<vmem>>, vector<1x128xf32>
    %356 = arith.truncf %355 : vector<1x128xf32> to vector<1x128xbf16>
    %357 = arith.index_cast %c38_i32 : i32 to index
    %c0_202 = arith.constant 0 : index
    %c0_203 = arith.constant 0 : index
    %358 = vector.load %arg3[%357, %c0_202, %c0_203] : memref<64x128x128xbf16, #tpu.memory_space<vmem>>, vector<1x128x128xbf16>
    %359 = vector.shape_cast %358 : vector<1x128x128xbf16> to vector<128x128xbf16>
    %cst_204 = arith.constant dense<0.000000e+00> : vector<1x128xf32>
    %360 = tpu.matmul %356, %359, %cst_204 {dimension_numbers = #tpu.dot_dimension_numbers<[1], [0], [0], [1], [0, 0, 1, 1], [], []>} : vector<1x128xbf16>, vector<128x128xbf16>, vector<1x128xf32> -> vector<1x128xf32>
    %361 = arith.addf %352, %360 : vector<1x128xf32>
    %c39_i32 = arith.constant 39 : i32
    %c1_i32_205 = arith.constant 1 : i32
    %362 = arith.muli %c39_i32, %c1_i32_205 : i32
    %363 = arith.index_cast %362 : i32 to index
    %c0_206 = arith.constant 0 : index
    %364 = vector.load %arg7[%363, %c0_206] : memref<64x128xf32, #tpu.memory_space<vmem>>, vector<1x128xf32>
    %365 = arith.truncf %364 : vector<1x128xf32> to vector<1x128xbf16>
    %366 = arith.index_cast %c39_i32 : i32 to index
    %c0_207 = arith.constant 0 : index
    %c0_208 = arith.constant 0 : index
    %367 = vector.load %arg3[%366, %c0_207, %c0_208] : memref<64x128x128xbf16, #tpu.memory_space<vmem>>, vector<1x128x128xbf16>
    %368 = vector.shape_cast %367 : vector<1x128x128xbf16> to vector<128x128xbf16>
    %cst_209 = arith.constant dense<0.000000e+00> : vector<1x128xf32>
    %369 = tpu.matmul %365, %368, %cst_209 {dimension_numbers = #tpu.dot_dimension_numbers<[1], [0], [0], [1], [0, 0, 1, 1], [], []>} : vector<1x128xbf16>, vector<128x128xbf16>, vector<1x128xf32> -> vector<1x128xf32>
    %370 = arith.addf %361, %369 : vector<1x128xf32>
    %c40_i32 = arith.constant 40 : i32
    %c1_i32_210 = arith.constant 1 : i32
    %371 = arith.muli %c40_i32, %c1_i32_210 : i32
    %372 = arith.index_cast %371 : i32 to index
    %c0_211 = arith.constant 0 : index
    %373 = vector.load %arg7[%372, %c0_211] : memref<64x128xf32, #tpu.memory_space<vmem>>, vector<1x128xf32>
    %374 = arith.truncf %373 : vector<1x128xf32> to vector<1x128xbf16>
    %375 = arith.index_cast %c40_i32 : i32 to index
    %c0_212 = arith.constant 0 : index
    %c0_213 = arith.constant 0 : index
    %376 = vector.load %arg3[%375, %c0_212, %c0_213] : memref<64x128x128xbf16, #tpu.memory_space<vmem>>, vector<1x128x128xbf16>
    %377 = vector.shape_cast %376 : vector<1x128x128xbf16> to vector<128x128xbf16>
    %cst_214 = arith.constant dense<0.000000e+00> : vector<1x128xf32>
    %378 = tpu.matmul %374, %377, %cst_214 {dimension_numbers = #tpu.dot_dimension_numbers<[1], [0], [0], [1], [0, 0, 1, 1], [], []>} : vector<1x128xbf16>, vector<128x128xbf16>, vector<1x128xf32> -> vector<1x128xf32>
    %379 = arith.addf %370, %378 : vector<1x128xf32>
    %c41_i32 = arith.constant 41 : i32
    %c1_i32_215 = arith.constant 1 : i32
    %380 = arith.muli %c41_i32, %c1_i32_215 : i32
    %381 = arith.index_cast %380 : i32 to index
    %c0_216 = arith.constant 0 : index
    %382 = vector.load %arg7[%381, %c0_216] : memref<64x128xf32, #tpu.memory_space<vmem>>, vector<1x128xf32>
    %383 = arith.truncf %382 : vector<1x128xf32> to vector<1x128xbf16>
    %384 = arith.index_cast %c41_i32 : i32 to index
    %c0_217 = arith.constant 0 : index
    %c0_218 = arith.constant 0 : index
    %385 = vector.load %arg3[%384, %c0_217, %c0_218] : memref<64x128x128xbf16, #tpu.memory_space<vmem>>, vector<1x128x128xbf16>
    %386 = vector.shape_cast %385 : vector<1x128x128xbf16> to vector<128x128xbf16>
    %cst_219 = arith.constant dense<0.000000e+00> : vector<1x128xf32>
    %387 = tpu.matmul %383, %386, %cst_219 {dimension_numbers = #tpu.dot_dimension_numbers<[1], [0], [0], [1], [0, 0, 1, 1], [], []>} : vector<1x128xbf16>, vector<128x128xbf16>, vector<1x128xf32> -> vector<1x128xf32>
    %388 = arith.addf %379, %387 : vector<1x128xf32>
    %c42_i32 = arith.constant 42 : i32
    %c1_i32_220 = arith.constant 1 : i32
    %389 = arith.muli %c42_i32, %c1_i32_220 : i32
    %390 = arith.index_cast %389 : i32 to index
    %c0_221 = arith.constant 0 : index
    %391 = vector.load %arg7[%390, %c0_221] : memref<64x128xf32, #tpu.memory_space<vmem>>, vector<1x128xf32>
    %392 = arith.truncf %391 : vector<1x128xf32> to vector<1x128xbf16>
    %393 = arith.index_cast %c42_i32 : i32 to index
    %c0_222 = arith.constant 0 : index
    %c0_223 = arith.constant 0 : index
    %394 = vector.load %arg3[%393, %c0_222, %c0_223] : memref<64x128x128xbf16, #tpu.memory_space<vmem>>, vector<1x128x128xbf16>
    %395 = vector.shape_cast %394 : vector<1x128x128xbf16> to vector<128x128xbf16>
    %cst_224 = arith.constant dense<0.000000e+00> : vector<1x128xf32>
    %396 = tpu.matmul %392, %395, %cst_224 {dimension_numbers = #tpu.dot_dimension_numbers<[1], [0], [0], [1], [0, 0, 1, 1], [], []>} : vector<1x128xbf16>, vector<128x128xbf16>, vector<1x128xf32> -> vector<1x128xf32>
    %397 = arith.addf %388, %396 : vector<1x128xf32>
    %c43_i32 = arith.constant 43 : i32
    %c1_i32_225 = arith.constant 1 : i32
    %398 = arith.muli %c43_i32, %c1_i32_225 : i32
    %399 = arith.index_cast %398 : i32 to index
    %c0_226 = arith.constant 0 : index
    %400 = vector.load %arg7[%399, %c0_226] : memref<64x128xf32, #tpu.memory_space<vmem>>, vector<1x128xf32>
    %401 = arith.truncf %400 : vector<1x128xf32> to vector<1x128xbf16>
    %402 = arith.index_cast %c43_i32 : i32 to index
    %c0_227 = arith.constant 0 : index
    %c0_228 = arith.constant 0 : index
    %403 = vector.load %arg3[%402, %c0_227, %c0_228] : memref<64x128x128xbf16, #tpu.memory_space<vmem>>, vector<1x128x128xbf16>
    %404 = vector.shape_cast %403 : vector<1x128x128xbf16> to vector<128x128xbf16>
    %cst_229 = arith.constant dense<0.000000e+00> : vector<1x128xf32>
    %405 = tpu.matmul %401, %404, %cst_229 {dimension_numbers = #tpu.dot_dimension_numbers<[1], [0], [0], [1], [0, 0, 1, 1], [], []>} : vector<1x128xbf16>, vector<128x128xbf16>, vector<1x128xf32> -> vector<1x128xf32>
    %406 = arith.addf %397, %405 : vector<1x128xf32>
    %c44_i32 = arith.constant 44 : i32
    %c1_i32_230 = arith.constant 1 : i32
    %407 = arith.muli %c44_i32, %c1_i32_230 : i32
    %408 = arith.index_cast %407 : i32 to index
    %c0_231 = arith.constant 0 : index
    %409 = vector.load %arg7[%408, %c0_231] : memref<64x128xf32, #tpu.memory_space<vmem>>, vector<1x128xf32>
    %410 = arith.truncf %409 : vector<1x128xf32> to vector<1x128xbf16>
    %411 = arith.index_cast %c44_i32 : i32 to index
    %c0_232 = arith.constant 0 : index
    %c0_233 = arith.constant 0 : index
    %412 = vector.load %arg3[%411, %c0_232, %c0_233] : memref<64x128x128xbf16, #tpu.memory_space<vmem>>, vector<1x128x128xbf16>
    %413 = vector.shape_cast %412 : vector<1x128x128xbf16> to vector<128x128xbf16>
    %cst_234 = arith.constant dense<0.000000e+00> : vector<1x128xf32>
    %414 = tpu.matmul %410, %413, %cst_234 {dimension_numbers = #tpu.dot_dimension_numbers<[1], [0], [0], [1], [0, 0, 1, 1], [], []>} : vector<1x128xbf16>, vector<128x128xbf16>, vector<1x128xf32> -> vector<1x128xf32>
    %415 = arith.addf %406, %414 : vector<1x128xf32>
    %c45_i32 = arith.constant 45 : i32
    %c1_i32_235 = arith.constant 1 : i32
    %416 = arith.muli %c45_i32, %c1_i32_235 : i32
    %417 = arith.index_cast %416 : i32 to index
    %c0_236 = arith.constant 0 : index
    %418 = vector.load %arg7[%417, %c0_236] : memref<64x128xf32, #tpu.memory_space<vmem>>, vector<1x128xf32>
    %419 = arith.truncf %418 : vector<1x128xf32> to vector<1x128xbf16>
    %420 = arith.index_cast %c45_i32 : i32 to index
    %c0_237 = arith.constant 0 : index
    %c0_238 = arith.constant 0 : index
    %421 = vector.load %arg3[%420, %c0_237, %c0_238] : memref<64x128x128xbf16, #tpu.memory_space<vmem>>, vector<1x128x128xbf16>
    %422 = vector.shape_cast %421 : vector<1x128x128xbf16> to vector<128x128xbf16>
    %cst_239 = arith.constant dense<0.000000e+00> : vector<1x128xf32>
    %423 = tpu.matmul %419, %422, %cst_239 {dimension_numbers = #tpu.dot_dimension_numbers<[1], [0], [0], [1], [0, 0, 1, 1], [], []>} : vector<1x128xbf16>, vector<128x128xbf16>, vector<1x128xf32> -> vector<1x128xf32>
    %424 = arith.addf %415, %423 : vector<1x128xf32>
    %c46_i32 = arith.constant 46 : i32
    %c1_i32_240 = arith.constant 1 : i32
    %425 = arith.muli %c46_i32, %c1_i32_240 : i32
    %426 = arith.index_cast %425 : i32 to index
    %c0_241 = arith.constant 0 : index
    %427 = vector.load %arg7[%426, %c0_241] : memref<64x128xf32, #tpu.memory_space<vmem>>, vector<1x128xf32>
    %428 = arith.truncf %427 : vector<1x128xf32> to vector<1x128xbf16>
    %429 = arith.index_cast %c46_i32 : i32 to index
    %c0_242 = arith.constant 0 : index
    %c0_243 = arith.constant 0 : index
    %430 = vector.load %arg3[%429, %c0_242, %c0_243] : memref<64x128x128xbf16, #tpu.memory_space<vmem>>, vector<1x128x128xbf16>
    %431 = vector.shape_cast %430 : vector<1x128x128xbf16> to vector<128x128xbf16>
    %cst_244 = arith.constant dense<0.000000e+00> : vector<1x128xf32>
    %432 = tpu.matmul %428, %431, %cst_244 {dimension_numbers = #tpu.dot_dimension_numbers<[1], [0], [0], [1], [0, 0, 1, 1], [], []>} : vector<1x128xbf16>, vector<128x128xbf16>, vector<1x128xf32> -> vector<1x128xf32>
    %433 = arith.addf %424, %432 : vector<1x128xf32>
    %c47_i32 = arith.constant 47 : i32
    %c1_i32_245 = arith.constant 1 : i32
    %434 = arith.muli %c47_i32, %c1_i32_245 : i32
    %435 = arith.index_cast %434 : i32 to index
    %c0_246 = arith.constant 0 : index
    %436 = vector.load %arg7[%435, %c0_246] : memref<64x128xf32, #tpu.memory_space<vmem>>, vector<1x128xf32>
    %437 = arith.truncf %436 : vector<1x128xf32> to vector<1x128xbf16>
    %438 = arith.index_cast %c47_i32 : i32 to index
    %c0_247 = arith.constant 0 : index
    %c0_248 = arith.constant 0 : index
    %439 = vector.load %arg3[%438, %c0_247, %c0_248] : memref<64x128x128xbf16, #tpu.memory_space<vmem>>, vector<1x128x128xbf16>
    %440 = vector.shape_cast %439 : vector<1x128x128xbf16> to vector<128x128xbf16>
    %cst_249 = arith.constant dense<0.000000e+00> : vector<1x128xf32>
    %441 = tpu.matmul %437, %440, %cst_249 {dimension_numbers = #tpu.dot_dimension_numbers<[1], [0], [0], [1], [0, 0, 1, 1], [], []>} : vector<1x128xbf16>, vector<128x128xbf16>, vector<1x128xf32> -> vector<1x128xf32>
    %442 = arith.addf %433, %441 : vector<1x128xf32>
    %c48_i32 = arith.constant 48 : i32
    %c1_i32_250 = arith.constant 1 : i32
    %443 = arith.muli %c48_i32, %c1_i32_250 : i32
    %444 = arith.index_cast %443 : i32 to index
    %c0_251 = arith.constant 0 : index
    %445 = vector.load %arg7[%444, %c0_251] : memref<64x128xf32, #tpu.memory_space<vmem>>, vector<1x128xf32>
    %446 = arith.truncf %445 : vector<1x128xf32> to vector<1x128xbf16>
    %447 = arith.index_cast %c48_i32 : i32 to index
    %c0_252 = arith.constant 0 : index
    %c0_253 = arith.constant 0 : index
    %448 = vector.load %arg3[%447, %c0_252, %c0_253] : memref<64x128x128xbf16, #tpu.memory_space<vmem>>, vector<1x128x128xbf16>
    %449 = vector.shape_cast %448 : vector<1x128x128xbf16> to vector<128x128xbf16>
    %cst_254 = arith.constant dense<0.000000e+00> : vector<1x128xf32>
    %450 = tpu.matmul %446, %449, %cst_254 {dimension_numbers = #tpu.dot_dimension_numbers<[1], [0], [0], [1], [0, 0, 1, 1], [], []>} : vector<1x128xbf16>, vector<128x128xbf16>, vector<1x128xf32> -> vector<1x128xf32>
    %451 = arith.addf %442, %450 : vector<1x128xf32>
    %c49_i32 = arith.constant 49 : i32
    %c1_i32_255 = arith.constant 1 : i32
    %452 = arith.muli %c49_i32, %c1_i32_255 : i32
    %453 = arith.index_cast %452 : i32 to index
    %c0_256 = arith.constant 0 : index
    %454 = vector.load %arg7[%453, %c0_256] : memref<64x128xf32, #tpu.memory_space<vmem>>, vector<1x128xf32>
    %455 = arith.truncf %454 : vector<1x128xf32> to vector<1x128xbf16>
    %456 = arith.index_cast %c49_i32 : i32 to index
    %c0_257 = arith.constant 0 : index
    %c0_258 = arith.constant 0 : index
    %457 = vector.load %arg3[%456, %c0_257, %c0_258] : memref<64x128x128xbf16, #tpu.memory_space<vmem>>, vector<1x128x128xbf16>
    %458 = vector.shape_cast %457 : vector<1x128x128xbf16> to vector<128x128xbf16>
    %cst_259 = arith.constant dense<0.000000e+00> : vector<1x128xf32>
    %459 = tpu.matmul %455, %458, %cst_259 {dimension_numbers = #tpu.dot_dimension_numbers<[1], [0], [0], [1], [0, 0, 1, 1], [], []>} : vector<1x128xbf16>, vector<128x128xbf16>, vector<1x128xf32> -> vector<1x128xf32>
    %460 = arith.addf %451, %459 : vector<1x128xf32>
    %c50_i32 = arith.constant 50 : i32
    %c1_i32_260 = arith.constant 1 : i32
    %461 = arith.muli %c50_i32, %c1_i32_260 : i32
    %462 = arith.index_cast %461 : i32 to index
    %c0_261 = arith.constant 0 : index
    %463 = vector.load %arg7[%462, %c0_261] : memref<64x128xf32, #tpu.memory_space<vmem>>, vector<1x128xf32>
    %464 = arith.truncf %463 : vector<1x128xf32> to vector<1x128xbf16>
    %465 = arith.index_cast %c50_i32 : i32 to index
    %c0_262 = arith.constant 0 : index
    %c0_263 = arith.constant 0 : index
    %466 = vector.load %arg3[%465, %c0_262, %c0_263] : memref<64x128x128xbf16, #tpu.memory_space<vmem>>, vector<1x128x128xbf16>
    %467 = vector.shape_cast %466 : vector<1x128x128xbf16> to vector<128x128xbf16>
    %cst_264 = arith.constant dense<0.000000e+00> : vector<1x128xf32>
    %468 = tpu.matmul %464, %467, %cst_264 {dimension_numbers = #tpu.dot_dimension_numbers<[1], [0], [0], [1], [0, 0, 1, 1], [], []>} : vector<1x128xbf16>, vector<128x128xbf16>, vector<1x128xf32> -> vector<1x128xf32>
    %469 = arith.addf %460, %468 : vector<1x128xf32>
    %c51_i32 = arith.constant 51 : i32
    %c1_i32_265 = arith.constant 1 : i32
    %470 = arith.muli %c51_i32, %c1_i32_265 : i32
    %471 = arith.index_cast %470 : i32 to index
    %c0_266 = arith.constant 0 : index
    %472 = vector.load %arg7[%471, %c0_266] : memref<64x128xf32, #tpu.memory_space<vmem>>, vector<1x128xf32>
    %473 = arith.truncf %472 : vector<1x128xf32> to vector<1x128xbf16>
    %474 = arith.index_cast %c51_i32 : i32 to index
    %c0_267 = arith.constant 0 : index
    %c0_268 = arith.constant 0 : index
    %475 = vector.load %arg3[%474, %c0_267, %c0_268] : memref<64x128x128xbf16, #tpu.memory_space<vmem>>, vector<1x128x128xbf16>
    %476 = vector.shape_cast %475 : vector<1x128x128xbf16> to vector<128x128xbf16>
    %cst_269 = arith.constant dense<0.000000e+00> : vector<1x128xf32>
    %477 = tpu.matmul %473, %476, %cst_269 {dimension_numbers = #tpu.dot_dimension_numbers<[1], [0], [0], [1], [0, 0, 1, 1], [], []>} : vector<1x128xbf16>, vector<128x128xbf16>, vector<1x128xf32> -> vector<1x128xf32>
    %478 = arith.addf %469, %477 : vector<1x128xf32>
    %c52_i32 = arith.constant 52 : i32
    %c1_i32_270 = arith.constant 1 : i32
    %479 = arith.muli %c52_i32, %c1_i32_270 : i32
    %480 = arith.index_cast %479 : i32 to index
    %c0_271 = arith.constant 0 : index
    %481 = vector.load %arg7[%480, %c0_271] : memref<64x128xf32, #tpu.memory_space<vmem>>, vector<1x128xf32>
    %482 = arith.truncf %481 : vector<1x128xf32> to vector<1x128xbf16>
    %483 = arith.index_cast %c52_i32 : i32 to index
    %c0_272 = arith.constant 0 : index
    %c0_273 = arith.constant 0 : index
    %484 = vector.load %arg3[%483, %c0_272, %c0_273] : memref<64x128x128xbf16, #tpu.memory_space<vmem>>, vector<1x128x128xbf16>
    %485 = vector.shape_cast %484 : vector<1x128x128xbf16> to vector<128x128xbf16>
    %cst_274 = arith.constant dense<0.000000e+00> : vector<1x128xf32>
    %486 = tpu.matmul %482, %485, %cst_274 {dimension_numbers = #tpu.dot_dimension_numbers<[1], [0], [0], [1], [0, 0, 1, 1], [], []>} : vector<1x128xbf16>, vector<128x128xbf16>, vector<1x128xf32> -> vector<1x128xf32>
    %487 = arith.addf %478, %486 : vector<1x128xf32>
    %c53_i32 = arith.constant 53 : i32
    %c1_i32_275 = arith.constant 1 : i32
    %488 = arith.muli %c53_i32, %c1_i32_275 : i32
    %489 = arith.index_cast %488 : i32 to index
    %c0_276 = arith.constant 0 : index
    %490 = vector.load %arg7[%489, %c0_276] : memref<64x128xf32, #tpu.memory_space<vmem>>, vector<1x128xf32>
    %491 = arith.truncf %490 : vector<1x128xf32> to vector<1x128xbf16>
    %492 = arith.index_cast %c53_i32 : i32 to index
    %c0_277 = arith.constant 0 : index
    %c0_278 = arith.constant 0 : index
    %493 = vector.load %arg3[%492, %c0_277, %c0_278] : memref<64x128x128xbf16, #tpu.memory_space<vmem>>, vector<1x128x128xbf16>
    %494 = vector.shape_cast %493 : vector<1x128x128xbf16> to vector<128x128xbf16>
    %cst_279 = arith.constant dense<0.000000e+00> : vector<1x128xf32>
    %495 = tpu.matmul %491, %494, %cst_279 {dimension_numbers = #tpu.dot_dimension_numbers<[1], [0], [0], [1], [0, 0, 1, 1], [], []>} : vector<1x128xbf16>, vector<128x128xbf16>, vector<1x128xf32> -> vector<1x128xf32>
    %496 = arith.addf %487, %495 : vector<1x128xf32>
    %c54_i32 = arith.constant 54 : i32
    %c1_i32_280 = arith.constant 1 : i32
    %497 = arith.muli %c54_i32, %c1_i32_280 : i32
    %498 = arith.index_cast %497 : i32 to index
    %c0_281 = arith.constant 0 : index
    %499 = vector.load %arg7[%498, %c0_281] : memref<64x128xf32, #tpu.memory_space<vmem>>, vector<1x128xf32>
    %500 = arith.truncf %499 : vector<1x128xf32> to vector<1x128xbf16>
    %501 = arith.index_cast %c54_i32 : i32 to index
    %c0_282 = arith.constant 0 : index
    %c0_283 = arith.constant 0 : index
    %502 = vector.load %arg3[%501, %c0_282, %c0_283] : memref<64x128x128xbf16, #tpu.memory_space<vmem>>, vector<1x128x128xbf16>
    %503 = vector.shape_cast %502 : vector<1x128x128xbf16> to vector<128x128xbf16>
    %cst_284 = arith.constant dense<0.000000e+00> : vector<1x128xf32>
    %504 = tpu.matmul %500, %503, %cst_284 {dimension_numbers = #tpu.dot_dimension_numbers<[1], [0], [0], [1], [0, 0, 1, 1], [], []>} : vector<1x128xbf16>, vector<128x128xbf16>, vector<1x128xf32> -> vector<1x128xf32>
    %505 = arith.addf %496, %504 : vector<1x128xf32>
    %c55_i32 = arith.constant 55 : i32
    %c1_i32_285 = arith.constant 1 : i32
    %506 = arith.muli %c55_i32, %c1_i32_285 : i32
    %507 = arith.index_cast %506 : i32 to index
    %c0_286 = arith.constant 0 : index
    %508 = vector.load %arg7[%507, %c0_286] : memref<64x128xf32, #tpu.memory_space<vmem>>, vector<1x128xf32>
    %509 = arith.truncf %508 : vector<1x128xf32> to vector<1x128xbf16>
    %510 = arith.index_cast %c55_i32 : i32 to index
    %c0_287 = arith.constant 0 : index
    %c0_288 = arith.constant 0 : index
    %511 = vector.load %arg3[%510, %c0_287, %c0_288] : memref<64x128x128xbf16, #tpu.memory_space<vmem>>, vector<1x128x128xbf16>
    %512 = vector.shape_cast %511 : vector<1x128x128xbf16> to vector<128x128xbf16>
    %cst_289 = arith.constant dense<0.000000e+00> : vector<1x128xf32>
    %513 = tpu.matmul %509, %512, %cst_289 {dimension_numbers = #tpu.dot_dimension_numbers<[1], [0], [0], [1], [0, 0, 1, 1], [], []>} : vector<1x128xbf16>, vector<128x128xbf16>, vector<1x128xf32> -> vector<1x128xf32>
    %514 = arith.addf %505, %513 : vector<1x128xf32>
    %c56_i32 = arith.constant 56 : i32
    %c1_i32_290 = arith.constant 1 : i32
    %515 = arith.muli %c56_i32, %c1_i32_290 : i32
    %516 = arith.index_cast %515 : i32 to index
    %c0_291 = arith.constant 0 : index
    %517 = vector.load %arg7[%516, %c0_291] : memref<64x128xf32, #tpu.memory_space<vmem>>, vector<1x128xf32>
    %518 = arith.truncf %517 : vector<1x128xf32> to vector<1x128xbf16>
    %519 = arith.index_cast %c56_i32 : i32 to index
    %c0_292 = arith.constant 0 : index
    %c0_293 = arith.constant 0 : index
    %520 = vector.load %arg3[%519, %c0_292, %c0_293] : memref<64x128x128xbf16, #tpu.memory_space<vmem>>, vector<1x128x128xbf16>
    %521 = vector.shape_cast %520 : vector<1x128x128xbf16> to vector<128x128xbf16>
    %cst_294 = arith.constant dense<0.000000e+00> : vector<1x128xf32>
    %522 = tpu.matmul %518, %521, %cst_294 {dimension_numbers = #tpu.dot_dimension_numbers<[1], [0], [0], [1], [0, 0, 1, 1], [], []>} : vector<1x128xbf16>, vector<128x128xbf16>, vector<1x128xf32> -> vector<1x128xf32>
    %523 = arith.addf %514, %522 : vector<1x128xf32>
    %c57_i32 = arith.constant 57 : i32
    %c1_i32_295 = arith.constant 1 : i32
    %524 = arith.muli %c57_i32, %c1_i32_295 : i32
    %525 = arith.index_cast %524 : i32 to index
    %c0_296 = arith.constant 0 : index
    %526 = vector.load %arg7[%525, %c0_296] : memref<64x128xf32, #tpu.memory_space<vmem>>, vector<1x128xf32>
    %527 = arith.truncf %526 : vector<1x128xf32> to vector<1x128xbf16>
    %528 = arith.index_cast %c57_i32 : i32 to index
    %c0_297 = arith.constant 0 : index
    %c0_298 = arith.constant 0 : index
    %529 = vector.load %arg3[%528, %c0_297, %c0_298] : memref<64x128x128xbf16, #tpu.memory_space<vmem>>, vector<1x128x128xbf16>
    %530 = vector.shape_cast %529 : vector<1x128x128xbf16> to vector<128x128xbf16>
    %cst_299 = arith.constant dense<0.000000e+00> : vector<1x128xf32>
    %531 = tpu.matmul %527, %530, %cst_299 {dimension_numbers = #tpu.dot_dimension_numbers<[1], [0], [0], [1], [0, 0, 1, 1], [], []>} : vector<1x128xbf16>, vector<128x128xbf16>, vector<1x128xf32> -> vector<1x128xf32>
    %532 = arith.addf %523, %531 : vector<1x128xf32>
    %c58_i32 = arith.constant 58 : i32
    %c1_i32_300 = arith.constant 1 : i32
    %533 = arith.muli %c58_i32, %c1_i32_300 : i32
    %534 = arith.index_cast %533 : i32 to index
    %c0_301 = arith.constant 0 : index
    %535 = vector.load %arg7[%534, %c0_301] : memref<64x128xf32, #tpu.memory_space<vmem>>, vector<1x128xf32>
    %536 = arith.truncf %535 : vector<1x128xf32> to vector<1x128xbf16>
    %537 = arith.index_cast %c58_i32 : i32 to index
    %c0_302 = arith.constant 0 : index
    %c0_303 = arith.constant 0 : index
    %538 = vector.load %arg3[%537, %c0_302, %c0_303] : memref<64x128x128xbf16, #tpu.memory_space<vmem>>, vector<1x128x128xbf16>
    %539 = vector.shape_cast %538 : vector<1x128x128xbf16> to vector<128x128xbf16>
    %cst_304 = arith.constant dense<0.000000e+00> : vector<1x128xf32>
    %540 = tpu.matmul %536, %539, %cst_304 {dimension_numbers = #tpu.dot_dimension_numbers<[1], [0], [0], [1], [0, 0, 1, 1], [], []>} : vector<1x128xbf16>, vector<128x128xbf16>, vector<1x128xf32> -> vector<1x128xf32>
    %541 = arith.addf %532, %540 : vector<1x128xf32>
    %c59_i32 = arith.constant 59 : i32
    %c1_i32_305 = arith.constant 1 : i32
    %542 = arith.muli %c59_i32, %c1_i32_305 : i32
    %543 = arith.index_cast %542 : i32 to index
    %c0_306 = arith.constant 0 : index
    %544 = vector.load %arg7[%543, %c0_306] : memref<64x128xf32, #tpu.memory_space<vmem>>, vector<1x128xf32>
    %545 = arith.truncf %544 : vector<1x128xf32> to vector<1x128xbf16>
    %546 = arith.index_cast %c59_i32 : i32 to index
    %c0_307 = arith.constant 0 : index
    %c0_308 = arith.constant 0 : index
    %547 = vector.load %arg3[%546, %c0_307, %c0_308] : memref<64x128x128xbf16, #tpu.memory_space<vmem>>, vector<1x128x128xbf16>
    %548 = vector.shape_cast %547 : vector<1x128x128xbf16> to vector<128x128xbf16>
    %cst_309 = arith.constant dense<0.000000e+00> : vector<1x128xf32>
    %549 = tpu.matmul %545, %548, %cst_309 {dimension_numbers = #tpu.dot_dimension_numbers<[1], [0], [0], [1], [0, 0, 1, 1], [], []>} : vector<1x128xbf16>, vector<128x128xbf16>, vector<1x128xf32> -> vector<1x128xf32>
    %550 = arith.addf %541, %549 : vector<1x128xf32>
    %c60_i32 = arith.constant 60 : i32
    %c1_i32_310 = arith.constant 1 : i32
    %551 = arith.muli %c60_i32, %c1_i32_310 : i32
    %552 = arith.index_cast %551 : i32 to index
    %c0_311 = arith.constant 0 : index
    %553 = vector.load %arg7[%552, %c0_311] : memref<64x128xf32, #tpu.memory_space<vmem>>, vector<1x128xf32>
    %554 = arith.truncf %553 : vector<1x128xf32> to vector<1x128xbf16>
    %555 = arith.index_cast %c60_i32 : i32 to index
    %c0_312 = arith.constant 0 : index
    %c0_313 = arith.constant 0 : index
    %556 = vector.load %arg3[%555, %c0_312, %c0_313] : memref<64x128x128xbf16, #tpu.memory_space<vmem>>, vector<1x128x128xbf16>
    %557 = vector.shape_cast %556 : vector<1x128x128xbf16> to vector<128x128xbf16>
    %cst_314 = arith.constant dense<0.000000e+00> : vector<1x128xf32>
    %558 = tpu.matmul %554, %557, %cst_314 {dimension_numbers = #tpu.dot_dimension_numbers<[1], [0], [0], [1], [0, 0, 1, 1], [], []>} : vector<1x128xbf16>, vector<128x128xbf16>, vector<1x128xf32> -> vector<1x128xf32>
    %559 = arith.addf %550, %558 : vector<1x128xf32>
    %c61_i32 = arith.constant 61 : i32
    %c1_i32_315 = arith.constant 1 : i32
    %560 = arith.muli %c61_i32, %c1_i32_315 : i32
    %561 = arith.index_cast %560 : i32 to index
    %c0_316 = arith.constant 0 : index
    %562 = vector.load %arg7[%561, %c0_316] : memref<64x128xf32, #tpu.memory_space<vmem>>, vector<1x128xf32>
    %563 = arith.truncf %562 : vector<1x128xf32> to vector<1x128xbf16>
    %564 = arith.index_cast %c61_i32 : i32 to index
    %c0_317 = arith.constant 0 : index
    %c0_318 = arith.constant 0 : index
    %565 = vector.load %arg3[%564, %c0_317, %c0_318] : memref<64x128x128xbf16, #tpu.memory_space<vmem>>, vector<1x128x128xbf16>
    %566 = vector.shape_cast %565 : vector<1x128x128xbf16> to vector<128x128xbf16>
    %cst_319 = arith.constant dense<0.000000e+00> : vector<1x128xf32>
    %567 = tpu.matmul %563, %566, %cst_319 {dimension_numbers = #tpu.dot_dimension_numbers<[1], [0], [0], [1], [0, 0, 1, 1], [], []>} : vector<1x128xbf16>, vector<128x128xbf16>, vector<1x128xf32> -> vector<1x128xf32>
    %568 = arith.addf %559, %567 : vector<1x128xf32>
    %c62_i32 = arith.constant 62 : i32
    %c1_i32_320 = arith.constant 1 : i32
    %569 = arith.muli %c62_i32, %c1_i32_320 : i32
    %570 = arith.index_cast %569 : i32 to index
    %c0_321 = arith.constant 0 : index
    %571 = vector.load %arg7[%570, %c0_321] : memref<64x128xf32, #tpu.memory_space<vmem>>, vector<1x128xf32>
    %572 = arith.truncf %571 : vector<1x128xf32> to vector<1x128xbf16>
    %573 = arith.index_cast %c62_i32 : i32 to index
    %c0_322 = arith.constant 0 : index
    %c0_323 = arith.constant 0 : index
    %574 = vector.load %arg3[%573, %c0_322, %c0_323] : memref<64x128x128xbf16, #tpu.memory_space<vmem>>, vector<1x128x128xbf16>
    %575 = vector.shape_cast %574 : vector<1x128x128xbf16> to vector<128x128xbf16>
    %cst_324 = arith.constant dense<0.000000e+00> : vector<1x128xf32>
    %576 = tpu.matmul %572, %575, %cst_324 {dimension_numbers = #tpu.dot_dimension_numbers<[1], [0], [0], [1], [0, 0, 1, 1], [], []>} : vector<1x128xbf16>, vector<128x128xbf16>, vector<1x128xf32> -> vector<1x128xf32>
    %577 = arith.addf %568, %576 : vector<1x128xf32>
    %c63_i32 = arith.constant 63 : i32
    %c1_i32_325 = arith.constant 1 : i32
    %578 = arith.muli %c63_i32, %c1_i32_325 : i32
    %579 = arith.index_cast %578 : i32 to index
    %c0_326 = arith.constant 0 : index
    %580 = vector.load %arg7[%579, %c0_326] : memref<64x128xf32, #tpu.memory_space<vmem>>, vector<1x128xf32>
    %581 = arith.truncf %580 : vector<1x128xf32> to vector<1x128xbf16>
    %582 = arith.index_cast %c63_i32 : i32 to index
    %c0_327 = arith.constant 0 : index
    %c0_328 = arith.constant 0 : index
    %583 = vector.load %arg3[%582, %c0_327, %c0_328] : memref<64x128x128xbf16, #tpu.memory_space<vmem>>, vector<1x128x128xbf16>
    %584 = vector.shape_cast %583 : vector<1x128x128xbf16> to vector<128x128xbf16>
    %cst_329 = arith.constant dense<0.000000e+00> : vector<1x128xf32>
    %585 = tpu.matmul %581, %584, %cst_329 {dimension_numbers = #tpu.dot_dimension_numbers<[1], [0], [0], [1], [0, 0, 1, 1], [], []>} : vector<1x128xbf16>, vector<128x128xbf16>, vector<1x128xf32> -> vector<1x128xf32>
    %586 = arith.addf %577, %585 : vector<1x128xf32>
    %c64_i32 = arith.constant 64 : i32
    %c1 = arith.constant 1 : index
    %c0_330 = arith.constant 0 : index
    %587 = vector.load %arg5[%c1, %c0_330] : memref<3x128xf32, #tpu.memory_space<vmem>>, vector<1x128xf32>
    %588 = arith.addf %586, %587 : vector<1x128xf32>
    %cst_331 = arith.constant 0.000000e+00 : f32
    %589 = vector.broadcast %cst_331 : f32 to vector<1x128xf32>
    %590 = arith.maximumf %588, %589 : vector<1x128xf32>
    %591 = arith.truncf %590 : vector<1x128xf32> to vector<1x128xbf16>
    %c0_332 = arith.constant 0 : index
    %c0_333 = arith.constant 0 : index
    %592 = vector.load %arg4[%c0_332, %c0_333] : memref<128x128xbf16, #tpu.memory_space<vmem>>, vector<128x128xbf16>
    %cst_334 = arith.constant dense<0.000000e+00> : vector<1x128xf32>
    %593 = tpu.matmul %591, %592, %cst_334 {dimension_numbers = #tpu.dot_dimension_numbers<[1], [0], [0], [1], [0, 0, 1, 1], [], []>} : vector<1x128xbf16>, vector<128x128xbf16>, vector<1x128xf32> -> vector<1x128xf32>
    %c2 = arith.constant 2 : index
    %c0_335 = arith.constant 0 : index
    %594 = vector.load %arg5[%c2, %c0_335] : memref<3x128xf32, #tpu.memory_space<vmem>>, vector<1x128xf32>
    %595 = arith.addf %593, %594 : vector<1x128xf32>
    %c0_336 = arith.constant 0 : index
    %c0_337 = arith.constant 0 : index
    %c0_338 = arith.constant 0 : index
    %596 = vector.load %arg6[%c0_336, %c0_337, %c0_338] : memref<1x1x128xf32, #tpu.memory_space<vmem>>, vector<1x1x128xf32>
    %597 = vector.shape_cast %596 : vector<1x1x128xf32> to vector<1x128xf32>
    %598 = vector.shape_cast %595 : vector<1x128xf32> to vector<1x1x128xf32>
    tpu.vector_store %arg6[%c0_336, %c0_337, %c0_338], %598 {strides = array<i32>} : memref<1x1x128xf32, #tpu.memory_space<vmem>>, vector<1x1x128xf32>,
    return
  }
  func.func @transform_0(%arg0: i32) -> (i32, i32, i32) {
    %c0_i32 = arith.constant 0 : i32
    %c0_i32_0 = arith.constant 0 : i32
    %c0_i32_1 = arith.constant 0 : i32
    return %arg0, %c0_i32, %c0_i32_0 : i32, i32, i32
  }
  func.func @transform_1(%arg0: i32) -> (i32, i32) {
    %c0_i32 = arith.constant 0 : i32
    %c0_i32_0 = arith.constant 0 : i32
    %c0_i32_1 = arith.constant 0 : i32
    return %c0_i32, %c0_i32_0 : i32, i32
  }
  func.func @transform_2(%arg0: i32) -> (i32, i32, i32) {
    %c0_i32 = arith.constant 0 : i32
    %c0_i32_0 = arith.constant 0 : i32
    %c0_i32_1 = arith.constant 0 : i32
    %c0_i32_2 = arith.constant 0 : i32
    return %c0_i32, %c0_i32_0, %c0_i32_1 : i32, i32, i32
  }
  func.func @transform_3(%arg0: i32) -> (i32, i32) {
    %c0_i32 = arith.constant 0 : i32
    %c0_i32_0 = arith.constant 0 : i32
    %c0_i32_1 = arith.constant 0 : i32
    return %c0_i32, %c0_i32_0 : i32, i32
  }
  func.func @transform_4(%arg0: i32) -> (i32, i32) {
    %c0_i32 = arith.constant 0 : i32
    %c0_i32_0 = arith.constant 0 : i32
    %c0_i32_1 = arith.constant 0 : i32
    return %c0_i32, %c0_i32_0 : i32, i32
  }
  func.func @transform_5(%arg0: i32) -> (i32, i32, i32) {
    %c0_i32 = arith.constant 0 : i32
    %c0_i32_0 = arith.constant 0 : i32
    %c0_i32_1 = arith.constant 0 : i32
    return %arg0, %c0_i32, %c0_i32_0 : i32, i32, i32
  }
}

</mosaic_0001>

<bundles_post_ra>
// kernel: tpu_custom_call.1
= control target key start
LH: loop header
LB: loop body
LE: loop exit
PB: predicated region body
PF: predicated region fallthrough
CT: control target
= control target key end

     0   :  { %10 = vsyncpa [#allocation4], 0  ;;  %s11908_s0 = inlined_call_operand.hbm [shape: bf16[2,64,72], index: 0, kind: input, shape index: {}]   ;;  %s11909_s1 = inlined_call_operand.hbm [shape: bf16[72,128], index: 1, kind: input, shape index: {}]   ;;  %s11910_s2 = inlined_call_operand.hbm [shape: bf16[64,128,128], index: 2, kind: input, shape index: {}]   ;;  %s11911_s3 = inlined_call_operand.hbm [shape: bf16[128,128], index: 3, kind: input, shape index: {}]   ;;  %s11912_s4 = inlined_call_operand.hbm [shape: f32[3,128], index: 4, kind: input, shape index: {}]   ;;  %s11913_s5 = inlined_call_operand.hbm [shape: f32[2,1,128], index: 5, kind: output, shape index: {}]  }
   0x1   :  { %12 = vsyncpa [#allocation4 + $0x1], 0 }
   0x2   :  { %13 = vsyncpa [#allocation7], 0 }
   0x3   :  { %14 = vsyncpa [#allocation10], 0 }
   0x4   :  { %15 = vsyncpa [#allocation5], 0 }
   0x5   :  { %17 = vsyncpa [#allocation5 + $0x1], 0  ;;  %s10947_s18 = smov 0   ;;  %s10949_s19 = smov 0  }
   0x6   :  { %s10951_s20 = smov 0   ;;  %s10953_s21 = smov 0  }
   0x7 LB: > { %s10968_s22 = sadd.s32 4294967295, %s10905_s21   ;;  %s7602_s23 = sadd.s32 4294967294, %s10905_s21   ;;  %s10905_s21 = sphi %s10953_s21, %s11936_s21   ;;  %s10901_s20 = sphi %s10951_s20, %s11935_s20   ;;  %s10897_s19 = sphi %s10949_s19, %s11934_s19   ;;  %s10893_s18 = sphi %s10947_s18, %s11933_s18  }
   0x8   : > { %p43_p0 = scmp.ne.s32.totalorder %s10897_s19, %s10893_s18  ;;  %p11914_p1 = scmp.eq.s32.totalorder %s10968_s22, 0 }
   0x9   : > { %p157_p3 = scmp.eq.s32.totalorder %s7602_s23, 1  ;;  %p7603_p5 = scmp.ge.s32.totalorder %s10905_s21, 1 }
   0xa   : > { %p10977_p4 = por %p11914_p1, %p43_p0  ;;  %p164_p7 = scmp.lt.s32.totalorder %s10905_s21, 3 }
   0xb   : > { %p10982_p6 = por %p157_p3, %p43_p0  ;;  %s10907_s27 = smov [#allocation6]  }
   0xc   : > { %s11917_s24 = scalar_select %p10977_p4, 1, 0 }
   0xd   : > { %s11918_s25 = scalar_select %p10982_p6, 1, 0 }
   0xe   : > { %p10987_p8 = pnand %p7603_p5, %p164_p7  ;;  %s176_s28 = sshll.u32 %s10907_s27, 4  ;;  %s10991_s28 = int_to_ptr.vmem [resolvable:$true] %s176_s28 }
   0xf   : > { %s10908_s30 = smov [#allocation9]   ;;  %s10909_s7 = smov [#allocation8]  }
  0x10   : > { %s11919_s26 = scalar_select %p10987_p8, 1, 0 }
  0x11   : > { %p10089_p9 = pneg %p10987_p8  ;;  %s202_s6 = sshll.u32 %s10908_s30, 4  ;;  %s11002_s6 = int_to_ptr.vmem [resolvable:$true] %s202_s6 }
  0x12   : > { %s11004_s8 = sshll.u32 %s10909_s7, 4  ;;  %s10689_s11 = scalar_lea.hbm %s11909_s1, 576  ;;  %s190_s8 = int_to_ptr.vmem [resolvable:$true] %s11004_s8 }
  0x13   : > { %p10998_p11 = pnand %p10089_p9, %p11914_p1  ;;  %p10690_p12 = scmp.ne.s32.totalorder %s11909_s1, %s10689_s11 }
  0x14   : > { %p10696_p5 = scmp.lt.u32.totalorder %s10689_s11, %s11909_s1 }
  0x15   : > { %p11014_p13 = pneg %p10998_p11 }
  0x17   : > { %p10692_p0 = pnand %p11014_p13, %p10690_p12 }
  0x19   : > { %p10693_p3 = pneg %p10692_p0 }
  0x1b   : > { %p10698_p7 = pnand %p10696_p5, %p10693_p3 }
  0x1d   : > { %10701 = shalt.err (!%p10698_p7)
}
  0x1e   : > { %s10702_s17 = scalar_lea.vmem %s10991_s28, 576  ;;  %p10710_p2 = scmp.lt.s32.totalorder %s10991_s28, %s10991_s28 }
  0x1f   : > { %p10703_p9 = scmp.ne.s32.totalorder %s10991_s28, %s10702_s17  ;;  %p10711_p6 = scmp.lt.s32.totalorder %s10702_s17, %s10702_s17 }
  0x21   : > { %p10705_p10 = pnand %p10703_p9, %p11014_p13  ;;  %p10712_p12 = por %p10711_p6, %p10710_p2 }
  0x23   : > { %p10706_p1 = pneg %p10705_p10 }
  0x25   : > { %p10713_p0 = pnand %p10712_p12, %p10706_p1 }
  0x27   : > { %10716 = shalt.err (!%p10713_p0)
}
  0x28   : > { %s10910_s23 = smov 64   ;;  %s10911_s27 = smov 4  }
  0x29   : > { %10092 = dma.hbm_to_vmem [thread:$0]  (!%p10998_p11), %s11909_s1, 576, %s10991_s28, [#allocation7], %s10910_s23, %s10910_s23, %s10911_s27  }
  0x2a   : > { %s10717_s11 = scalar_lea.hbm %s11911_s3, 1024 }
  0x2b   : > { %p10718_p1 = scmp.ne.s32.totalorder %s11911_s3, %s10717_s11  ;;  %p10724_p10 = scmp.lt.u32.totalorder %s10717_s11, %s11911_s3 }
  0x2d   : > { %p10720_p2 = pnand %p10718_p1, %p11014_p13 }
  0x2f   : > { %p10721_p6 = pneg %p10720_p2 }
  0x31   : > { %p10726_p3 = pnand %p10724_p10, %p10721_p6 }
  0x33   : > { %10729 = shalt.err (!%p10726_p3)
}
  0x34   : > { %s10730_s28 = scalar_lea.vmem %s11002_s6, 1024  ;;  %p10738_p12 = scmp.lt.s32.totalorder %s11002_s6, %s11002_s6 }
  0x35   : > { %p10731_p5 = scmp.ne.s32.totalorder %s11002_s6, %s10730_s28  ;;  %p10739_p0 = scmp.lt.s32.totalorder %s10730_s28, %s10730_s28 }
  0x37   : > { %p10733_p7 = pnand %p10731_p5, %p11014_p13  ;;  %p10740_p1 = por %p10739_p0, %p10738_p12 }
  0x39   : > { %p10734_p9 = pneg %p10733_p7 }
  0x3b   : > { %p10741_p2 = pnand %p10740_p1, %p10734_p9 }
  0x3d   : > { %10744 = shalt.err (!%p10741_p2)
}
  0x3e   : > { %10098 = dma.hbm_to_vmem [thread:$0]  (!%p10998_p11), %s11911_s3, 1024, %s11002_s6, [#allocation10], %s10910_s23, %s10910_s23, %s10911_s27  }
  0x3f   : > { %s10745_s10 = scalar_lea.hbm %s11910_s2, 65536 }
  0x40   : > { %p10746_p6 = scmp.ne.s32.totalorder %s11910_s2, %s10745_s10  ;;  %p10752_p5 = scmp.lt.u32.totalorder %s10745_s10, %s11910_s2 }
  0x42   : > { %p10748_p10 = pnand %p10746_p6, %p11014_p13 }
  0x44   : > { %p10749_p3 = pneg %p10748_p10 }
  0x46   : > { %p10754_p7 = pnand %p10752_p5, %p10749_p3 }
  0x48   : > { %10757 = shalt.err (!%p10754_p7)
}
  0x49   : > { %s10758_s16 = scalar_lea.vmem %s190_s8, 65536  ;;  %p10766_p1 = scmp.lt.s32.totalorder %s190_s8, %s190_s8 }
  0x4a   : > { %p10759_p9 = scmp.ne.s32.totalorder %s190_s8, %s10758_s16  ;;  %p10767_p2 = scmp.lt.s32.totalorder %s10758_s16, %s10758_s16 }
  0x4c   : > { %p10761_p12 = pnand %p10759_p9, %p11014_p13  ;;  %p10768_p4 = por %p10767_p2, %p10766_p1 }
  0x4e   : > { %p10762_p0 = pneg %p10761_p12 }
  0x50   : > { %p10769_p8 = pnand %p10768_p4, %p10762_p0 }
  0x52   : > { %10772 = shalt.err (!%p10769_p8)
}
  0x53   : > { %10095 = dma.hbm_to_vmem [thread:$0]  (!%p10998_p11), %s11910_s2, 65536, %s190_s8, [#allocation7], %s10910_s23, %s10910_s23, %s10911_s27  }
  0x54   : > { %s10912_s17 = smov [#allocation11]   ;;  %s10773_s10 = scalar_lea.hbm %s11912_s4, 64 }
  0x55   : > { %s216_s30 = sshll.u32 %s10912_s17, 4  ;;  %p10774_p4 = scmp.ne.s32.totalorder %s11912_s4, %s10773_s10  ;;  %s217_s30 = int_to_ptr.vmem [resolvable:$true] %s216_s30 }
  0x56   : > { %p10780_p10 = scmp.lt.u32.totalorder %s10773_s10, %s11912_s4 }
  0x57   : > { %p10776_p8 = pnand %p10774_p4, %p11014_p13 }
  0x59   : > { %p10777_p6 = pneg %p10776_p8 }
  0x5b   : > { %p10782_p3 = pnand %p10780_p10, %p10777_p6 }
  0x5d   : > { %10785 = shalt.err (!%p10782_p3)
}
  0x5e   : > { %s10786_s8 = scalar_lea.vmem %s217_s30, 64  ;;  %p10794_p12 = scmp.lt.s32.totalorder %s217_s30, %s217_s30 }
  0x5f   : > { %p10787_p5 = scmp.ne.s32.totalorder %s217_s30, %s10786_s8  ;;  %p10795_p0 = scmp.lt.s32.totalorder %s10786_s8, %s10786_s8 }
  0x61   : > { %p10789_p7 = pnand %p10787_p5, %p11014_p13  ;;  %p10796_p1 = por %p10795_p0, %p10794_p12 }
  0x63   : > { %p10790_p9 = pneg %p10789_p7 }
  0x65   : > { %p10797_p2 = pnand %p10796_p1, %p10790_p9 }
  0x67   : > { %10800 = shalt.err (!%p10797_p2)
}
  0x68   : > { %10101 = dma.hbm_to_vmem [thread:$0]  (!%p10998_p11), %s11912_s4, 64, %s217_s30, [#allocation10]  }
  0x69   : > { %s11105_s14 = sadd.s32 1, %s10905_s21   ;;  %s30_s28 = sadd.s32 1, %s10901_s20 }
  0x6a   : > { %s27_s29 = ssub.s32 %s10905_s21, %s11105_s14  ;;  %p37_p13 = scmp.ne.s32.totalorder %s10901_s20, %s10897_s19 }
  0x6b   : > { %p28_p4 = scmp.eq.s32.totalorder %s27_s29, 0  ;;  %p38_p8 = scmp.eq.s32.totalorder %s10905_s21, 0 }
  0x6c   : > { %p11922_p6 = scmp.eq.s32.totalorder %s10968_s22, 1  ;;  %p10114_p3 = scmp.lt.s32.totalorder %s10905_s21, 2 }
  0x6d   : > { %s11121_s7 = scalar_select %p28_p4, %s10901_s20, %s30_s28  }
  0x6e   : > { %p11115_p10 = por %p11922_p6, %p37_p13  ;;  %p39_p5 = por %p38_p8, %p37_p13 }
  0x6f   : > { %s227_s9 = sand.u32 1, %s10901_s20   ;;  %s8155_s30 = sshll.u32 %s10905_s21, 9 }
  0x70   : > { %s7609_s10 = sshll.u32 %s227_s9, 5  ;;  %s11128_s13 = scalar_lea.hbm %s11908_s0, %s8155_s30 }
  0x71   : > { %s231_s15 = scalar_lea.vmem [#allocation3], %s7609_s10  ;;  %p11132_p11 = pnand %p10114_p3, %p39_p5 }
  0x72   : > { %s238_s8 = sshll.u32 %s231_s15, 4  ;;  %s11136_s6 = scalar_lea.sflag [#allocation4], %s227_s9  ;;  %s11130_s8 = int_to_ptr.vmem [resolvable:$true] %s238_s8 }
  0x73   : > { %s10801_s28 = scalar_lea.hbm %s11128_s13, 512  ;;  %p10803_p9 = pneg %p11132_p11 }
  0x74   : > { %p10802_p7 = scmp.ne.s32.totalorder %s11128_s13, %s10801_s28  ;;  %s10806_s30 = scalar_lea.hbm %s11908_s0, 1024 }
  0x75   : > { %p10807_p1 = scmp.lt.u32.totalorder %s11128_s13, %s11908_s0  ;;  %p10808_p2 = scmp.lt.u32.totalorder %s10806_s30, %s10801_s28 }
  0x76   : > { %p10804_p12 = pnand %p10803_p9, %p10802_p7  ;;  %p10810_p4 = scmp.lt.u32.totalorder %s10801_s28, %s11128_s13 }
  0x77   : > { %p10809_p13 = por %p10808_p2, %p10807_p1 }
  0x78   : > { %p10805_p0 = pneg %p10804_p12 }
  0x79   : > { %p10811_p8 = por %p10810_p4, %p10809_p13 }
  0x7b   : > { %p10812_p6 = pnand %p10811_p8, %p10805_p0 }
  0x7d   : > { %10815 = shalt.err (!%p10812_p6)
}
  0x7e   : > { %s10816_s9 = scalar_lea.vmem %s11130_s8, 512  ;;  %s10913_s15 = smov [#allocation3]  }
  0x7f   : > { %p10817_p3 = scmp.ne.s32.totalorder %s11130_s8, %s10816_s9  ;;  %s10821_s29 = sshll.u32 %s10913_s15, 4  ;;  %s10822_s29 = int_to_ptr.vmem [resolvable:$false] %s10821_s29 }
  0x80   : > { %s10823_s10 = scalar_lea.vmem %s10822_s29, 1024  ;;  %p10824_p12 = scmp.lt.s32.totalorder %s11130_s8, %s10822_s29 }
  0x81   : > { %p10819_p5 = pnand %p10817_p3, %p10803_p9  ;;  %p10825_p1 = scmp.lt.s32.totalorder %s10823_s10, %s10816_s9 }
  0x83   : > { %p10820_p7 = pneg %p10819_p5  ;;  %p10826_p2 = por %p10825_p1, %p10824_p12 }
  0x85   : > { %p10827_p13 = pnand %p10826_p2, %p10820_p7 }
  0x87   : > { %10830 = shalt.err (!%p10827_p13)
}
  0x88   : > { %10105 = dma.hbm_to_vmem [thread:$0]  (!%p11132_p11), %s11128_s13, 512, %s11130_s8, %s11136_s6, %s10910_s23, %s10910_s23, %s10911_s27  }
  0x89   : > { %p11925_p9 = scmp.ne.s32.totalorder %s11919_s26, 0 }
  0x8a   : > { %s11170_s28 = sand.u32 (!%p11925_p9), 1, %s10897_s19   ;;  %p11926_p0 = scmp.ne.s32.totalorder (!%p11925_p9), %s11917_s24, 0 }
  0x8b   : > { %250 = sbr.rel (%p11925_p9) target bundleno = 1844 (0x734), region = 40  ;;  %s7613_s30 = sshll.u32 (!%p11925_p9), %s11170_s28, 5 }
  0x8c   : > { %s253_s11 = scalar_lea.sflag (!%p11925_p9), [#allocation4], %s11170_s28  ;;  %s11174_s12 = scalar_lea.vmem (!%p11925_p9), [#allocation3], %s7613_s30 }
  0x92   : > { %10876 = dma.done.wait (%p11926_p0), %s253_s11, 512  }
  0x93   : > { %10878 = vsyncadd (%p11926_p0), %s253_s11, 4294966784  ;;  %p11927_p11 = scmp.eq.s32.totalorder %s10968_s22, 0 }
  0x95   : > { %10880 = dma.done.wait (%p11927_p11), [#allocation7], 66112   ;;  %p11928_p4 = pmov %p11927_p11 }
  0x97   : > { %10882 = vsyncadd (%p11928_p4), [#allocation7], 4294901184  ;;  %p11929_p8 = pmov %p11928_p4 }
  0x98   : > { %p11930_p6 = pmov %p11928_p4 }
  0x99   : > { %10884 = dma.done.wait (%p11929_p8), [#allocation10], 1088  }
  0x9a   : > { %10886 = vsyncadd (%p11930_p6), [#allocation10], 4294966208  ;;  %v10914_v0 = vmov 0.0   ;;  %v10160_v1 = vld [vmem:[#allocation6] sm:$0xff]   ;;  %v10161_v2 = vld [vmem:[#allocation6 + $0x8] sm:$0xff]   ;;  %vm368_vm0 = vcmask 588800  }
  0x9b   : > { %8768 = vmatprep.subr.bf16.mxu1 %v10914_v0  ;;  %8750 = vmatprep.subr.bf16.mxu0 %v10160_v1  ;;  %v10162_v3 = vld [vmem:[#allocation6 + $0x10] sm:$0xff]   ;;  %v10165_v4 = vld [vmem:[%s11174_s12] sm:$0xff]   ;;  %v10163_v6 = vld [vmem:[#allocation6 + $0x18] sm:$0xff]   ;;  %vm381_vm1 = vcmask 1043456   ;;  %vm10915_vm2 = vmmov 0   ;;  %s8152_s24 = sshll.u32 %s10968_s22, 4 }
  0x9c   : > { %8751 = vmatpush3.bf16.msra.mxu0 %v10160_v1  ;;  %8760 = vmatprep.mubr.msk.bf16.mxu0 %vm368_vm0, %v10165_v4  ;;  %v10167_v5 = vld [vmem:[#allocation8 + $0x40] sm:$0xff]   ;;  %v10169_v7 = vld [vmem:[#allocation8 + $0x48] sm:$0xff]   ;;  %v10164_v8 = vld [vmem:[#allocation6 + $0x20] ss:$0 sps:$4 sm:$0xff]   ;;  %s297_s26 = scalar_lea.vmem [#allocation12], %s11170_s28  ;;  %s11864_s8 = scalar_lea.hbm %s11913_s5, %s8152_s24 }
  0x9d   : > { %8752 = vmatprep.subr.bf16.mxu0 %v10161_v2  ;;  %8769 = vmatpush3.bf16.msra.mxu1 %v10167_v5  ;;  %v10171_v9 = vld [vmem:[#allocation8 + $0x50] sm:$0xff]   ;;  %v383_v10 = vsel %vm381_vm1, %v10164_v8, 0  ;;  %v10173_v11 = vld [vmem:[#allocation8 + $0x58] sm:$0xff]   ;;  %v10166_v12 = vld [vmem:[%s11174_s12 + $0x8] sm:$0xff]   ;;  %s7498_s23 = sshll.u32 %s297_s26, 4  ;;  %s7486_s16 = scalar_lea.sflag [#allocation5], %s11170_s28  ;;  %s11866_s23 = int_to_ptr.vmem [resolvable:$true] %s7498_s23 }
  0x9e   : > { %8770 = vmatprep.subr.bf16.mxu1 %v10914_v0  ;;  %v10168_v13 = vld [vmem:[#allocation8] sm:$0xff]   ;;  %v10170_v14 = vld [vmem:[#allocation8 + $0x8] sm:$0xff]   ;;  %v10172_v15 = vld [vmem:[#allocation8 + $0x10] sm:$0xff]   ;;  %8784 = vmatprep.mubr.msk.bf16.mxu1 %vm10915_vm2, %v10914_v0  ;;  %s10831_s22 = scalar_lea.vmem %s11866_s23, 16  ;;  %s10916_s6 = smov [#allocation12]  }
  0x9f   : > { %v10174_v16 = vld [vmem:[#allocation8 + $0x18] sm:$0xff]   ;;  %v10175_v17 = vld [vmem:[#allocation8 + $0x60] sm:$0xff]   ;;  %v10177_v19 = vld [vmem:[#allocation8 + $0x68] sm:$0xff]   ;;  %p10832_p3 = scmp.ne.s32.totalorder %s11866_s23, %s10831_s22  ;;  %s10835_s9 = sshll.u32 %s10916_s6, 4  ;;  %s10836_s9 = int_to_ptr.vmem [resolvable:$false] %s10835_s9 }
  0xa0   : > { %8753 = vmatpush3.bf16.msra.mxu0 %v10161_v2  ;;  %v10176_v18 = vld [vmem:[#allocation8 + $0x20] sm:$0xff]   ;;  %v10178_v20 = vld [vmem:[#allocation8 + $0x28] sm:$0xff]   ;;  %v10180_v22 = vld [vmem:[%s11174_s12 + $0x18] sm:$0xff]   ;;  %s10837_s15 = scalar_lea.vmem %s10836_s9, 32  ;;  %p10838_p12 = scmp.lt.s32.totalorder %s11866_s23, %s10836_s9 }
  0xa1   : > { %8754 = vmatprep.subr.bf16.mxu0 %v10162_v3  ;;  %8771 = vmatpush3.bf16.msra.mxu1 %v10169_v7  ;;  %v10179_v21 = vld [vmem:[%s11174_s12 + $0x10] sm:$0xff]   ;;  %v10183_v25 = vld [vmem:[#allocation8 + $0x78] sm:$0xff]   ;;  %v11218_v27 = vld [vmem:[#allocation11] ss:$0 sm:$0xff]  ;;  %p10833_p5 = pnand %p10832_p3, %p11115_p10  ;;  %p10839_p1 = scmp.lt.s32.totalorder %s10837_s15, %s10831_s22 }
  0xa2   : > { %8772 = vmatprep.subr.bf16.mxu1 %v10914_v0  ;;  %v10181_v23 = vld [vmem:[#allocation8 + $0x70] sm:$0xff]   ;;  %v10184_v26 = vld [vmem:[#allocation8 + $0x38] sm:$0xff]   ;;  %v10185_v40 = vld [vmem:[#allocation8 + $0x80] sm:$0xff]  }
  0xa3   : > { %v10182_v24 = vld [vmem:[#allocation8 + $0x30] sm:$0xff]   ;;  %v10186_v43 = vld [vmem:[#allocation8 + $0xc0] sm:$0xff]   ;;  %v10187_v46 = vld [vmem:[#allocation8 + $0x88] sm:$0xff]   ;;  %p10834_p7 = pneg %p10833_p5  ;;  %p10840_p2 = por %p10839_p1, %p10838_p12 }
  0xa4   : > { %8755 = vmatpush3.bf16.msra.mxu0 %v10162_v3  ;;  %v10188_v47 = vld [vmem:[#allocation8 + $0xc8] sm:$0xff]   ;;  %v10189_v48 = vld [vmem:[#allocation8 + $0x90] sm:$0xff]   ;;  %v10191_v50 = vld [vmem:[#allocation8 + $0x98] sm:$0xff]  }
  0xa5   : > { %8756 = vmatprep.subr.bf16.mxu0 %v10163_v6  ;;  %8773 = vmatpush3.bf16.msra.mxu1 %v10171_v9  ;;  %v10190_v49 = vld [vmem:[#allocation8 + $0xd0] sm:$0xff]   ;;  %v10192_v51 = vld [vmem:[#allocation8 + $0xd8] sm:$0xff]   ;;  %v10193_v52 = vld [vmem:[#allocation8 + $0xa0] sm:$0xff]   ;;  %p10841_p13 = pnand %p10840_p2, %p10834_p7 }
  0xa6   : > { %8774 = vmatprep.subr.bf16.mxu1 %v10914_v0  ;;  %v10194_v53 = vld [vmem:[#allocation8 + $0xe0] sm:$0xff]   ;;  %v10195_v54 = vld [vmem:[#allocation8 + $0xa8] sm:$0xff]   ;;  %v10197_v56 = vld [vmem:[#allocation8 + $0xb0] sm:$0xff]  }
  0xa7   : > { %v10196_v55 = vld [vmem:[#allocation8 + $0xe8] sm:$0xff]   ;;  %v10198_v57 = vld [vmem:[#allocation8 + $0xf0] sm:$0xff]   ;;  %v10199_v58 = vld [vmem:[#allocation8 + $0xb8] sm:$0xff]  }
  0xa8   : > { %8757 = vmatpush3.bf16.msra.mxu0 %v10163_v6  ;;  %v10200_v59 = vld [vmem:[#allocation8 + $0xf8] sm:$0xff]   ;;  %v10201_v62 = vld [vmem:[#allocation8 + $0x100] sm:$0xff]   ;;  %v10203_v3 = vld [vmem:[#allocation8 + $0x108] sm:$0xff]  }
  0xa9   : > { %10068 = vmatprep.subr.msk.bf16.mxu0 %vm381_vm1, %v10164_v8  ;;  %8775 = vmatpush3.bf16.msra.mxu1 %v10173_v11  ;;  %v10202_v63 = vld [vmem:[#allocation8 + $0x140] sm:$0xff]   ;;  %v10204_v4 = vld [vmem:[#allocation8 + $0x148] sm:$0xff]   ;;  %v10205_v5 = vld [vmem:[#allocation8 + $0x110] sm:$0xff]  }
  0xaa   : > { %8776 = vmatprep.subr.bf16.mxu1 %v10914_v0  ;;  %v10206_v6 = vld [vmem:[#allocation8 + $0x150] sm:$0xff]   ;;  %v10207_v7 = vld [vmem:[#allocation8 + $0x118] sm:$0xff]   ;;  %v10209_v9 = vld [vmem:[#allocation8 + $0x120] sm:$0xff]  }
  0xab   : > { %v10208_v8 = vld [vmem:[#allocation8 + $0x158] sm:$0xff]   ;;  %v10211_v11 = vld [vmem:[#allocation8 + $0x128] sm:$0xff]  }
  0xac   : > { %8759 = vmatpush3.bf16.msra.mxu0 %v383_v10  ;;  %v10210_v10 = vld [vmem:[#allocation8 + $0x160] sm:$0xff]  }
  0xad   : > { %8788 = vmatprep.subr.bf16.mxu0 %v10914_v0  ;;  %8777 = vmatpush3.bf16.msra.mxu1 %v10175_v17 }
  0xae   : > { %8778 = vmatprep.subr.bf16.mxu1 %v10914_v0 }
  0xaf   : > { %8761 = vmatmul.mubr.msk.bf16.vlgmr.msra.gmra.mrb[0].mxu0 %vm368_vm0, %v10166_v12  ;;  %v10212_v12 = vld [vmem:[#allocation8 + $0x168] sm:$0xff]  }
  0xb0   : > { %8789 = vmatpush3.bf16.msra.mxu0 %v10168_v13  ;;  %8764 = vmatprep.mubr.msk.bf16.mxu0 %vm368_vm0, %v10179_v21  ;;  %v10213_v13 = vld [vmem:[#allocation8 + $0x130] sm:$0xff]  }
  0xb1   : > { %8790 = vmatprep.subr.bf16.mxu0 %v10914_v0  ;;  %8779 = vmatpush3.bf16.msra.mxu1 %v10177_v19  ;;  %v10217_v19 = vld [vmem:[#allocation8 + $0x180] sm:$0xff]  }
  0xb2   : > { %8780 = vmatprep.subr.bf16.mxu1 %v10914_v0 }
  0xb4   : > { %8791 = vmatpush3.bf16.msra.mxu0 %v10170_v14  ;;  %v10214_v14 = vld [vmem:[#allocation8 + $0x170] sm:$0xff]  }
  0xb5   : > { %8792 = vmatprep.subr.bf16.mxu0 %v10914_v0  ;;  %8781 = vmatpush3.bf16.msra.mxu1 %v10181_v23  ;;  %v10219_v23 = vld [vmem:[#allocation8 + $0x188] sm:$0xff]  }
  0xb6   : > { %8782 = vmatprep.subr.bf16.mxu1 %v10914_v0 }
  0xb7   : > { %8765 = vmatmul.mubr.msk.bf16.gmra.mrb[4].mxu0 %vm368_vm0, %v10180_v22 }
  0xb8   : > { %8793 = vmatpush3.bf16.msra.mxu0 %v10172_v15  ;;  %8804 = vmatprep.mubr.msk.bf16.mxu0 %vm10915_vm2, %v10914_v0  ;;  %v10215_v15 = vld [vmem:[#allocation8 + $0x138] sm:$0xff]  }
  0xb9   : > { %8794 = vmatprep.subr.bf16.mxu0 %v10914_v0  ;;  %8783 = vmatpush3.bf16.msra.mxu1 %v10183_v25  ;;  %v10221_v25 = vld [vmem:[#allocation8 + $0x190] sm:$0xff]  }
  0xba   : > { %8808 = vmatprep.subr.bf16.mxu1 %v10914_v0 }
  0xbc   : > { %8795 = vmatpush3.bf16.msra.mxu0 %v10174_v16  ;;  %v10216_v16 = vld [vmem:[#allocation8 + $0x178] sm:$0xff]  }
  0xbd   : > { %8796 = vmatprep.subr.bf16.mxu0 %v10914_v0 }
  0xc0   : > { %8797 = vmatpush3.bf16.msra.mxu0 %v10176_v18 }
  0xc1   : > { %8798 = vmatprep.subr.bf16.mxu0 %v10914_v0 }
  0xc4   : > { %8799 = vmatpush3.bf16.msra.mxu0 %v10178_v20  ;;  %v10218_v20 = vld [vmem:[#allocation8 + $0x1c0] sm:$0xff]  }
  0xc5   : > { %8800 = vmatprep.subr.bf16.mxu0 %v10914_v0 }
  0xc8   : > { %8801 = vmatpush3.bf16.msra.mxu0 %v10182_v24  ;;  %v10220_v24 = vld [vmem:[#allocation8 + $0x1c8] sm:$0xff]  }
  0xc9   : > { %8802 = vmatprep.subr.bf16.mxu0 %v10914_v0 }
  0xcc   : > { %8803 = vmatpush3.bf16.msra.mxu0 %v10184_v26  ;;  %v10222_v26 = vld [vmem:[#allocation8 + $0x1d0] sm:$0xff]  }
  0xcd   : > { %8828 = vmatprep.subr.bf16.mxu0 %v10914_v0 }
 0x182   : > { %v8762_v28 = vpop.f32.mrb[0].mxu0 }
 0x183   : > { %v428_v29 = vadd.f32 %v8762_v28, %v11218_v27  ;;  %v419_v30 = vpop.f32.mrb[1].mxu0  ;;  %v10223_v28 = vld [vmem:[#allocation8 + $0x198] sm:$0xff]  }
 0x184   : > { %v420_v31 = vadd.f32 %v11218_v27, %v419_v30  ;;  %v8763_v32 = vpop.f32.mrb[2].mxu0 }
 0x185   : > { %v452_v33 = vmax.f32 %v428_v29, 0.0  ;;  %v431_v34 = vadd.f32 %v8763_v32, %v11218_v27  ;;  %v422_v35 = vpop.f32.mrb[3].mxu0  ;;  %v10224_v29 = vld [vmem:[#allocation8 + $0x1d8] sm:$0xff]  }
 0x186   : > { %v450_v36 = vmax.f32 %v420_v31, 0.0  ;;  %v423_v37 = vadd.f32 %v11218_v27, %v422_v35  ;;  %v10225_v35 = vld [vmem:[#allocation8 + $0x1a0] sm:$0xff]  }
 0x187   : > { %460 = vst [vmem:[#allocation2 + $0x10] sm:$0xff] %v452_v33  ;;  %v453_v38 = vmax.f32 %v431_v34, 0.0 }
 0x188   : > { %458 = vst [vmem:[#allocation2] sm:$0xff] %v450_v36  ;;  %v451_v39 = vmax.f32 %v423_v37, 0.0  ;;  %v10226_v36 = vld [vmem:[#allocation8 + $0x1e0] sm:$0xff]  }
 0x189   : > { %461 = vst [vmem:[#allocation2 + $0x18] sm:$0xff] %v453_v38 }
 0x18a   : > { %459 = vst [vmem:[#allocation2 + $0x8] sm:$0xff] %v451_v39  ;;  %v8766_v30 = vpop.f32.mrb[4].mxu0 }
 0x18b   : > { %v444_v31 = vadd.f32 %v8766_v30, %v11218_v27  ;;  %v435_v32 = vpop.f32.mrb[5].mxu0  ;;  %v10266_v30 = vld [vmem:[#allocation8 + $0x340] sm:$0xff]  }
 0x18c   : > { %v436_v33 = vadd.f32 %v11218_v27, %v435_v32  ;;  %v8767_v34 = vpop.f32.mrb[6].mxu0 }
 0x18d   : > { %v456_v37 = vmax.f32 %v444_v31, 0.0  ;;  %v447_v38 = vadd.f32 %v8767_v34, %v11218_v27  ;;  %v438_v39 = vpop.f32.mrb[7].mxu0  ;;  %v10268_v34 = vld [vmem:[#allocation8 + $0x348] sm:$0xff]  }
 0x18f   : > { %v484_v41 = vld [vmem:[#allocation2 + $0x1] sm:$0x1]  ;;  %v466_v42 = vld [vmem:[#allocation2] sm:$0x1]  ;;  %v679_v60 = vld [vmem:[#allocation2 + $0x2] sm:$0x1] }
 0x190   : > { %v485_v44 = vpack.c.bf16 %v484_v41, %v484_v41  ;;  %v467_v45 = vpack.c.bf16 %v466_v42, %v466_v42  ;;  %v787_v61 = vld [vmem:[#allocation2 + $0x3] sm:$0x1]  ;;  %v680_v1 = vpack.c.bf16 %v679_v60, %v679_v60  ;;  %v895_v17 = vld [vmem:[#allocation2 + $0x4] sm:$0x1]  ;;  %v1003_v18 = vld [vmem:[#allocation2 + $0x5] sm:$0x1]  ;;  %v439_v41 = vadd.f32 %v11218_v27, %v438_v39 }
 0x191   : > { %v788_v2 = vpack.c.bf16 %v787_v61, %v787_v61  ;;  %v896_v21 = vpack.c.bf16 %v895_v17, %v895_v17  ;;  %v1004_v22 = vpack.c.bf16 %v1003_v18, %v1003_v18  ;;  %464 = vst [vmem:[#allocation2 + $0x30] sm:$0xff] %v456_v37  ;;  %v457_v42 = vmax.f32 %v447_v38, 0.0  ;;  %v10231_v27 = vld [vmem:[#allocation8 + $0x1b8] sm:$0xff]   ;;  %v10241_v61 = vld [vmem:[#allocation8 + $0x220] sm:$0xff]  }
 0x192   : > { %8785 = vmatmul.mubr.bf16.vlgmr.msra.gmra.mrb[0].mxu1 %v485_v44  ;;  %8805 = vmatmul.mubr.bf16.vlgmr.msra.gmra.mrb[8].mxu0 %v467_v45  ;;  %v455_v44 = vmax.f32 %v439_v41, 0.0  ;;  %v10228_v45 = vld [vmem:[#allocation8 + $0x1e8] sm:$0xff]   ;;  %v10240_v60 = vld [vmem:[#allocation8 + $0x258] sm:$0xff]   ;;  %v10257_v18 = vld [vmem:[#allocation8 + $0x2a0] sm:$0xff]  }
 0x193   : > { %8809 = vmatpush3.bf16.msra.mxu1 %v10185_v40  ;;  %8829 = vmatpush3.bf16.msra.mxu0 %v10186_v43  ;;  %v454_v40 = vmax.f32 %v436_v33, 0.0  ;;  %v10227_v43 = vld [vmem:[#allocation8 + $0x1a8] sm:$0xff]   ;;  %465 = vst [vmem:[#allocation2 + $0x38] sm:$0xff] %v457_v42  ;;  %v10256_v17 = vld [vmem:[#allocation8 + $0x2d8] sm:$0xff]   ;;  %v10273_v39 = vld [vmem:[#allocation8 + $0x320] sm:$0xff]  }
 0x194   : > { %8810 = vmatprep.subr.bf16.mxu1 %v10914_v0  ;;  %8830 = vmatprep.subr.bf16.mxu0 %v10914_v0  ;;  %463 = vst [vmem:[#allocation2 + $0x28] sm:$0xff] %v455_v44  ;;  %v10267_v33 = vld [vmem:[#allocation8 + $0x308] sm:$0xff]   ;;  %v10271_v37 = vld [vmem:[#allocation8 + $0x318] sm:$0xff]   ;;  %v10278_v44 = vld [vmem:[#allocation8 + $0x370] sm:$0xff]  }
 0x195   : > { %8824 = vmatprep.mubr.msk.bf16.mxu1 %vm10915_vm2, %v10914_v0  ;;  %8844 = vmatprep.mubr.msk.bf16.mxu0 %vm10915_vm2, %v10914_v0  ;;  %462 = vst [vmem:[#allocation2 + $0x20] sm:$0xff] %v454_v40  ;;  %v10272_v38 = vld [vmem:[#allocation8 + $0x358] sm:$0xff]   ;;  %v10274_v40 = vld [vmem:[#allocation8 + $0x360] sm:$0xff]   ;;  %v10275_v41 = vld [vmem:[#allocation8 + $0x328] sm:$0xff]  }
 0x196   : > { %v10276_v42 = vld [vmem:[#allocation8 + $0x368] sm:$0xff]  }
 0x197   : > { %8811 = vmatpush3.bf16.msra.mxu1 %v10187_v46  ;;  %8831 = vmatpush3.bf16.msra.mxu0 %v10188_v47  ;;  %v10229_v46 = vld [vmem:[#allocation8 + $0x1b0] sm:$0xff]  }
 0x198   : > { %8812 = vmatprep.subr.bf16.mxu1 %v10914_v0  ;;  %8832 = vmatprep.subr.bf16.mxu0 %v10914_v0  ;;  %v10230_v47 = vld [vmem:[#allocation8 + $0x1f0] sm:$0xff]  }
 0x19b   : > { %8813 = vmatpush3.bf16.msra.mxu1 %v10189_v48  ;;  %8833 = vmatpush3.bf16.msra.mxu0 %v10190_v49  ;;  %v10232_v48 = vld [vmem:[#allocation8 + $0x1f8] sm:$0xff]   ;;  %v1111_v49 = vld [vmem:[#allocation2 + $0x6] sm:$0x1] }
 0x19c   : > { %8814 = vmatprep.subr.bf16.mxu1 %v10914_v0  ;;  %8834 = vmatprep.subr.bf16.mxu0 %v10914_v0 }
 0x19f   : > { %8815 = vmatpush3.bf16.msra.mxu1 %v10191_v50  ;;  %8835 = vmatpush3.bf16.msra.mxu0 %v10192_v51  ;;  %v1219_v50 = vld [vmem:[#allocation2 + $0x7] sm:$0x1] }
 0x1a0   : > { %8816 = vmatprep.subr.bf16.mxu1 %v10914_v0  ;;  %8836 = vmatprep.subr.bf16.mxu0 %v10914_v0  ;;  %v10233_v51 = vld [vmem:[#allocation8 + $0x200] sm:$0xff]  }
 0x1a3   : > { %8817 = vmatpush3.bf16.msra.mxu1 %v10193_v52  ;;  %8837 = vmatpush3.bf16.msra.mxu0 %v10194_v53  ;;  %v10234_v52 = vld [vmem:[#allocation8 + $0x240] sm:$0xff]   ;;  %v1112_v53 = vpack.c.bf16 %v1111_v49, %v1111_v49 }
 0x1a4   : > { %8818 = vmatprep.subr.bf16.mxu1 %v10914_v0  ;;  %8838 = vmatprep.subr.bf16.mxu0 %v10914_v0  ;;  %v10282_v49 = vld [vmem:[#allocation8 + $0x3c0] sm:$0xff]  }
 0x1a7   : > { %8819 = vmatpush3.bf16.msra.mxu1 %v10195_v54  ;;  %8839 = vmatpush3.bf16.msra.mxu0 %v10196_v55  ;;  %v1220_v54 = vpack.c.bf16 %v1219_v50, %v1219_v50  ;;  %v10235_v55 = vld [vmem:[#allocation8 + $0x208] sm:$0xff]  }
 0x1a8   : > { %8820 = vmatprep.subr.bf16.mxu1 %v10914_v0  ;;  %8840 = vmatprep.subr.bf16.mxu0 %v10914_v0 }
 0x1ab   : > { %8821 = vmatpush3.bf16.msra.mxu1 %v10197_v56  ;;  %8841 = vmatpush3.bf16.msra.mxu0 %v10198_v57  ;;  %v10236_v56 = vld [vmem:[#allocation8 + $0x248] sm:$0xff]   ;;  %v10237_v57 = vld [vmem:[#allocation8 + $0x210] sm:$0xff]  }
 0x1ac   : > { %8822 = vmatprep.subr.bf16.mxu1 %v10914_v0  ;;  %8842 = vmatprep.subr.bf16.mxu0 %v10914_v0 }
 0x1af   : > { %8823 = vmatpush3.bf16.msra.mxu1 %v10199_v58  ;;  %8843 = vmatpush3.bf16.msra.mxu0 %v10200_v59  ;;  %v10238_v58 = vld [vmem:[#allocation8 + $0x250] sm:$0xff]   ;;  %v10239_v59 = vld [vmem:[#allocation8 + $0x218] sm:$0xff]  }
 0x1b0   : > { %8848 = vmatprep.subr.bf16.mxu1 %v10914_v0  ;;  %8868 = vmatprep.subr.bf16.mxu0 %v10914_v0 }
 0x1b2   : > { %8825 = vmatmul.mubr.bf16.vlgmr.msra.gmra.mrb[4].mxu1 %v680_v1  ;;  %8845 = vmatmul.mubr.bf16.vlgmr.msra.gmra.mrb[12].mxu0 %v788_v2  ;;  %v10244_v1 = vld [vmem:[#allocation8 + $0x268] sm:$0xff]   ;;  %v10245_v2 = vld [vmem:[#allocation8 + $0x230] sm:$0xff]  }
 0x1b3   : > { %8849 = vmatpush3.bf16.msra.mxu1 %v10201_v62  ;;  %8869 = vmatpush3.bf16.msra.mxu0 %v10202_v63  ;;  %v10242_v62 = vld [vmem:[#allocation8 + $0x260] sm:$0xff]   ;;  %v10243_v63 = vld [vmem:[#allocation8 + $0x228] sm:$0xff]  }
 0x1b4   : > { %8850 = vmatprep.subr.bf16.mxu1 %v10914_v0  ;;  %8870 = vmatprep.subr.bf16.mxu0 %v10914_v0 }
 0x1b5   : > { %8864 = vmatprep.mubr.msk.bf16.mxu1 %vm10915_vm2, %v10914_v0  ;;  %8884 = vmatprep.mubr.msk.bf16.mxu0 %vm10915_vm2, %v10914_v0 }
 0x1b7   : > { %8851 = vmatpush3.bf16.msra.mxu1 %v10203_v3  ;;  %8871 = vmatpush3.bf16.msra.mxu0 %v10204_v4  ;;  %v10246_v3 = vld [vmem:[#allocation8 + $0x270] sm:$0xff]   ;;  %v10247_v4 = vld [vmem:[#allocation8 + $0x238] sm:$0xff]  }
 0x1b8   : > { %8852 = vmatprep.subr.bf16.mxu1 %v10914_v0  ;;  %8872 = vmatprep.subr.bf16.mxu0 %v10914_v0 }
 0x1bb   : > { %8853 = vmatpush3.bf16.msra.mxu1 %v10205_v5  ;;  %8873 = vmatpush3.bf16.msra.mxu0 %v10206_v6  ;;  %v10248_v5 = vld [vmem:[#allocation8 + $0x278] sm:$0xff]   ;;  %v1327_v6 = vld [vmem:[#allocation2 + $0x8] sm:$0x1] }
 0x1bc   : > { %8854 = vmatprep.subr.bf16.mxu1 %v10914_v0  ;;  %8874 = vmatprep.subr.bf16.mxu0 %v10914_v0 }
 0x1bf   : > { %8855 = vmatpush3.bf16.msra.mxu1 %v10207_v7  ;;  %8875 = vmatpush3.bf16.msra.mxu0 %v10208_v8  ;;  %v1435_v7 = vld [vmem:[#allocation2 + $0x9] sm:$0x1] }
 0x1c0   : > { %8856 = vmatprep.subr.bf16.mxu1 %v10914_v0  ;;  %8876 = vmatprep.subr.bf16.mxu0 %v10914_v0  ;;  %v10249_v8 = vld [vmem:[#allocation8 + $0x280] sm:$0xff]  }
 0x1c3   : > { %8857 = vmatpush3.bf16.msra.mxu1 %v10209_v9  ;;  %8877 = vmatpush3.bf16.msra.mxu0 %v10210_v10  ;;  %v10250_v9 = vld [vmem:[#allocation8 + $0x2c0] sm:$0xff]   ;;  %v1328_v10 = vpack.c.bf16 %v1327_v6, %v1327_v6  ;;  %v10293_v6 = vld [vmem:[#allocation8 + $0x3b0] sm:$0xff]  }
 0x1c4   : > { %8858 = vmatprep.subr.bf16.mxu1 %v10914_v0  ;;  %8878 = vmatprep.subr.bf16.mxu0 %v10914_v0 }
 0x1c7   : > { %8859 = vmatpush3.bf16.msra.mxu1 %v10211_v11  ;;  %8879 = vmatpush3.bf16.msra.mxu0 %v10212_v12  ;;  %v1436_v11 = vpack.c.bf16 %v1435_v7, %v1435_v7  ;;  %v10251_v12 = vld [vmem:[#allocation8 + $0x288] sm:$0xff]   ;;  %v10294_v7 = vld [vmem:[#allocation8 + $0x3f0] sm:$0xff]  }
 0x1c8   : > { %8860 = vmatprep.subr.bf16.mxu1 %v10914_v0  ;;  %8880 = vmatprep.subr.bf16.mxu0 %v10914_v0 }
 0x1cb   : > { %8861 = vmatpush3.bf16.msra.mxu1 %v10213_v13  ;;  %8881 = vmatpush3.bf16.msra.mxu0 %v10214_v14  ;;  %v10252_v13 = vld [vmem:[#allocation8 + $0x2c8] sm:$0xff]   ;;  %v10253_v14 = vld [vmem:[#allocation8 + $0x290] sm:$0xff]  }
 0x1cc   : > { %8862 = vmatprep.subr.bf16.mxu1 %v10914_v0  ;;  %8882 = vmatprep.subr.bf16.mxu0 %v10914_v0 }
 0x1cf   : > { %8863 = vmatpush3.bf16.msra.mxu1 %v10215_v15  ;;  %8883 = vmatpush3.bf16.msra.mxu0 %v10216_v16  ;;  %v10254_v15 = vld [vmem:[#allocation8 + $0x2d0] sm:$0xff]   ;;  %v10255_v16 = vld [vmem:[#allocation8 + $0x298] sm:$0xff]  }
 0x1d0   : > { %8888 = vmatprep.subr.bf16.mxu1 %v10914_v0  ;;  %8908 = vmatprep.subr.bf16.mxu0 %v10914_v0 }
 0x1d2   : > { %8865 = vmatmul.mubr.bf16.vlgmr.msra.gmra.mrb[8].mxu1 %v896_v21  ;;  %8885 = vmatmul.mubr.bf16.vlgmr.msra.gmra.mrb[16].mxu0 %v1004_v22  ;;  %v10260_v21 = vld [vmem:[#allocation8 + $0x2e8] sm:$0xff]   ;;  %v10261_v22 = vld [vmem:[#allocation8 + $0x2b0] sm:$0xff]  }
 0x1d3   : > { %8889 = vmatpush3.bf16.msra.mxu1 %v10217_v19  ;;  %8909 = vmatpush3.bf16.msra.mxu0 %v10218_v20  ;;  %v10258_v19 = vld [vmem:[#allocation8 + $0x2e0] sm:$0xff]   ;;  %v10259_v20 = vld [vmem:[#allocation8 + $0x2a8] sm:$0xff]  }
 0x1d4   : > { %8890 = vmatprep.subr.bf16.mxu1 %v10914_v0  ;;  %8910 = vmatprep.subr.bf16.mxu0 %v10914_v0 }
 0x1d5   : > { %8904 = vmatprep.mubr.msk.bf16.mxu1 %vm10915_vm2, %v10914_v0  ;;  %8924 = vmatprep.mubr.msk.bf16.mxu0 %vm10915_vm2, %v10914_v0 }
 0x1d7   : > { %8891 = vmatpush3.bf16.msra.mxu1 %v10219_v23  ;;  %8911 = vmatpush3.bf16.msra.mxu0 %v10220_v24  ;;  %v10262_v23 = vld [vmem:[#allocation8 + $0x2f0] sm:$0xff]   ;;  %v10263_v24 = vld [vmem:[#allocation8 + $0x2b8] sm:$0xff]  }
 0x1d8   : > { %8892 = vmatprep.subr.bf16.mxu1 %v10914_v0  ;;  %8912 = vmatprep.subr.bf16.mxu0 %v10914_v0 }
 0x1db   : > { %8893 = vmatpush3.bf16.msra.mxu1 %v10221_v25  ;;  %8913 = vmatpush3.bf16.msra.mxu0 %v10222_v26  ;;  %v10264_v25 = vld [vmem:[#allocation8 + $0x2f8] sm:$0xff]   ;;  %v1543_v26 = vld [vmem:[#allocation2 + $0xa] sm:$0x1] }
 0x1dc   : > { %8894 = vmatprep.subr.bf16.mxu1 %v10914_v0  ;;  %8914 = vmatprep.subr.bf16.mxu0 %v10914_v0  ;;  %v1544_v31 = vpack.c.bf16 %v1543_v26, %v1543_v26  ;;  %v10307_v26 = vld [vmem:[#allocation8 + $0x428] sm:$0xff]  }
 0x1df   : > { %8895 = vmatpush3.bf16.msra.mxu1 %v10223_v28  ;;  %8915 = vmatpush3.bf16.msra.mxu0 %v10224_v29  ;;  %v1651_v28 = vld [vmem:[#allocation2 + $0xb] sm:$0x1] }
 0x1e0   : > { %8896 = vmatprep.subr.bf16.mxu1 %v10914_v0  ;;  %8916 = vmatprep.subr.bf16.mxu0 %v10914_v0  ;;  %v10265_v29 = vld [vmem:[#allocation8 + $0x300] sm:$0xff]   ;;  %v1652_v32 = vpack.c.bf16 %v1651_v28, %v1651_v28  ;;  %v10308_v28 = vld [vmem:[#allocation8 + $0x468] sm:$0xff]  }
 0x1e3   : > { %8897 = vmatpush3.bf16.msra.mxu1 %v10225_v35  ;;  %8917 = vmatpush3.bf16.msra.mxu0 %v10226_v36  ;;  %v10269_v35 = vld [vmem:[#allocation8 + $0x310] sm:$0xff]  }
 0x1e4   : > { %8898 = vmatprep.subr.bf16.mxu1 %v10914_v0  ;;  %8918 = vmatprep.subr.bf16.mxu0 %v10914_v0  ;;  %v10270_v36 = vld [vmem:[#allocation8 + $0x350] sm:$0xff]  }
 0x1e7   : > { %8899 = vmatpush3.bf16.msra.mxu1 %v10227_v43  ;;  %8919 = vmatpush3.bf16.msra.mxu0 %v10228_v45  ;;  %v10277_v43 = vld [vmem:[#allocation8 + $0x330] sm:$0xff]   ;;  %v10279_v45 = vld [vmem:[#allocation8 + $0x338] sm:$0xff]  }
 0x1e8   : > { %8900 = vmatprep.subr.bf16.mxu1 %v10914_v0  ;;  %8920 = vmatprep.subr.bf16.mxu0 %v10914_v0 }
 0x1eb   : > { %8901 = vmatpush3.bf16.msra.mxu1 %v10229_v46  ;;  %8921 = vmatpush3.bf16.msra.mxu0 %v10230_v47  ;;  %v10280_v46 = vld [vmem:[#allocation8 + $0x378] sm:$0xff]   ;;  %v1759_v47 = vld [vmem:[#allocation2 + $0xc] sm:$0x1] }
 0x1ec   : > { %8902 = vmatprep.subr.bf16.mxu1 %v10914_v0  ;;  %8922 = vmatprep.subr.bf16.mxu0 %v10914_v0  ;;  %v1760_v50 = vpack.c.bf16 %v1759_v47, %v1759_v47 }
 0x1ef   : > { %8903 = vmatpush3.bf16.msra.mxu1 %v10231_v27  ;;  %8923 = vmatpush3.bf16.msra.mxu0 %v10232_v48  ;;  %v1867_v27 = vld [vmem:[#allocation2 + $0xd] sm:$0x1]  ;;  %v10281_v48 = vld [vmem:[#allocation8 + $0x380] sm:$0xff]  }
 0x1f0   : > { %8928 = vmatprep.subr.bf16.mxu1 %v10914_v0  ;;  %8948 = vmatprep.subr.bf16.mxu0 %v10914_v0 }
 0x1f2   : > { %8905 = vmatmul.mubr.bf16.vlgmr.msra.gmra.mrb[12].mxu1 %v1112_v53  ;;  %8925 = vmatmul.mubr.bf16.vlgmr.msra.gmra.mrb[20].mxu0 %v1220_v54  ;;  %v10284_v53 = vld [vmem:[#allocation8 + $0x3c8] sm:$0xff]   ;;  %v10285_v54 = vld [vmem:[#allocation8 + $0x390] sm:$0xff]  }
 0x1f3   : > { %8929 = vmatpush3.bf16.msra.mxu1 %v10233_v51  ;;  %8949 = vmatpush3.bf16.msra.mxu0 %v10234_v52  ;;  %v1868_v51 = vpack.c.bf16 %v1867_v27, %v1867_v27  ;;  %v10283_v52 = vld [vmem:[#allocation8 + $0x388] sm:$0xff]  }
 0x1f4   : > { %8930 = vmatprep.subr.bf16.mxu1 %v10914_v0  ;;  %8950 = vmatprep.subr.bf16.mxu0 %v10914_v0 }
 0x1f5   : > { %8944 = vmatprep.mubr.msk.bf16.mxu1 %vm10915_vm2, %v10914_v0  ;;  %8964 = vmatprep.mubr.msk.bf16.mxu0 %vm10915_vm2, %v10914_v0 }
 0x1f7   : > { %8931 = vmatpush3.bf16.msra.mxu1 %v10235_v55  ;;  %8951 = vmatpush3.bf16.msra.mxu0 %v10236_v56  ;;  %v10286_v55 = vld [vmem:[#allocation8 + $0x3d0] sm:$0xff]   ;;  %v10287_v56 = vld [vmem:[#allocation8 + $0x398] sm:$0xff]  }
 0x1f8   : > { %8932 = vmatprep.subr.bf16.mxu1 %v10914_v0  ;;  %8952 = vmatprep.subr.bf16.mxu0 %v10914_v0 }
 0x1fb   : > { %8933 = vmatpush3.bf16.msra.mxu1 %v10237_v57  ;;  %8953 = vmatpush3.bf16.msra.mxu0 %v10238_v58  ;;  %v10288_v57 = vld [vmem:[#allocation8 + $0x3d8] sm:$0xff]   ;;  %v10289_v58 = vld [vmem:[#allocation8 + $0x3a0] sm:$0xff]  }
 0x1fc   : > { %8934 = vmatprep.subr.bf16.mxu1 %v10914_v0  ;;  %8954 = vmatprep.subr.bf16.mxu0 %v10914_v0 }
 0x1ff   : > { %8935 = vmatpush3.bf16.msra.mxu1 %v10239_v59  ;;  %8955 = vmatpush3.bf16.msra.mxu0 %v10240_v60  ;;  %v10290_v59 = vld [vmem:[#allocation8 + $0x3e0] sm:$0xff]   ;;  %v10291_v60 = vld [vmem:[#allocation8 + $0x3a8] sm:$0xff]  }
 0x200   : > { %8936 = vmatprep.subr.bf16.mxu1 %v10914_v0  ;;  %8956 = vmatprep.subr.bf16.mxu0 %v10914_v0 }
 0x203   : > { %8937 = vmatpush3.bf16.msra.mxu1 %v10241_v61  ;;  %8957 = vmatpush3.bf16.msra.mxu0 %v10242_v62  ;;  %v10292_v61 = vld [vmem:[#allocation8 + $0x3e8] sm:$0xff]  }
 0x204   : > { %8938 = vmatprep.subr.bf16.mxu1 %v10914_v0  ;;  %8958 = vmatprep.subr.bf16.mxu0 %v10914_v0 }
 0x207   : > { %8939 = vmatpush3.bf16.msra.mxu1 %v10243_v63  ;;  %8959 = vmatpush3.bf16.msra.mxu0 %v10244_v1 }
 0x208   : > { %8940 = vmatprep.subr.bf16.mxu1 %v10914_v0  ;;  %8960 = vmatprep.subr.bf16.mxu0 %v10914_v0 }
 0x20b   : > { %8941 = vmatpush3.bf16.msra.mxu1 %v10245_v2  ;;  %8961 = vmatpush3.bf16.msra.mxu0 %v10246_v3 }
 0x20c   : > { %8942 = vmatprep.subr.bf16.mxu1 %v10914_v0  ;;  %8962 = vmatprep.subr.bf16.mxu0 %v10914_v0 }
 0x20f   : > { %8943 = vmatpush3.bf16.msra.mxu1 %v10247_v4  ;;  %8963 = vmatpush3.bf16.msra.mxu0 %v10248_v5 }
 0x210   : > { %8968 = vmatprep.subr.bf16.mxu1 %v10914_v0  ;;  %8988 = vmatprep.subr.bf16.mxu0 %v10914_v0 }
 0x212   : > { %8945 = vmatmul.mubr.bf16.vlgmr.msra.gmra.mrb[16].mxu1 %v1328_v10  ;;  %8965 = vmatmul.mubr.bf16.vlgmr.msra.gmra.mrb[24].mxu0 %v1436_v11  ;;  %v10295_v10 = vld [vmem:[#allocation8 + $0x3b8] sm:$0xff]  }
 0x213   : > { %8969 = vmatpush3.bf16.msra.mxu1 %v10249_v8  ;;  %8989 = vmatpush3.bf16.msra.mxu0 %v10250_v9  ;;  %v10296_v11 = vld [vmem:[#allocation8 + $0x3f8] sm:$0xff]  }
 0x214   : > { %8970 = vmatprep.subr.bf16.mxu1 %v10914_v0  ;;  %8990 = vmatprep.subr.bf16.mxu0 %v10914_v0 }
 0x215   : > { %8984 = vmatprep.mubr.msk.bf16.mxu1 %vm10915_vm2, %v10914_v0  ;;  %9004 = vmatprep.mubr.msk.bf16.mxu0 %vm10915_vm2, %v10914_v0 }
 0x217   : > { %8971 = vmatpush3.bf16.msra.mxu1 %v10251_v12  ;;  %8991 = vmatpush3.bf16.msra.mxu0 %v10252_v13  ;;  %v1975_v12 = vld [vmem:[#allocation2 + $0xe] sm:$0x1]  ;;  %v2083_v13 = vld [vmem:[#allocation2 + $0xf] sm:$0x1] }
 0x218   : > { %8972 = vmatprep.subr.bf16.mxu1 %v10914_v0  ;;  %8992 = vmatprep.subr.bf16.mxu0 %v10914_v0 }
 0x21b   : > { %8973 = vmatpush3.bf16.msra.mxu1 %v10253_v14  ;;  %8993 = vmatpush3.bf16.msra.mxu0 %v10254_v15  ;;  %v10297_v14 = vld [vmem:[#allocation8 + $0x400] sm:$0xff]  }
 0x21c   : > { %8974 = vmatprep.subr.bf16.mxu1 %v10914_v0  ;;  %8994 = vmatprep.subr.bf16.mxu0 %v10914_v0  ;;  %v10298_v15 = vld [vmem:[#allocation8 + $0x440] sm:$0xff]  }
 0x21f   : > { %8975 = vmatpush3.bf16.msra.mxu1 %v10255_v16  ;;  %8995 = vmatpush3.bf16.msra.mxu0 %v10256_v17  ;;  %v1976_v16 = vpack.c.bf16 %v1975_v12, %v1975_v12  ;;  %v2084_v17 = vpack.c.bf16 %v2083_v13, %v2083_v13  ;;  %v10330_v12 = vld [vmem:[#allocation8 + $0x540] sm:$0xff]  }
 0x220   : > { %8976 = vmatprep.subr.bf16.mxu1 %v10914_v0  ;;  %8996 = vmatprep.subr.bf16.mxu0 %v10914_v0 }
 0x223   : > { %8977 = vmatpush3.bf16.msra.mxu1 %v10257_v18  ;;  %8997 = vmatpush3.bf16.msra.mxu0 %v10258_v19  ;;  %v10299_v18 = vld [vmem:[#allocation8 + $0x408] sm:$0xff]  }
 0x224   : > { %8978 = vmatprep.subr.bf16.mxu1 %v10914_v0  ;;  %8998 = vmatprep.subr.bf16.mxu0 %v10914_v0  ;;  %v10300_v19 = vld [vmem:[#allocation8 + $0x448] sm:$0xff]  }
 0x227   : > { %8979 = vmatpush3.bf16.msra.mxu1 %v10259_v20  ;;  %8999 = vmatpush3.bf16.msra.mxu0 %v10260_v21  ;;  %v10301_v20 = vld [vmem:[#allocation8 + $0x410] sm:$0xff]  }
 0x228   : > { %8980 = vmatprep.subr.bf16.mxu1 %v10914_v0  ;;  %9000 = vmatprep.subr.bf16.mxu0 %v10914_v0  ;;  %v10302_v21 = vld [vmem:[#allocation8 + $0x450] sm:$0xff]  }
 0x22b   : > { %8981 = vmatpush3.bf16.msra.mxu1 %v10261_v22  ;;  %9001 = vmatpush3.bf16.msra.mxu0 %v10262_v23  ;;  %v10303_v22 = vld [vmem:[#allocation8 + $0x418] sm:$0xff]  }
 0x22c   : > { %8982 = vmatprep.subr.bf16.mxu1 %v10914_v0  ;;  %9002 = vmatprep.subr.bf16.mxu0 %v10914_v0  ;;  %v10304_v23 = vld [vmem:[#allocation8 + $0x458] sm:$0xff]  }
 0x22f   : > { %8983 = vmatpush3.bf16.msra.mxu1 %v10263_v24  ;;  %9003 = vmatpush3.bf16.msra.mxu0 %v10264_v25  ;;  %v10305_v24 = vld [vmem:[#allocation8 + $0x420] sm:$0xff]  }
 0x230   : > { %9008 = vmatprep.subr.bf16.mxu1 %v10914_v0  ;;  %9028 = vmatprep.subr.bf16.mxu0 %v10914_v0  ;;  %v10306_v25 = vld [vmem:[#allocation8 + $0x460] sm:$0xff]  }
 0x232   : > { %8985 = vmatmul.mubr.bf16.vlgmr.msra.gmra.mrb[20].mxu1 %v1544_v31  ;;  %9005 = vmatmul.mubr.bf16.vlgmr.msra.gmra.mrb[28].mxu0 %v1652_v32 }
 0x233   : > { %9009 = vmatpush3.bf16.msra.mxu1 %v10265_v29  ;;  %9029 = vmatpush3.bf16.msra.mxu0 %v10266_v30 }
 0x234   : > { %9010 = vmatprep.subr.bf16.mxu1 %v10914_v0  ;;  %9030 = vmatprep.subr.bf16.mxu0 %v10914_v0 }
 0x235   : > { %9024 = vmatprep.mubr.msk.bf16.mxu1 %vm10915_vm2, %v10914_v0  ;;  %9044 = vmatprep.mubr.msk.bf16.mxu0 %vm10915_vm2, %v10914_v0 }
 0x237   : > { %9011 = vmatpush3.bf16.msra.mxu1 %v10267_v33  ;;  %9031 = vmatpush3.bf16.msra.mxu0 %v10268_v34 }
 0x238   : > { %9012 = vmatprep.subr.bf16.mxu1 %v10914_v0  ;;  %9032 = vmatprep.subr.bf16.mxu0 %v10914_v0 }
 0x23b   : > { %9013 = vmatpush3.bf16.msra.mxu1 %v10269_v35  ;;  %9033 = vmatpush3.bf16.msra.mxu0 %v10270_v36  ;;  %v10309_v36 = vld [vmem:[#allocation8 + $0x430] sm:$0xff]  }
 0x23c   : > { %9014 = vmatprep.subr.bf16.mxu1 %v10914_v0  ;;  %9034 = vmatprep.subr.bf16.mxu0 %v10914_v0 }
 0x23f   : > { %9015 = vmatpush3.bf16.msra.mxu1 %v10271_v37  ;;  %9035 = vmatpush3.bf16.msra.mxu0 %v10272_v38  ;;  %v10310_v37 = vld [vmem:[#allocation8 + $0x470] sm:$0xff]  }
 0x240   : > { %9016 = vmatprep.subr.bf16.mxu1 %v10914_v0  ;;  %9036 = vmatprep.subr.bf16.mxu0 %v10914_v0 }
 0x243   : > { %9017 = vmatpush3.bf16.msra.mxu1 %v10273_v39  ;;  %9037 = vmatpush3.bf16.msra.mxu0 %v10274_v40 }
 0x244   : > { %9018 = vmatprep.subr.bf16.mxu1 %v10914_v0  ;;  %9038 = vmatprep.subr.bf16.mxu0 %v10914_v0 }
 0x247   : > { %9019 = vmatpush3.bf16.msra.mxu1 %v10275_v41  ;;  %9039 = vmatpush3.bf16.msra.mxu0 %v10276_v42  ;;  %v10311_v41 = vld [vmem:[#allocation8 + $0x438] sm:$0xff]  }
 0x248   : > { %9020 = vmatprep.subr.bf16.mxu1 %v10914_v0  ;;  %9040 = vmatprep.subr.bf16.mxu0 %v10914_v0  ;;  %v10312_v42 = vld [vmem:[#allocation8 + $0x478] sm:$0xff]  }
 0x24b   : > { %9021 = vmatpush3.bf16.msra.mxu1 %v10277_v43  ;;  %9041 = vmatpush3.bf16.msra.mxu0 %v10278_v44  ;;  %v2191_v43 = vld [vmem:[#allocation2 + $0x10] sm:$0x1]  ;;  %v2299_v44 = vld [vmem:[#allocation2 + $0x11] sm:$0x1] }
 0x24c   : > { %9022 = vmatprep.subr.bf16.mxu1 %v10914_v0  ;;  %9042 = vmatprep.subr.bf16.mxu0 %v10914_v0  ;;  %v2192_v47 = vpack.c.bf16 %v2191_v43, %v2191_v43  ;;  %v2300_v27 = vpack.c.bf16 %v2299_v44, %v2299_v44  ;;  %v10346_v43 = vld [vmem:[#allocation8 + $0x5c0] sm:$0xff]  }
 0x24f   : > { %9023 = vmatpush3.bf16.msra.mxu1 %v10279_v45  ;;  %9043 = vmatpush3.bf16.msra.mxu0 %v10280_v46  ;;  %v10313_v45 = vld [vmem:[#allocation8 + $0x480] sm:$0xff]  }
 0x250   : > { %9048 = vmatprep.subr.bf16.mxu1 %v10914_v0  ;;  %9068 = vmatprep.subr.bf16.mxu0 %v10914_v0  ;;  %v10314_v46 = vld [vmem:[#allocation8 + $0x4c0] sm:$0xff]  }
 0x252   : > { %9025 = vmatmul.mubr.bf16.vlgmr.msra.gmra.mrb[24].mxu1 %v1760_v50  ;;  %9045 = vmatmul.mubr.bf16.vlgmr.msra.gmra.mrb[32].mxu0 %v1868_v51  ;;  %v10317_v50 = vld [vmem:[#allocation8 + $0x490] sm:$0xff]  }
 0x253   : > { %9049 = vmatpush3.bf16.msra.mxu1 %v10281_v48  ;;  %9069 = vmatpush3.bf16.msra.mxu0 %v10282_v49  ;;  %v10315_v48 = vld [vmem:[#allocation8 + $0x488] sm:$0xff]   ;;  %v10318_v51 = vld [vmem:[#allocation8 + $0x4d0] sm:$0xff]  }
 0x254   : > { %9050 = vmatprep.subr.bf16.mxu1 %v10914_v0  ;;  %9070 = vmatprep.subr.bf16.mxu0 %v10914_v0  ;;  %v10316_v49 = vld [vmem:[#allocation8 + $0x4c8] sm:$0xff]  }
 0x255   : > { %9064 = vmatprep.mubr.msk.bf16.mxu1 %vm10915_vm2, %v10914_v0  ;;  %9084 = vmatprep.mubr.msk.bf16.mxu0 %vm10915_vm2, %v10914_v0 }
 0x257   : > { %9051 = vmatpush3.bf16.msra.mxu1 %v10283_v52  ;;  %9071 = vmatpush3.bf16.msra.mxu0 %v10284_v53  ;;  %v10319_v52 = vld [vmem:[#allocation8 + $0x498] sm:$0xff]  }
 0x258   : > { %9052 = vmatprep.subr.bf16.mxu1 %v10914_v0  ;;  %9072 = vmatprep.subr.bf16.mxu0 %v10914_v0  ;;  %v10320_v53 = vld [vmem:[#allocation8 + $0x4d8] sm:$0xff]  }
 0x25b   : > { %9053 = vmatpush3.bf16.msra.mxu1 %v10285_v54  ;;  %9073 = vmatpush3.bf16.msra.mxu0 %v10286_v55  ;;  %v10321_v54 = vld [vmem:[#allocation8 + $0x4a0] sm:$0xff]  }
 0x25c   : > { %9054 = vmatprep.subr.bf16.mxu1 %v10914_v0  ;;  %9074 = vmatprep.subr.bf16.mxu0 %v10914_v0  ;;  %v10322_v55 = vld [vmem:[#allocation8 + $0x4e0] sm:$0xff]  }
 0x25f   : > { %9055 = vmatpush3.bf16.msra.mxu1 %v10287_v56  ;;  %9075 = vmatpush3.bf16.msra.mxu0 %v10288_v57  ;;  %v10323_v56 = vld [vmem:[#allocation8 + $0x4a8] sm:$0xff]  }
 0x260   : > { %9056 = vmatprep.subr.bf16.mxu1 %v10914_v0  ;;  %9076 = vmatprep.subr.bf16.mxu0 %v10914_v0  ;;  %v10324_v57 = vld [vmem:[#allocation8 + $0x4e8] sm:$0xff]  }
 0x263   : > { %9057 = vmatpush3.bf16.msra.mxu1 %v10289_v58  ;;  %9077 = vmatpush3.bf16.msra.mxu0 %v10290_v59 }
 0x264   : > { %9058 = vmatprep.subr.bf16.mxu1 %v10914_v0  ;;  %9078 = vmatprep.subr.bf16.mxu0 %v10914_v0 }
 0x265   : > { %v585_v62 = vpop.f32.mrb[0].mxu1  ;;  %v673_v63 = vpop.f32.mrb[8].mxu0 }
 0x266   : > { %v11362_v1 = vadd.f32 %v673_v63, %v585_v62  ;;  %v8786_v2 = vpop.f32.mrb[1].mxu1  ;;  %v8806_v3 = vpop.f32.mrb[9].mxu0 }
 0x267   : > { %9059 = vmatpush3.bf16.msra.mxu1 %v10291_v60  ;;  %9079 = vmatpush3.bf16.msra.mxu0 %v10292_v61  ;;  %v588_v4 = vpop.f32.mrb[2].mxu1  ;;  %v676_v5 = vpop.f32.mrb[10].mxu0  ;;  %v10325_v2 = vld [vmem:[#allocation8 + $0x4b0] sm:$0xff]  }
 0x268   : > { %v8787_v8 = vpop.f32.mrb[3].mxu1  ;;  %v8807_v9 = vpop.f32.mrb[11].mxu0  ;;  %9060 = vmatprep.subr.bf16.mxu1 %v10914_v0  ;;  %9080 = vmatprep.subr.bf16.mxu0 %v10914_v0  ;;  %v10326_v3 = vld [vmem:[#allocation8 + $0x4f0] sm:$0xff]  }
 0x269   : > { %v10328_v8 = vld [vmem:[#allocation8 + $0x4f8] sm:$0xff]   ;;  %v2407_v9 = vld [vmem:[#allocation2 + $0x12] sm:$0x1] }
 0x26a   : > { %v2408_v13 = vpack.c.bf16 %v2407_v9, %v2407_v9  ;;  %v10362_v9 = vld [vmem:[#allocation8 + $0x640] sm:$0xff]  }
 0x26b   : > { %9061 = vmatpush3.bf16.msra.mxu1 %v10293_v6  ;;  %9081 = vmatpush3.bf16.msra.mxu0 %v10294_v7  ;;  %v10327_v7 = vld [vmem:[#allocation8 + $0x4b8] sm:$0xff]  }
 0x26c   : > { %9062 = vmatprep.subr.bf16.mxu1 %v10914_v0  ;;  %9082 = vmatprep.subr.bf16.mxu0 %v10914_v0 }
 0x26f   : > { %9063 = vmatpush3.bf16.msra.mxu1 %v10295_v10  ;;  %9083 = vmatpush3.bf16.msra.mxu0 %v10296_v11  ;;  %v2515_v10 = vld [vmem:[#allocation2 + $0x13] sm:$0x1]  ;;  %v10329_v11 = vld [vmem:[#allocation8 + $0x500] sm:$0xff]  }
 0x270   : > { %9088 = vmatprep.subr.bf16.mxu1 %v10914_v0  ;;  %9108 = vmatprep.subr.bf16.mxu0 %v10914_v0 }
 0x272   : > { %9065 = vmatmul.mubr.bf16.vlgmr.msra.gmra.mrb[28].mxu1 %v1976_v16  ;;  %9085 = vmatmul.mubr.bf16.vlgmr.msra.gmra.mrb[36].mxu0 %v2084_v17  ;;  %v10332_v16 = vld [vmem:[#allocation8 + $0x548] sm:$0xff]   ;;  %v10333_v17 = vld [vmem:[#allocation8 + $0x510] sm:$0xff]  }
 0x273   : > { %9089 = vmatpush3.bf16.msra.mxu1 %v10297_v14  ;;  %9109 = vmatpush3.bf16.msra.mxu0 %v10298_v15  ;;  %v2516_v14 = vpack.c.bf16 %v2515_v10, %v2515_v10  ;;  %v10331_v15 = vld [vmem:[#allocation8 + $0x508] sm:$0xff]  }
 0x274   : > { %9090 = vmatprep.subr.bf16.mxu1 %v10914_v0  ;;  %9110 = vmatprep.subr.bf16.mxu0 %v10914_v0 }
 0x275   : > { %9104 = vmatprep.mubr.msk.bf16.mxu1 %vm10915_vm2, %v10914_v0  ;;  %9124 = vmatprep.mubr.msk.bf16.mxu0 %vm10915_vm2, %v10914_v0 }
 0x277   : > { %9091 = vmatpush3.bf16.msra.mxu1 %v10299_v18  ;;  %9111 = vmatpush3.bf16.msra.mxu0 %v10300_v19  ;;  %v10334_v18 = vld [vmem:[#allocation8 + $0x550] sm:$0xff]   ;;  %v10335_v19 = vld [vmem:[#allocation8 + $0x518] sm:$0xff]  }
 0x278   : > { %9092 = vmatprep.subr.bf16.mxu1 %v10914_v0  ;;  %9112 = vmatprep.subr.bf16.mxu0 %v10914_v0 }
 0x27b   : > { %9093 = vmatpush3.bf16.msra.mxu1 %v10301_v20  ;;  %9113 = vmatpush3.bf16.msra.mxu0 %v10302_v21  ;;  %v10336_v20 = vld [vmem:[#allocation8 + $0x558] sm:$0xff]   ;;  %v10337_v21 = vld [vmem:[#allocation8 + $0x520] sm:$0xff]  }
 0x27c   : > { %9094 = vmatprep.subr.bf16.mxu1 %v10914_v0  ;;  %9114 = vmatprep.subr.bf16.mxu0 %v10914_v0 }
 0x27f   : > { %9095 = vmatpush3.bf16.msra.mxu1 %v10303_v22  ;;  %9115 = vmatpush3.bf16.msra.mxu0 %v10304_v23  ;;  %v10338_v22 = vld [vmem:[#allocation8 + $0x560] sm:$0xff]   ;;  %v10339_v23 = vld [vmem:[#allocation8 + $0x528] sm:$0xff]  }
 0x280   : > { %9096 = vmatprep.subr.bf16.mxu1 %v10914_v0  ;;  %9116 = vmatprep.subr.bf16.mxu0 %v10914_v0 }
 0x283   : > { %9097 = vmatpush3.bf16.msra.mxu1 %v10305_v24  ;;  %9117 = vmatpush3.bf16.msra.mxu0 %v10306_v25  ;;  %v10340_v24 = vld [vmem:[#allocation8 + $0x568] sm:$0xff]  }
 0x284   : > { %9098 = vmatprep.subr.bf16.mxu1 %v10914_v0  ;;  %9118 = vmatprep.subr.bf16.mxu0 %v10914_v0 }
 0x285   : > { %v780_v29 = vpop.f32.mrb[4].mxu1  ;;  %v888_v30 = vpop.f32.mrb[12].mxu0 }
 0x286   : > { %v786_v31 = vadd.f32 %v780_v29, %v11362_v1  ;;  %v8826_v32 = vpop.f32.mrb[5].mxu1  ;;  %v8846_v33 = vpop.f32.mrb[13].mxu0 }
 0x287   : > { %v783_v34 = vpop.f32.mrb[6].mxu1  ;;  %v891_v35 = vpop.f32.mrb[14].mxu0  ;;  %9099 = vmatpush3.bf16.msra.mxu1 %v10307_v26  ;;  %9119 = vmatpush3.bf16.msra.mxu0 %v10308_v28  ;;  %v10341_v33 = vld [vmem:[#allocation8 + $0x530] sm:$0xff]  }
 0x288   : > { %v894_v38 = vadd.f32 %v888_v30, %v786_v31  ;;  %v8827_v39 = vpop.f32.mrb[7].mxu1  ;;  %v8847_v40 = vpop.f32.mrb[15].mxu0  ;;  %9100 = vmatprep.subr.bf16.mxu1 %v10914_v0  ;;  %9120 = vmatprep.subr.bf16.mxu0 %v10914_v0  ;;  %v10342_v34 = vld [vmem:[#allocation8 + $0x570] sm:$0xff]  }
 0x289   : > { %v10344_v39 = vld [vmem:[#allocation8 + $0x578] sm:$0xff]   ;;  %v2623_v40 = vld [vmem:[#allocation2 + $0x14] sm:$0x1] }
 0x28a   : > { %v2624_v44 = vpack.c.bf16 %v2623_v40, %v2623_v40  ;;  %v10378_v40 = vld [vmem:[#allocation8 + $0x6c0] sm:$0xff]  }
 0x28b   : > { %9101 = vmatpush3.bf16.msra.mxu1 %v10309_v36  ;;  %9121 = vmatpush3.bf16.msra.mxu0 %v10310_v37 }
 0x28c   : > { %9102 = vmatprep.subr.bf16.mxu1 %v10914_v0  ;;  %9122 = vmatprep.subr.bf16.mxu0 %v10914_v0 }
 0x28f   : > { %9103 = vmatpush3.bf16.msra.mxu1 %v10311_v41  ;;  %9123 = vmatpush3.bf16.msra.mxu0 %v10312_v42  ;;  %v2731_v41 = vld [vmem:[#allocation2 + $0x15] sm:$0x1]  ;;  %v10345_v42 = vld [vmem:[#allocation8 + $0x580] sm:$0xff]  }
 0x290   : > { %9128 = vmatprep.subr.bf16.mxu1 %v10914_v0  ;;  %9148 = vmatprep.subr.bf16.mxu0 %v10914_v0 }
 0x292   : > { %9105 = vmatmul.mubr.bf16.vlgmr.msra.gmra.mrb[32].mxu1 %v2192_v47  ;;  %9125 = vmatmul.mubr.bf16.vlgmr.msra.gmra.mrb[40].mxu0 %v2300_v27  ;;  %v10348_v47 = vld [vmem:[#allocation8 + $0x5c8] sm:$0xff]   ;;  %v10349_v27 = vld [vmem:[#allocation8 + $0x590] sm:$0xff]  }
 0x293   : > { %9129 = vmatpush3.bf16.msra.mxu1 %v10313_v45  ;;  %9149 = vmatpush3.bf16.msra.mxu0 %v10314_v46  ;;  %v2732_v45 = vpack.c.bf16 %v2731_v41, %v2731_v41  ;;  %v10347_v46 = vld [vmem:[#allocation8 + $0x588] sm:$0xff]  }
 0x294   : > { %9130 = vmatprep.subr.bf16.mxu1 %v10914_v0  ;;  %9150 = vmatprep.subr.bf16.mxu0 %v10914_v0 }
 0x295   : > { %9144 = vmatprep.mubr.msk.bf16.mxu1 %vm10915_vm2, %v10914_v0  ;;  %9164 = vmatprep.mubr.msk.bf16.mxu0 %vm10915_vm2, %v10914_v0 }
 0x297   : > { %9131 = vmatpush3.bf16.msra.mxu1 %v10315_v48  ;;  %9151 = vmatpush3.bf16.msra.mxu0 %v10316_v49  ;;  %v10350_v48 = vld [vmem:[#allocation8 + $0x5d0] sm:$0xff]   ;;  %v10351_v49 = vld [vmem:[#allocation8 + $0x598] sm:$0xff]  }
 0x298   : > { %9132 = vmatprep.subr.bf16.mxu1 %v10914_v0  ;;  %9152 = vmatprep.subr.bf16.mxu0 %v10914_v0 }
 0x29b   : > { %9133 = vmatpush3.bf16.msra.mxu1 %v10317_v50  ;;  %9153 = vmatpush3.bf16.msra.mxu0 %v10318_v51  ;;  %v10352_v50 = vld [vmem:[#allocation8 + $0x5d8] sm:$0xff]   ;;  %v10353_v51 = vld [vmem:[#allocation8 + $0x5a0] sm:$0xff]  }
 0x29c   : > { %9134 = vmatprep.subr.bf16.mxu1 %v10914_v0  ;;  %9154 = vmatprep.subr.bf16.mxu0 %v10914_v0 }
 0x29f   : > { %9135 = vmatpush3.bf16.msra.mxu1 %v10319_v52  ;;  %9155 = vmatpush3.bf16.msra.mxu0 %v10320_v53  ;;  %v10354_v52 = vld [vmem:[#allocation8 + $0x5e0] sm:$0xff]   ;;  %v10355_v53 = vld [vmem:[#allocation8 + $0x5a8] sm:$0xff]  }
 0x2a0   : > { %9136 = vmatprep.subr.bf16.mxu1 %v10914_v0  ;;  %9156 = vmatprep.subr.bf16.mxu0 %v10914_v0 }
 0x2a3   : > { %9137 = vmatpush3.bf16.msra.mxu1 %v10321_v54  ;;  %9157 = vmatpush3.bf16.msra.mxu0 %v10322_v55  ;;  %v10356_v54 = vld [vmem:[#allocation8 + $0x5e8] sm:$0xff]  }
 0x2a4   : > { %9138 = vmatprep.subr.bf16.mxu1 %v10914_v0  ;;  %9158 = vmatprep.subr.bf16.mxu0 %v10914_v0 }
 0x2a5   : > { %v996_v58 = vpop.f32.mrb[8].mxu1  ;;  %v1104_v59 = vpop.f32.mrb[16].mxu0 }
 0x2a6   : > { %v1002_v60 = vadd.f32 %v996_v58, %v894_v38  ;;  %v8866_v61 = vpop.f32.mrb[9].mxu1  ;;  %v8886_v62 = vpop.f32.mrb[17].mxu0  ;;  %v10343_v38 = vld [vmem:[#allocation8 + $0x538] sm:$0xff]  }
 0x2a7   : > { %v999_v63 = vpop.f32.mrb[10].mxu1  ;;  %v1107_v1 = vpop.f32.mrb[18].mxu0  ;;  %9139 = vmatpush3.bf16.msra.mxu1 %v10323_v56  ;;  %9159 = vmatpush3.bf16.msra.mxu0 %v10324_v57  ;;  %v10357_v62 = vld [vmem:[#allocation8 + $0x5b0] sm:$0xff]  }
 0x2a8   : > { %v1110_v4 = vadd.f32 %v1104_v59, %v1002_v60  ;;  %v8867_v5 = vpop.f32.mrb[11].mxu1  ;;  %v8887_v6 = vpop.f32.mrb[19].mxu0  ;;  %9140 = vmatprep.subr.bf16.mxu1 %v10914_v0  ;;  %9160 = vmatprep.subr.bf16.mxu0 %v10914_v0  ;;  %v10358_v63 = vld [vmem:[#allocation8 + $0x5f0] sm:$0xff]  }
 0x2a9   : > { %v10360_v5 = vld [vmem:[#allocation8 + $0x5f8] sm:$0xff]   ;;  %v2839_v6 = vld [vmem:[#allocation2 + $0x16] sm:$0x1] }
 0x2aa   : > { %v2840_v10 = vpack.c.bf16 %v2839_v6, %v2839_v6  ;;  %v10394_v6 = vld [vmem:[#allocation8 + $0x740] sm:$0xff]  }
 0x2ab   : > { %9141 = vmatpush3.bf16.msra.mxu1 %v10325_v2  ;;  %9161 = vmatpush3.bf16.msra.mxu0 %v10326_v3 }
 0x2ac   : > { %9142 = vmatprep.subr.bf16.mxu1 %v10914_v0  ;;  %9162 = vmatprep.subr.bf16.mxu0 %v10914_v0 }
 0x2af   : > { %9143 = vmatpush3.bf16.msra.mxu1 %v10327_v7  ;;  %9163 = vmatpush3.bf16.msra.mxu0 %v10328_v8  ;;  %v2947_v7 = vld [vmem:[#allocation2 + $0x17] sm:$0x1]  ;;  %v10361_v8 = vld [vmem:[#allocation8 + $0x600] sm:$0xff]  }
 0x2b0   : > { %9168 = vmatprep.subr.bf16.mxu1 %v10914_v0  ;;  %9188 = vmatprep.subr.bf16.mxu0 %v10914_v0 }
 0x2b2   : > { %9145 = vmatmul.mubr.bf16.vlgmr.msra.gmra.mrb[36].mxu1 %v2408_v13  ;;  %9165 = vmatmul.mubr.bf16.vlgmr.msra.gmra.mrb[44].mxu0 %v2516_v14  ;;  %v10364_v13 = vld [vmem:[#allocation8 + $0x648] sm:$0xff]   ;;  %v10365_v14 = vld [vmem:[#allocation8 + $0x610] sm:$0xff]  }
 0x2b3   : > { %9169 = vmatpush3.bf16.msra.mxu1 %v10329_v11  ;;  %9189 = vmatpush3.bf16.msra.mxu0 %v10330_v12  ;;  %v2948_v11 = vpack.c.bf16 %v2947_v7, %v2947_v7  ;;  %v10363_v12 = vld [vmem:[#allocation8 + $0x608] sm:$0xff]  }
 0x2b4   : > { %9170 = vmatprep.subr.bf16.mxu1 %v10914_v0  ;;  %9190 = vmatprep.subr.bf16.mxu0 %v10914_v0 }
 0x2b5   : > { %9184 = vmatprep.mubr.msk.bf16.mxu1 %vm10915_vm2, %v10914_v0  ;;  %9204 = vmatprep.mubr.msk.bf16.mxu0 %vm10915_vm2, %v10914_v0 }
 0x2b7   : > { %9171 = vmatpush3.bf16.msra.mxu1 %v10331_v15  ;;  %9191 = vmatpush3.bf16.msra.mxu0 %v10332_v16  ;;  %v10366_v15 = vld [vmem:[#allocation8 + $0x650] sm:$0xff]   ;;  %v10367_v16 = vld [vmem:[#allocation8 + $0x618] sm:$0xff]  }
 0x2b8   : > { %9172 = vmatprep.subr.bf16.mxu1 %v10914_v0  ;;  %9192 = vmatprep.subr.bf16.mxu0 %v10914_v0 }
 0x2bb   : > { %9173 = vmatpush3.bf16.msra.mxu1 %v10333_v17  ;;  %9193 = vmatpush3.bf16.msra.mxu0 %v10334_v18  ;;  %v10368_v17 = vld [vmem:[#allocation8 + $0x658] sm:$0xff]   ;;  %v10369_v18 = vld [vmem:[#allocation8 + $0x620] sm:$0xff]  }
 0x2bc   : > { %9174 = vmatprep.subr.bf16.mxu1 %v10914_v0  ;;  %9194 = vmatprep.subr.bf16.mxu0 %v10914_v0 }
 0x2bf   : > { %9175 = vmatpush3.bf16.msra.mxu1 %v10335_v19  ;;  %9195 = vmatpush3.bf16.msra.mxu0 %v10336_v20  ;;  %v10370_v19 = vld [vmem:[#allocation8 + $0x660] sm:$0xff]   ;;  %v10371_v20 = vld [vmem:[#allocation8 + $0x628] sm:$0xff]  }
 0x2c0   : > { %9176 = vmatprep.subr.bf16.mxu1 %v10914_v0  ;;  %9196 = vmatprep.subr.bf16.mxu0 %v10914_v0 }
 0x2c3   : > { %9177 = vmatpush3.bf16.msra.mxu1 %v10337_v21  ;;  %9197 = vmatpush3.bf16.msra.mxu0 %v10338_v22  ;;  %v10372_v21 = vld [vmem:[#allocation8 + $0x668] sm:$0xff]  }
 0x2c4   : > { %9178 = vmatprep.subr.bf16.mxu1 %v10914_v0  ;;  %9198 = vmatprep.subr.bf16.mxu0 %v10914_v0 }
 0x2c5   : > { %v1212_v25 = vpop.f32.mrb[12].mxu1  ;;  %v1320_v26 = vpop.f32.mrb[20].mxu0 }
 0x2c6   : > { %v1218_v28 = vadd.f32 %v1212_v25, %v1110_v4  ;;  %v8906_v29 = vpop.f32.mrb[13].mxu1  ;;  %v8926_v30 = vpop.f32.mrb[21].mxu0  ;;  %v10359_v4 = vld [vmem:[#allocation8 + $0x5b8] sm:$0xff]  }
 0x2c7   : > { %v1215_v31 = vpop.f32.mrb[14].mxu1  ;;  %v1323_v32 = vpop.f32.mrb[22].mxu0  ;;  %9179 = vmatpush3.bf16.msra.mxu1 %v10339_v23  ;;  %9199 = vmatpush3.bf16.msra.mxu0 %v10340_v24  ;;  %v10373_v30 = vld [vmem:[#allocation8 + $0x630] sm:$0xff]  }
 0x2c8   : > { %v1326_v35 = vadd.f32 %v1320_v26, %v1218_v28  ;;  %v8907_v36 = vpop.f32.mrb[15].mxu1  ;;  %v8927_v37 = vpop.f32.mrb[23].mxu0  ;;  %9180 = vmatprep.subr.bf16.mxu1 %v10914_v0  ;;  %9200 = vmatprep.subr.bf16.mxu0 %v10914_v0  ;;  %v10374_v31 = vld [vmem:[#allocation8 + $0x670] sm:$0xff]  }
 0x2c9   : > { %v10376_v36 = vld [vmem:[#allocation8 + $0x678] sm:$0xff]   ;;  %v3055_v37 = vld [vmem:[#allocation2 + $0x18] sm:$0x1] }
 0x2ca   : > { %v3056_v41 = vpack.c.bf16 %v3055_v37, %v3055_v37  ;;  %v10410_v37 = vld [vmem:[#allocation8 + $0x7c0] sm:$0xff]  }
 0x2cb   : > { %9181 = vmatpush3.bf16.msra.mxu1 %v10341_v33  ;;  %9201 = vmatpush3.bf16.msra.mxu0 %v10342_v34 }
 0x2cc   : > { %9182 = vmatprep.subr.bf16.mxu1 %v10914_v0  ;;  %9202 = vmatprep.subr.bf16.mxu0 %v10914_v0 }
 0x2cf   : > { %9183 = vmatpush3.bf16.msra.mxu1 %v10343_v38  ;;  %9203 = vmatpush3.bf16.msra.mxu0 %v10344_v39  ;;  %v3163_v38 = vld [vmem:[#allocation2 + $0x19] sm:$0x1]  ;;  %v10377_v39 = vld [vmem:[#allocation8 + $0x680] sm:$0xff]  }
 0x2d0   : > { %9208 = vmatprep.subr.bf16.mxu1 %v10914_v0  ;;  %9228 = vmatprep.subr.bf16.mxu0 %v10914_v0 }
 0x2d2   : > { %9185 = vmatmul.mubr.bf16.vlgmr.msra.gmra.mrb[40].mxu1 %v2624_v44  ;;  %9205 = vmatmul.mubr.bf16.vlgmr.msra.gmra.mrb[48].mxu0 %v2732_v45  ;;  %v10380_v44 = vld [vmem:[#allocation8 + $0x6c8] sm:$0xff]   ;;  %v10381_v45 = vld [vmem:[#allocation8 + $0x690] sm:$0xff]  }
 0x2d3   : > { %9209 = vmatpush3.bf16.msra.mxu1 %v10345_v42  ;;  %9229 = vmatpush3.bf16.msra.mxu0 %v10346_v43  ;;  %v3164_v42 = vpack.c.bf16 %v3163_v38, %v3163_v38  ;;  %v10379_v43 = vld [vmem:[#allocation8 + $0x688] sm:$0xff]  }
 0x2d4   : > { %9210 = vmatprep.subr.bf16.mxu1 %v10914_v0  ;;  %9230 = vmatprep.subr.bf16.mxu0 %v10914_v0 }
 0x2d5   : > { %9224 = vmatprep.mubr.msk.bf16.mxu1 %vm10915_vm2, %v10914_v0  ;;  %9244 = vmatprep.mubr.msk.bf16.mxu0 %vm10915_vm2, %v10914_v0 }
 0x2d7   : > { %9211 = vmatpush3.bf16.msra.mxu1 %v10347_v46  ;;  %9231 = vmatpush3.bf16.msra.mxu0 %v10348_v47  ;;  %v10382_v46 = vld [vmem:[#allocation8 + $0x6d0] sm:$0xff]   ;;  %v10383_v47 = vld [vmem:[#allocation8 + $0x698] sm:$0xff]  }
 0x2d8   : > { %9212 = vmatprep.subr.bf16.mxu1 %v10914_v0  ;;  %9232 = vmatprep.subr.bf16.mxu0 %v10914_v0 }
 0x2db   : > { %9213 = vmatpush3.bf16.msra.mxu1 %v10349_v27  ;;  %9233 = vmatpush3.bf16.msra.mxu0 %v10350_v48  ;;  %v10384_v27 = vld [vmem:[#allocation8 + $0x6d8] sm:$0xff]   ;;  %v10385_v48 = vld [vmem:[#allocation8 + $0x6a0] sm:$0xff]  }
 0x2dc   : > { %9214 = vmatprep.subr.bf16.mxu1 %v10914_v0  ;;  %9234 = vmatprep.subr.bf16.mxu0 %v10914_v0 }
 0x2df   : > { %9215 = vmatpush3.bf16.msra.mxu1 %v10351_v49  ;;  %9235 = vmatpush3.bf16.msra.mxu0 %v10352_v50  ;;  %v10386_v49 = vld [vmem:[#allocation8 + $0x6e0] sm:$0xff]   ;;  %v10387_v50 = vld [vmem:[#allocation8 + $0x6a8] sm:$0xff]  }
 0x2e0   : > { %9216 = vmatprep.subr.bf16.mxu1 %v10914_v0  ;;  %9236 = vmatprep.subr.bf16.mxu0 %v10914_v0 }
 0x2e3   : > { %9217 = vmatpush3.bf16.msra.mxu1 %v10353_v51  ;;  %9237 = vmatpush3.bf16.msra.mxu0 %v10354_v52  ;;  %v10388_v51 = vld [vmem:[#allocation8 + $0x6e8] sm:$0xff]  }
 0x2e4   : > { %9218 = vmatprep.subr.bf16.mxu1 %v10914_v0  ;;  %9238 = vmatprep.subr.bf16.mxu0 %v10914_v0 }
 0x2e5   : > { %v1428_v55 = vpop.f32.mrb[16].mxu1  ;;  %v1536_v56 = vpop.f32.mrb[24].mxu0 }
 0x2e6   : > { %v1434_v57 = vadd.f32 %v1428_v55, %v1326_v35  ;;  %v8946_v58 = vpop.f32.mrb[17].mxu1  ;;  %v8966_v59 = vpop.f32.mrb[25].mxu0  ;;  %v10375_v35 = vld [vmem:[#allocation8 + $0x638] sm:$0xff]  }
 0x2e7   : > { %v1431_v60 = vpop.f32.mrb[18].mxu1  ;;  %v1539_v61 = vpop.f32.mrb[26].mxu0  ;;  %9219 = vmatpush3.bf16.msra.mxu1 %v10355_v53  ;;  %9239 = vmatpush3.bf16.msra.mxu0 %v10356_v54  ;;  %v10389_v59 = vld [vmem:[#allocation8 + $0x6b0] sm:$0xff]  }
 0x2e8   : > { %v1542_v1 = vadd.f32 %v1536_v56, %v1434_v57  ;;  %v8947_v2 = vpop.f32.mrb[19].mxu1  ;;  %v8967_v3 = vpop.f32.mrb[27].mxu0  ;;  %9220 = vmatprep.subr.bf16.mxu1 %v10914_v0  ;;  %9240 = vmatprep.subr.bf16.mxu0 %v10914_v0  ;;  %v10390_v60 = vld [vmem:[#allocation8 + $0x6f0] sm:$0xff]  }
 0x2e9   : > { %v10392_v2 = vld [vmem:[#allocation8 + $0x6f8] sm:$0xff]   ;;  %v3271_v3 = vld [vmem:[#allocation2 + $0x1a] sm:$0x1] }
 0x2ea   : > { %v3272_v7 = vpack.c.bf16 %v3271_v3, %v3271_v3  ;;  %v10426_v3 = vld [vmem:[#allocation8 + $0x840] sm:$0xff]  }
 0x2eb   : > { %9221 = vmatpush3.bf16.msra.mxu1 %v10357_v62  ;;  %9241 = vmatpush3.bf16.msra.mxu0 %v10358_v63 }
 0x2ec   : > { %9222 = vmatprep.subr.bf16.mxu1 %v10914_v0  ;;  %9242 = vmatprep.subr.bf16.mxu0 %v10914_v0 }
 0x2ef   : > { %9223 = vmatpush3.bf16.msra.mxu1 %v10359_v4  ;;  %9243 = vmatpush3.bf16.msra.mxu0 %v10360_v5  ;;  %v3379_v4 = vld [vmem:[#allocation2 + $0x1b] sm:$0x1]  ;;  %v10393_v5 = vld [vmem:[#allocation8 + $0x700] sm:$0xff]  }
 0x2f0   : > { %9248 = vmatprep.subr.bf16.mxu1 %v10914_v0  ;;  %9268 = vmatprep.subr.bf16.mxu0 %v10914_v0 }
 0x2f2   : > { %9225 = vmatmul.mubr.bf16.vlgmr.msra.gmra.mrb[44].mxu1 %v2840_v10  ;;  %9245 = vmatmul.mubr.bf16.vlgmr.msra.gmra.mrb[52].mxu0 %v2948_v11  ;;  %v10396_v10 = vld [vmem:[#allocation8 + $0x748] sm:$0xff]   ;;  %v10397_v11 = vld [vmem:[#allocation8 + $0x710] sm:$0xff]  }
 0x2f3   : > { %9249 = vmatpush3.bf16.msra.mxu1 %v10361_v8  ;;  %9269 = vmatpush3.bf16.msra.mxu0 %v10362_v9  ;;  %v3380_v8 = vpack.c.bf16 %v3379_v4, %v3379_v4  ;;  %v10395_v9 = vld [vmem:[#allocation8 + $0x708] sm:$0xff]  }
 0x2f4   : > { %9250 = vmatprep.subr.bf16.mxu1 %v10914_v0  ;;  %9270 = vmatprep.subr.bf16.mxu0 %v10914_v0 }
 0x2f5   : > { %9264 = vmatprep.mubr.msk.bf16.mxu1 %vm10915_vm2, %v10914_v0  ;;  %9284 = vmatprep.mubr.msk.bf16.mxu0 %vm10915_vm2, %v10914_v0 }
 0x2f7   : > { %9251 = vmatpush3.bf16.msra.mxu1 %v10363_v12  ;;  %9271 = vmatpush3.bf16.msra.mxu0 %v10364_v13  ;;  %v10398_v12 = vld [vmem:[#allocation8 + $0x750] sm:$0xff]   ;;  %v10399_v13 = vld [vmem:[#allocation8 + $0x718] sm:$0xff]  }
 0x2f8   : > { %9252 = vmatprep.subr.bf16.mxu1 %v10914_v0  ;;  %9272 = vmatprep.subr.bf16.mxu0 %v10914_v0 }
 0x2fb   : > { %9253 = vmatpush3.bf16.msra.mxu1 %v10365_v14  ;;  %9273 = vmatpush3.bf16.msra.mxu0 %v10366_v15  ;;  %v10400_v14 = vld [vmem:[#allocation8 + $0x758] sm:$0xff]   ;;  %v10401_v15 = vld [vmem:[#allocation8 + $0x720] sm:$0xff]  }
 0x2fc   : > { %9254 = vmatprep.subr.bf16.mxu1 %v10914_v0  ;;  %9274 = vmatprep.subr.bf16.mxu0 %v10914_v0 }
 0x2ff   : > { %9255 = vmatpush3.bf16.msra.mxu1 %v10367_v16  ;;  %9275 = vmatpush3.bf16.msra.mxu0 %v10368_v17  ;;  %v10402_v16 = vld [vmem:[#allocation8 + $0x760] sm:$0xff]   ;;  %v10403_v17 = vld [vmem:[#allocation8 + $0x728] sm:$0xff]  }
 0x300   : > { %9256 = vmatprep.subr.bf16.mxu1 %v10914_v0  ;;  %9276 = vmatprep.subr.bf16.mxu0 %v10914_v0 }
 0x303   : > { %9257 = vmatpush3.bf16.msra.mxu1 %v10369_v18  ;;  %9277 = vmatpush3.bf16.msra.mxu0 %v10370_v19  ;;  %v10404_v18 = vld [vmem:[#allocation8 + $0x768] sm:$0xff]  }
 0x304   : > { %9258 = vmatprep.subr.bf16.mxu1 %v10914_v0  ;;  %9278 = vmatprep.subr.bf16.mxu0 %v10914_v0 }
 0x305   : > { %v1644_v22 = vpop.f32.mrb[20].mxu1  ;;  %v1752_v23 = vpop.f32.mrb[28].mxu0 }
 0x306   : > { %v1650_v24 = vadd.f32 %v1644_v22, %v1542_v1  ;;  %v8986_v25 = vpop.f32.mrb[21].mxu1  ;;  %v9006_v26 = vpop.f32.mrb[29].mxu0  ;;  %v10391_v1 = vld [vmem:[#allocation8 + $0x6b8] sm:$0xff]  }
 0x307   : > { %v1647_v28 = vpop.f32.mrb[22].mxu1  ;;  %v1755_v29 = vpop.f32.mrb[30].mxu0  ;;  %9259 = vmatpush3.bf16.msra.mxu1 %v10371_v20  ;;  %9279 = vmatpush3.bf16.msra.mxu0 %v10372_v21  ;;  %v10405_v26 = vld [vmem:[#allocation8 + $0x730] sm:$0xff]  }
 0x308   : > { %v1758_v32 = vadd.f32 %v1752_v23, %v1650_v24  ;;  %v8987_v33 = vpop.f32.mrb[23].mxu1  ;;  %v9007_v34 = vpop.f32.mrb[31].mxu0  ;;  %9260 = vmatprep.subr.bf16.mxu1 %v10914_v0  ;;  %9280 = vmatprep.subr.bf16.mxu0 %v10914_v0  ;;  %v10406_v28 = vld [vmem:[#allocation8 + $0x770] sm:$0xff]  }
 0x309   : > { %v10408_v33 = vld [vmem:[#allocation8 + $0x778] sm:$0xff]  }
 0x30a   : > { %v3487_v34 = vld [vmem:[#allocation2 + $0x1c] sm:$0x1] }
 0x30b   : > { %9261 = vmatpush3.bf16.msra.mxu1 %v10373_v30  ;;  %9281 = vmatpush3.bf16.msra.mxu0 %v10374_v31  ;;  %v3488_v38 = vpack.c.bf16 %v3487_v34, %v3487_v34  ;;  %v10442_v34 = vld [vmem:[#allocation8 + $0x8c0] sm:$0xff]  }
 0x30c   : > { %9262 = vmatprep.subr.bf16.mxu1 %v10914_v0  ;;  %9282 = vmatprep.subr.bf16.mxu0 %v10914_v0 }
 0x30f   : > { %9263 = vmatpush3.bf16.msra.mxu1 %v10375_v35  ;;  %9283 = vmatpush3.bf16.msra.mxu0 %v10376_v36  ;;  %v3595_v35 = vld [vmem:[#allocation2 + $0x1d] sm:$0x1]  ;;  %v10409_v36 = vld [vmem:[#allocation8 + $0x780] sm:$0xff]  }
 0x310   : > { %9288 = vmatprep.subr.bf16.mxu1 %v10914_v0  ;;  %9308 = vmatprep.subr.bf16.mxu0 %v10914_v0 }
 0x312   : > { %9265 = vmatmul.mubr.bf16.vlgmr.msra.gmra.mrb[48].mxu1 %v3056_v41  ;;  %9285 = vmatmul.mubr.bf16.vlgmr.msra.gmra.mrb[56].mxu0 %v3164_v42  ;;  %v10412_v41 = vld [vmem:[#allocation8 + $0x7c8] sm:$0xff]   ;;  %v10413_v42 = vld [vmem:[#allocation8 + $0x790] sm:$0xff]  }
 0x313   : > { %9289 = vmatpush3.bf16.msra.mxu1 %v10377_v39  ;;  %9309 = vmatpush3.bf16.msra.mxu0 %v10378_v40  ;;  %v3596_v39 = vpack.c.bf16 %v3595_v35, %v3595_v35  ;;  %v10411_v40 = vld [vmem:[#allocation8 + $0x788] sm:$0xff]  }
 0x314   : > { %9290 = vmatprep.subr.bf16.mxu1 %v10914_v0  ;;  %9310 = vmatprep.subr.bf16.mxu0 %v10914_v0 }
 0x315   : > { %9304 = vmatprep.mubr.msk.bf16.mxu1 %vm10915_vm2, %v10914_v0  ;;  %9324 = vmatprep.mubr.msk.bf16.mxu0 %vm10915_vm2, %v10914_v0 }
 0x317   : > { %9291 = vmatpush3.bf16.msra.mxu1 %v10379_v43  ;;  %9311 = vmatpush3.bf16.msra.mxu0 %v10380_v44  ;;  %v10414_v43 = vld [vmem:[#allocation8 + $0x7d0] sm:$0xff]   ;;  %v10415_v44 = vld [vmem:[#allocation8 + $0x798] sm:$0xff]  }
 0x318   : > { %9292 = vmatprep.subr.bf16.mxu1 %v10914_v0  ;;  %9312 = vmatprep.subr.bf16.mxu0 %v10914_v0 }
 0x31b   : > { %9293 = vmatpush3.bf16.msra.mxu1 %v10381_v45  ;;  %9313 = vmatpush3.bf16.msra.mxu0 %v10382_v46  ;;  %v10416_v45 = vld [vmem:[#allocation8 + $0x7d8] sm:$0xff]   ;;  %v10417_v46 = vld [vmem:[#allocation8 + $0x7a0] sm:$0xff]  }
 0x31c   : > { %9294 = vmatprep.subr.bf16.mxu1 %v10914_v0  ;;  %9314 = vmatprep.subr.bf16.mxu0 %v10914_v0 }
 0x31f   : > { %9295 = vmatpush3.bf16.msra.mxu1 %v10383_v47  ;;  %9315 = vmatpush3.bf16.msra.mxu0 %v10384_v27  ;;  %v10418_v47 = vld [vmem:[#allocation8 + $0x7e0] sm:$0xff]   ;;  %v10419_v27 = vld [vmem:[#allocation8 + $0x7a8] sm:$0xff]  }
 0x320   : > { %9296 = vmatprep.subr.bf16.mxu1 %v10914_v0  ;;  %9316 = vmatprep.subr.bf16.mxu0 %v10914_v0 }
 0x323   : > { %9297 = vmatpush3.bf16.msra.mxu1 %v10385_v48  ;;  %9317 = vmatpush3.bf16.msra.mxu0 %v10386_v49  ;;  %v10420_v48 = vld [vmem:[#allocation8 + $0x7e8] sm:$0xff]  }
 0x324   : > { %9298 = vmatprep.subr.bf16.mxu1 %v10914_v0  ;;  %9318 = vmatprep.subr.bf16.mxu0 %v10914_v0 }
 0x325   : > { %v1860_v52 = vpop.f32.mrb[24].mxu1  ;;  %v1968_v53 = vpop.f32.mrb[32].mxu0 }
 0x326   : > { %v1866_v54 = vadd.f32 %v1860_v52, %v1758_v32  ;;  %v9026_v55 = vpop.f32.mrb[25].mxu1  ;;  %v9046_v56 = vpop.f32.mrb[33].mxu0  ;;  %v10407_v32 = vld [vmem:[#allocation8 + $0x738] sm:$0xff]  }
 0x327   : > { %v1863_v57 = vpop.f32.mrb[26].mxu1  ;;  %v1971_v58 = vpop.f32.mrb[34].mxu0  ;;  %9299 = vmatpush3.bf16.msra.mxu1 %v10387_v50  ;;  %9319 = vmatpush3.bf16.msra.mxu0 %v10388_v51  ;;  %v10421_v56 = vld [vmem:[#allocation8 + $0x7b0] sm:$0xff]  }
 0x328   : > { %v1974_v61 = vadd.f32 %v1968_v53, %v1866_v54  ;;  %v9027_v62 = vpop.f32.mrb[27].mxu1  ;;  %v9047_v63 = vpop.f32.mrb[35].mxu0  ;;  %9300 = vmatprep.subr.bf16.mxu1 %v10914_v0  ;;  %9320 = vmatprep.subr.bf16.mxu0 %v10914_v0  ;;  %v10422_v57 = vld [vmem:[#allocation8 + $0x7f0] sm:$0xff]  }
 0x329   : > { %v10424_v62 = vld [vmem:[#allocation8 + $0x7f8] sm:$0xff]  }
 0x32a   : > { %v3703_v63 = vld [vmem:[#allocation2 + $0x1e] sm:$0x1] }
 0x32b   : > { %9301 = vmatpush3.bf16.msra.mxu1 %v10389_v59  ;;  %9321 = vmatpush3.bf16.msra.mxu0 %v10390_v60  ;;  %v3704_v4 = vpack.c.bf16 %v3703_v63, %v3703_v63  ;;  %v10458_v63 = vld [vmem:[#allocation8 + $0x940] sm:$0xff]  }
 0x32c   : > { %9302 = vmatprep.subr.bf16.mxu1 %v10914_v0  ;;  %9322 = vmatprep.subr.bf16.mxu0 %v10914_v0 }
 0x32f   : > { %9303 = vmatpush3.bf16.msra.mxu1 %v10391_v1  ;;  %9323 = vmatpush3.bf16.msra.mxu0 %v10392_v2  ;;  %v3811_v1 = vld [vmem:[#allocation2 + $0x1f] sm:$0x1]  ;;  %v10425_v2 = vld [vmem:[#allocation8 + $0x800] sm:$0xff]  }
 0x330   : > { %9328 = vmatprep.subr.bf16.mxu1 %v10914_v0  ;;  %9348 = vmatprep.subr.bf16.mxu0 %v10914_v0 }
 0x332   : > { %9305 = vmatmul.mubr.bf16.vlgmr.msra.gmra.mrb[52].mxu1 %v3272_v7  ;;  %9325 = vmatmul.mubr.bf16.vlgmr.msra.gmra.mrb[60].mxu0 %v3380_v8  ;;  %v10428_v7 = vld [vmem:[#allocation8 + $0x848] sm:$0xff]   ;;  %v10429_v8 = vld [vmem:[#allocation8 + $0x810] sm:$0xff]  }
 0x333   : > { %9329 = vmatpush3.bf16.msra.mxu1 %v10393_v5  ;;  %9349 = vmatpush3.bf16.msra.mxu0 %v10394_v6  ;;  %v3812_v5 = vpack.c.bf16 %v3811_v1, %v3811_v1  ;;  %v10427_v6 = vld [vmem:[#allocation8 + $0x808] sm:$0xff]  }
 0x334   : > { %9330 = vmatprep.subr.bf16.mxu1 %v10914_v0  ;;  %9350 = vmatprep.subr.bf16.mxu0 %v10914_v0 }
 0x335   : > { %9344 = vmatprep.mubr.msk.bf16.mxu1 %vm10915_vm2, %v10914_v0  ;;  %9364 = vmatprep.mubr.msk.bf16.mxu0 %vm10915_vm2, %v10914_v0 }
 0x337   : > { %9331 = vmatpush3.bf16.msra.mxu1 %v10395_v9  ;;  %9351 = vmatpush3.bf16.msra.mxu0 %v10396_v10  ;;  %v10430_v9 = vld [vmem:[#allocation8 + $0x850] sm:$0xff]   ;;  %v10431_v10 = vld [vmem:[#allocation8 + $0x818] sm:$0xff]  }
 0x338   : > { %9332 = vmatprep.subr.bf16.mxu1 %v10914_v0  ;;  %9352 = vmatprep.subr.bf16.mxu0 %v10914_v0 }
 0x33b   : > { %9333 = vmatpush3.bf16.msra.mxu1 %v10397_v11  ;;  %9353 = vmatpush3.bf16.msra.mxu0 %v10398_v12  ;;  %v10432_v11 = vld [vmem:[#allocation8 + $0x858] sm:$0xff]   ;;  %v10433_v12 = vld [vmem:[#allocation8 + $0x820] sm:$0xff]  }
 0x33c   : > { %9334 = vmatprep.subr.bf16.mxu1 %v10914_v0  ;;  %9354 = vmatprep.subr.bf16.mxu0 %v10914_v0 }
 0x33f   : > { %9335 = vmatpush3.bf16.msra.mxu1 %v10399_v13  ;;  %9355 = vmatpush3.bf16.msra.mxu0 %v10400_v14  ;;  %v10434_v13 = vld [vmem:[#allocation8 + $0x860] sm:$0xff]   ;;  %v10435_v14 = vld [vmem:[#allocation8 + $0x828] sm:$0xff]  }
 0x340   : > { %9336 = vmatprep.subr.bf16.mxu1 %v10914_v0  ;;  %9356 = vmatprep.subr.bf16.mxu0 %v10914_v0 }
 0x343   : > { %9337 = vmatpush3.bf16.msra.mxu1 %v10401_v15  ;;  %9357 = vmatpush3.bf16.msra.mxu0 %v10402_v16  ;;  %v10436_v15 = vld [vmem:[#allocation8 + $0x868] sm:$0xff]  }
 0x344   : > { %9338 = vmatprep.subr.bf16.mxu1 %v10914_v0  ;;  %9358 = vmatprep.subr.bf16.mxu0 %v10914_v0 }
 0x345   : > { %v2076_v19 = vpop.f32.mrb[28].mxu1  ;;  %v2184_v20 = vpop.f32.mrb[36].mxu0 }
 0x346   : > { %v2082_v21 = vadd.f32 %v2076_v19, %v1974_v61  ;;  %v9066_v22 = vpop.f32.mrb[29].mxu1  ;;  %v9086_v23 = vpop.f32.mrb[37].mxu0  ;;  %v10423_v61 = vld [vmem:[#allocation8 + $0x7b8] sm:$0xff]  }
 0x347   : > { %v2079_v24 = vpop.f32.mrb[30].mxu1  ;;  %v2187_v25 = vpop.f32.mrb[38].mxu0  ;;  %9339 = vmatpush3.bf16.msra.mxu1 %v10403_v17  ;;  %9359 = vmatpush3.bf16.msra.mxu0 %v10404_v18  ;;  %v10437_v23 = vld [vmem:[#allocation8 + $0x830] sm:$0xff]  }
 0x348   : > { %v2190_v29 = vadd.f32 %v2184_v20, %v2082_v21  ;;  %v9067_v30 = vpop.f32.mrb[31].mxu1  ;;  %v9087_v31 = vpop.f32.mrb[39].mxu0  ;;  %9340 = vmatprep.subr.bf16.mxu1 %v10914_v0  ;;  %9360 = vmatprep.subr.bf16.mxu0 %v10914_v0  ;;  %v10438_v24 = vld [vmem:[#allocation8 + $0x870] sm:$0xff]  }
 0x349   : > { %v10440_v30 = vld [vmem:[#allocation8 + $0x878] sm:$0xff]  }
 0x34a   : > { %v3919_v31 = vld [vmem:[#allocation2 + $0x20] sm:$0x1] }
 0x34b   : > { %9341 = vmatpush3.bf16.msra.mxu1 %v10405_v26  ;;  %9361 = vmatpush3.bf16.msra.mxu0 %v10406_v28  ;;  %v3920_v35 = vpack.c.bf16 %v3919_v31, %v3919_v31  ;;  %v10474_v31 = vld [vmem:[#allocation8 + $0x9c0] sm:$0xff]  }
 0x34c   : > { %9342 = vmatprep.subr.bf16.mxu1 %v10914_v0  ;;  %9362 = vmatprep.subr.bf16.mxu0 %v10914_v0 }
 0x34f   : > { %9343 = vmatpush3.bf16.msra.mxu1 %v10407_v32  ;;  %9363 = vmatpush3.bf16.msra.mxu0 %v10408_v33  ;;  %v4027_v32 = vld [vmem:[#allocation2 + $0x21] sm:$0x1]  ;;  %v10441_v33 = vld [vmem:[#allocation8 + $0x880] sm:$0xff]  }
 0x350   : > { %9368 = vmatprep.subr.bf16.mxu1 %v10914_v0  ;;  %9388 = vmatprep.subr.bf16.mxu0 %v10914_v0 }
 0x352   : > { %9345 = vmatmul.mubr.bf16.vlgmr.msra.gmra.mrb[56].mxu1 %v3488_v38  ;;  %9365 = vmatmul.mubr.bf16.vlgmr.msra.gmra.mrb[64].mxu0 %v3596_v39  ;;  %v10444_v38 = vld [vmem:[#allocation8 + $0x8c8] sm:$0xff]   ;;  %v10445_v39 = vld [vmem:[#allocation8 + $0x890] sm:$0xff]  }
 0x353   : > { %9369 = vmatpush3.bf16.msra.mxu1 %v10409_v36  ;;  %9389 = vmatpush3.bf16.msra.mxu0 %v10410_v37  ;;  %v4028_v36 = vpack.c.bf16 %v4027_v32, %v4027_v32  ;;  %v10443_v37 = vld [vmem:[#allocation8 + $0x888] sm:$0xff]  }
 0x354   : > { %9370 = vmatprep.subr.bf16.mxu1 %v10914_v0  ;;  %9390 = vmatprep.subr.bf16.mxu0 %v10914_v0 }
 0x355   : > { %9384 = vmatprep.mubr.msk.bf16.mxu1 %vm10915_vm2, %v10914_v0  ;;  %9404 = vmatprep.mubr.msk.bf16.mxu0 %vm10915_vm2, %v10914_v0 }
 0x357   : > { %9371 = vmatpush3.bf16.msra.mxu1 %v10411_v40  ;;  %9391 = vmatpush3.bf16.msra.mxu0 %v10412_v41  ;;  %v10446_v40 = vld [vmem:[#allocation8 + $0x8d0] sm:$0xff]   ;;  %v10447_v41 = vld [vmem:[#allocation8 + $0x898] sm:$0xff]  }
 0x358   : > { %9372 = vmatprep.subr.bf16.mxu1 %v10914_v0  ;;  %9392 = vmatprep.subr.bf16.mxu0 %v10914_v0 }
 0x35b   : > { %9373 = vmatpush3.bf16.msra.mxu1 %v10413_v42  ;;  %9393 = vmatpush3.bf16.msra.mxu0 %v10414_v43  ;;  %v10448_v42 = vld [vmem:[#allocation8 + $0x8d8] sm:$0xff]   ;;  %v10449_v43 = vld [vmem:[#allocation8 + $0x8a0] sm:$0xff]  }
 0x35c   : > { %9374 = vmatprep.subr.bf16.mxu1 %v10914_v0  ;;  %9394 = vmatprep.subr.bf16.mxu0 %v10914_v0 }
 0x35f   : > { %9375 = vmatpush3.bf16.msra.mxu1 %v10415_v44  ;;  %9395 = vmatpush3.bf16.msra.mxu0 %v10416_v45  ;;  %v10450_v44 = vld [vmem:[#allocation8 + $0x8e0] sm:$0xff]   ;;  %v10451_v45 = vld [vmem:[#allocation8 + $0x8a8] sm:$0xff]  }
 0x360   : > { %9376 = vmatprep.subr.bf16.mxu1 %v10914_v0  ;;  %9396 = vmatprep.subr.bf16.mxu0 %v10914_v0 }
 0x363   : > { %9377 = vmatpush3.bf16.msra.mxu1 %v10417_v46  ;;  %9397 = vmatpush3.bf16.msra.mxu0 %v10418_v47  ;;  %v10452_v46 = vld [vmem:[#allocation8 + $0x8e8] sm:$0xff]  }
 0x364   : > { %9378 = vmatprep.subr.bf16.mxu1 %v10914_v0  ;;  %9398 = vmatprep.subr.bf16.mxu0 %v10914_v0 }
 0x365   : > { %v2292_v49 = vpop.f32.mrb[32].mxu1  ;;  %v2400_v50 = vpop.f32.mrb[40].mxu0 }
 0x366   : > { %v2298_v51 = vadd.f32 %v2292_v49, %v2190_v29  ;;  %v9106_v52 = vpop.f32.mrb[33].mxu1  ;;  %v9126_v53 = vpop.f32.mrb[41].mxu0  ;;  %v10439_v29 = vld [vmem:[#allocation8 + $0x838] sm:$0xff]  }
 0x367   : > { %v2295_v54 = vpop.f32.mrb[34].mxu1  ;;  %v2403_v55 = vpop.f32.mrb[42].mxu0  ;;  %9379 = vmatpush3.bf16.msra.mxu1 %v10419_v27  ;;  %9399 = vmatpush3.bf16.msra.mxu0 %v10420_v48  ;;  %v10453_v53 = vld [vmem:[#allocation8 + $0x8b0] sm:$0xff]  }
 0x368   : > { %v2406_v58 = vadd.f32 %v2400_v50, %v2298_v51  ;;  %v9107_v59 = vpop.f32.mrb[35].mxu1  ;;  %v9127_v60 = vpop.f32.mrb[43].mxu0  ;;  %9380 = vmatprep.subr.bf16.mxu1 %v10914_v0  ;;  %9400 = vmatprep.subr.bf16.mxu0 %v10914_v0  ;;  %v10454_v54 = vld [vmem:[#allocation8 + $0x8f0] sm:$0xff]  }
 0x369   : > { %v10456_v59 = vld [vmem:[#allocation8 + $0x8f8] sm:$0xff]  }
 0x36a   : > { %v4135_v60 = vld [vmem:[#allocation2 + $0x22] sm:$0x1] }
 0x36b   : > { %9381 = vmatpush3.bf16.msra.mxu1 %v10421_v56  ;;  %9401 = vmatpush3.bf16.msra.mxu0 %v10422_v57  ;;  %v4136_v1 = vpack.c.bf16 %v4135_v60, %v4135_v60  ;;  %v10490_v60 = vld [vmem:[#allocation8 + $0xa40] sm:$0xff]  }
 0x36c   : > { %9382 = vmatprep.subr.bf16.mxu1 %v10914_v0  ;;  %9402 = vmatprep.subr.bf16.mxu0 %v10914_v0 }
 0x36f   : > { %9383 = vmatpush3.bf16.msra.mxu1 %v10423_v61  ;;  %9403 = vmatpush3.bf16.msra.mxu0 %v10424_v62  ;;  %v4243_v61 = vld [vmem:[#allocation2 + $0x23] sm:$0x1]  ;;  %v10457_v62 = vld [vmem:[#allocation8 + $0x900] sm:$0xff]  }
 0x370   : > { %9408 = vmatprep.subr.bf16.mxu1 %v10914_v0  ;;  %9428 = vmatprep.subr.bf16.mxu0 %v10914_v0 }
 0x372   : > { %9385 = vmatmul.mubr.bf16.vlgmr.msra.gmra.mrb[60].mxu1 %v3704_v4  ;;  %9405 = vmatmul.mubr.bf16.vlgmr.msra.gmra.mrb[68].mxu0 %v3812_v5  ;;  %v10460_v4 = vld [vmem:[#allocation8 + $0x948] sm:$0xff]   ;;  %v10461_v5 = vld [vmem:[#allocation8 + $0x910] sm:$0xff]  }
 0x373   : > { %9409 = vmatpush3.bf16.msra.mxu1 %v10425_v2  ;;  %9429 = vmatpush3.bf16.msra.mxu0 %v10426_v3  ;;  %v4244_v2 = vpack.c.bf16 %v4243_v61, %v4243_v61  ;;  %v10459_v3 = vld [vmem:[#allocation8 + $0x908] sm:$0xff]  }
 0x374   : > { %9410 = vmatprep.subr.bf16.mxu1 %v10914_v0  ;;  %9430 = vmatprep.subr.bf16.mxu0 %v10914_v0 }
 0x375   : > { %9424 = vmatprep.mubr.msk.bf16.mxu1 %vm10915_vm2, %v10914_v0  ;;  %9444 = vmatprep.mubr.msk.bf16.mxu0 %vm10915_vm2, %v10914_v0 }
 0x377   : > { %9411 = vmatpush3.bf16.msra.mxu1 %v10427_v6  ;;  %9431 = vmatpush3.bf16.msra.mxu0 %v10428_v7  ;;  %v10462_v6 = vld [vmem:[#allocation8 + $0x950] sm:$0xff]   ;;  %v10463_v7 = vld [vmem:[#allocation8 + $0x918] sm:$0xff]  }
 0x378   : > { %9412 = vmatprep.subr.bf16.mxu1 %v10914_v0  ;;  %9432 = vmatprep.subr.bf16.mxu0 %v10914_v0 }
 0x37b   : > { %9413 = vmatpush3.bf16.msra.mxu1 %v10429_v8  ;;  %9433 = vmatpush3.bf16.msra.mxu0 %v10430_v9  ;;  %v10464_v8 = vld [vmem:[#allocation8 + $0x958] sm:$0xff]   ;;  %v10465_v9 = vld [vmem:[#allocation8 + $0x920] sm:$0xff]  }
 0x37c   : > { %9414 = vmatprep.subr.bf16.mxu1 %v10914_v0  ;;  %9434 = vmatprep.subr.bf16.mxu0 %v10914_v0 }
 0x37f   : > { %9415 = vmatpush3.bf16.msra.mxu1 %v10431_v10  ;;  %9435 = vmatpush3.bf16.msra.mxu0 %v10432_v11  ;;  %v10466_v10 = vld [vmem:[#allocation8 + $0x960] sm:$0xff]   ;;  %v10467_v11 = vld [vmem:[#allocation8 + $0x928] sm:$0xff]  }
 0x380   : > { %9416 = vmatprep.subr.bf16.mxu1 %v10914_v0  ;;  %9436 = vmatprep.subr.bf16.mxu0 %v10914_v0 }
 0x383   : > { %9417 = vmatpush3.bf16.msra.mxu1 %v10433_v12  ;;  %9437 = vmatpush3.bf16.msra.mxu0 %v10434_v13  ;;  %v10468_v12 = vld [vmem:[#allocation8 + $0x968] sm:$0xff]  }
 0x384   : > { %9418 = vmatprep.subr.bf16.mxu1 %v10914_v0  ;;  %9438 = vmatprep.subr.bf16.mxu0 %v10914_v0 }
 0x385   : > { %v2508_v16 = vpop.f32.mrb[36].mxu1  ;;  %v2616_v17 = vpop.f32.mrb[44].mxu0 }
 0x386   : > { %v2514_v18 = vadd.f32 %v2508_v16, %v2406_v58  ;;  %v9146_v19 = vpop.f32.mrb[37].mxu1  ;;  %v9166_v20 = vpop.f32.mrb[45].mxu0  ;;  %v10455_v58 = vld [vmem:[#allocation8 + $0x8b8] sm:$0xff]  }
 0x387   : > { %v2511_v21 = vpop.f32.mrb[38].mxu1  ;;  %v2619_v22 = vpop.f32.mrb[46].mxu0  ;;  %9419 = vmatpush3.bf16.msra.mxu1 %v10435_v14  ;;  %9439 = vmatpush3.bf16.msra.mxu0 %v10436_v15  ;;  %v10469_v20 = vld [vmem:[#allocation8 + $0x930] sm:$0xff]  }
 0x388   : > { %v2622_v25 = vadd.f32 %v2616_v17, %v2514_v18  ;;  %v9147_v26 = vpop.f32.mrb[39].mxu1  ;;  %v9167_v28 = vpop.f32.mrb[47].mxu0  ;;  %9420 = vmatprep.subr.bf16.mxu1 %v10914_v0  ;;  %9440 = vmatprep.subr.bf16.mxu0 %v10914_v0  ;;  %v10470_v21 = vld [vmem:[#allocation8 + $0x970] sm:$0xff]  }
 0x389   : > { %v10472_v26 = vld [vmem:[#allocation8 + $0x978] sm:$0xff]   ;;  %v4351_v28 = vld [vmem:[#allocation2 + $0x24] sm:$0x1] }
 0x38a   : > { %v4352_v32 = vpack.c.bf16 %v4351_v28, %v4351_v28  ;;  %v10506_v28 = vld [vmem:[#allocation8 + $0xac0] sm:$0xff]  }
 0x38b   : > { %9421 = vmatpush3.bf16.msra.mxu1 %v10437_v23  ;;  %9441 = vmatpush3.bf16.msra.mxu0 %v10438_v24 }
 0x38c   : > { %9422 = vmatprep.subr.bf16.mxu1 %v10914_v0  ;;  %9442 = vmatprep.subr.bf16.mxu0 %v10914_v0 }
 0x38f   : > { %9423 = vmatpush3.bf16.msra.mxu1 %v10439_v29  ;;  %9443 = vmatpush3.bf16.msra.mxu0 %v10440_v30  ;;  %v4459_v29 = vld [vmem:[#allocation2 + $0x25] sm:$0x1] }
 0x390   : > { %9448 = vmatprep.subr.bf16.mxu1 %v10914_v0  ;;  %9468 = vmatprep.subr.bf16.mxu0 %v10914_v0  ;;  %v10473_v30 = vld [vmem:[#allocation8 + $0x980] sm:$0xff]  }
 0x392   : > { %9425 = vmatmul.mubr.bf16.vlgmr.msra.gmra.mrb[64].mxu1 %v3920_v35  ;;  %9445 = vmatmul.mubr.bf16.vlgmr.msra.gmra.mrb[72].mxu0 %v4028_v36  ;;  %v10476_v35 = vld [vmem:[#allocation8 + $0x9c8] sm:$0xff]   ;;  %v10477_v36 = vld [vmem:[#allocation8 + $0x990] sm:$0xff]  }
 0x393   : > { %9449 = vmatpush3.bf16.msra.mxu1 %v10441_v33  ;;  %9469 = vmatpush3.bf16.msra.mxu0 %v10442_v34  ;;  %v4460_v33 = vpack.c.bf16 %v4459_v29, %v4459_v29  ;;  %v10475_v34 = vld [vmem:[#allocation8 + $0x988] sm:$0xff]  }
 0x394   : > { %9450 = vmatprep.subr.bf16.mxu1 %v10914_v0  ;;  %9470 = vmatprep.subr.bf16.mxu0 %v10914_v0 }
 0x395   : > { %9464 = vmatprep.mubr.msk.bf16.mxu1 %vm10915_vm2, %v10914_v0  ;;  %9484 = vmatprep.mubr.msk.bf16.mxu0 %vm10915_vm2, %v10914_v0 }
 0x397   : > { %9451 = vmatpush3.bf16.msra.mxu1 %v10443_v37  ;;  %9471 = vmatpush3.bf16.msra.mxu0 %v10444_v38  ;;  %v10478_v37 = vld [vmem:[#allocation8 + $0x9d0] sm:$0xff]   ;;  %v10479_v38 = vld [vmem:[#allocation8 + $0x998] sm:$0xff]  }
 0x398   : > { %9452 = vmatprep.subr.bf16.mxu1 %v10914_v0  ;;  %9472 = vmatprep.subr.bf16.mxu0 %v10914_v0 }
 0x39b   : > { %9453 = vmatpush3.bf16.msra.mxu1 %v10445_v39  ;;  %9473 = vmatpush3.bf16.msra.mxu0 %v10446_v40  ;;  %v10480_v39 = vld [vmem:[#allocation8 + $0x9d8] sm:$0xff]   ;;  %v10481_v40 = vld [vmem:[#allocation8 + $0x9a0] sm:$0xff]  }
 0x39c   : > { %9454 = vmatprep.subr.bf16.mxu1 %v10914_v0  ;;  %9474 = vmatprep.subr.bf16.mxu0 %v10914_v0 }
 0x39f   : > { %9455 = vmatpush3.bf16.msra.mxu1 %v10447_v41  ;;  %9475 = vmatpush3.bf16.msra.mxu0 %v10448_v42  ;;  %v10482_v41 = vld [vmem:[#allocation8 + $0x9e0] sm:$0xff]   ;;  %v10483_v42 = vld [vmem:[#allocation8 + $0x9a8] sm:$0xff]  }
 0x3a0   : > { %9456 = vmatprep.subr.bf16.mxu1 %v10914_v0  ;;  %9476 = vmatprep.subr.bf16.mxu0 %v10914_v0 }
 0x3a3   : > { %9457 = vmatpush3.bf16.msra.mxu1 %v10449_v43  ;;  %9477 = vmatpush3.bf16.msra.mxu0 %v10450_v44  ;;  %v10484_v43 = vld [vmem:[#allocation8 + $0x9e8] sm:$0xff]  }
 0x3a4   : > { %9458 = vmatprep.subr.bf16.mxu1 %v10914_v0  ;;  %9478 = vmatprep.subr.bf16.mxu0 %v10914_v0 }
 0x3a5   : > { %v2724_v47 = vpop.f32.mrb[40].mxu1  ;;  %v2832_v27 = vpop.f32.mrb[48].mxu0 }
 0x3a6   : > { %v2730_v48 = vadd.f32 %v2724_v47, %v2622_v25  ;;  %v9186_v49 = vpop.f32.mrb[41].mxu1  ;;  %v9206_v50 = vpop.f32.mrb[49].mxu0  ;;  %v10471_v25 = vld [vmem:[#allocation8 + $0x938] sm:$0xff]  }
 0x3a7   : > { %v2727_v51 = vpop.f32.mrb[42].mxu1  ;;  %v2835_v52 = vpop.f32.mrb[50].mxu0  ;;  %9459 = vmatpush3.bf16.msra.mxu1 %v10451_v45  ;;  %9479 = vmatpush3.bf16.msra.mxu0 %v10452_v46  ;;  %v10485_v50 = vld [vmem:[#allocation8 + $0x9b0] sm:$0xff]  }
 0x3a8   : > { %v2838_v55 = vadd.f32 %v2832_v27, %v2730_v48  ;;  %v9187_v56 = vpop.f32.mrb[43].mxu1  ;;  %v9207_v57 = vpop.f32.mrb[51].mxu0  ;;  %9460 = vmatprep.subr.bf16.mxu1 %v10914_v0  ;;  %9480 = vmatprep.subr.bf16.mxu0 %v10914_v0  ;;  %v10486_v51 = vld [vmem:[#allocation8 + $0x9f0] sm:$0xff]  }
 0x3a9   : > { %v10488_v56 = vld [vmem:[#allocation8 + $0x9f8] sm:$0xff]   ;;  %v4567_v57 = vld [vmem:[#allocation2 + $0x26] sm:$0x1] }
 0x3aa   : > { %v4568_v61 = vpack.c.bf16 %v4567_v57, %v4567_v57  ;;  %v10522_v57 = vld [vmem:[#allocation8 + $0xb40] sm:$0xff]  }
 0x3ab   : > { %9461 = vmatpush3.bf16.msra.mxu1 %v10453_v53  ;;  %9481 = vmatpush3.bf16.msra.mxu0 %v10454_v54 }
 0x3ac   : > { %9462 = vmatprep.subr.bf16.mxu1 %v10914_v0  ;;  %9482 = vmatprep.subr.bf16.mxu0 %v10914_v0 }
 0x3af   : > { %9463 = vmatpush3.bf16.msra.mxu1 %v10455_v58  ;;  %9483 = vmatpush3.bf16.msra.mxu0 %v10456_v59  ;;  %v4675_v58 = vld [vmem:[#allocation2 + $0x27] sm:$0x1] }
 0x3b0   : > { %9488 = vmatprep.subr.bf16.mxu1 %v10914_v0  ;;  %9508 = vmatprep.subr.bf16.mxu0 %v10914_v0  ;;  %v10489_v59 = vld [vmem:[#allocation8 + $0xa00] sm:$0xff]  }
 0x3b2   : > { %9465 = vmatmul.mubr.bf16.vlgmr.msra.gmra.mrb[68].mxu1 %v4136_v1  ;;  %9485 = vmatmul.mubr.bf16.vlgmr.msra.gmra.mrb[76].mxu0 %v4244_v2  ;;  %v10492_v1 = vld [vmem:[#allocation8 + $0xa48] sm:$0xff]   ;;  %v10493_v2 = vld [vmem:[#allocation8 + $0xa10] sm:$0xff]  }
 0x3b3   : > { %9489 = vmatpush3.bf16.msra.mxu1 %v10457_v62  ;;  %9509 = vmatpush3.bf16.msra.mxu0 %v10458_v63  ;;  %v4676_v62 = vpack.c.bf16 %v4675_v58, %v4675_v58  ;;  %v10491_v63 = vld [vmem:[#allocation8 + $0xa08] sm:$0xff]  }
 0x3b4   : > { %9490 = vmatprep.subr.bf16.mxu1 %v10914_v0  ;;  %9510 = vmatprep.subr.bf16.mxu0 %v10914_v0 }
 0x3b5   : > { %9504 = vmatprep.mubr.msk.bf16.mxu1 %vm10915_vm2, %v10914_v0  ;;  %9524 = vmatprep.mubr.msk.bf16.mxu0 %vm10915_vm2, %v10914_v0 }
 0x3b7   : > { %9491 = vmatpush3.bf16.msra.mxu1 %v10459_v3  ;;  %9511 = vmatpush3.bf16.msra.mxu0 %v10460_v4  ;;  %v10494_v3 = vld [vmem:[#allocation8 + $0xa50] sm:$0xff]   ;;  %v10495_v4 = vld [vmem:[#allocation8 + $0xa18] sm:$0xff]  }
 0x3b8   : > { %9492 = vmatprep.subr.bf16.mxu1 %v10914_v0  ;;  %9512 = vmatprep.subr.bf16.mxu0 %v10914_v0 }
 0x3bb   : > { %9493 = vmatpush3.bf16.msra.mxu1 %v10461_v5  ;;  %9513 = vmatpush3.bf16.msra.mxu0 %v10462_v6  ;;  %v10496_v5 = vld [vmem:[#allocation8 + $0xa58] sm:$0xff]   ;;  %v10497_v6 = vld [vmem:[#allocation8 + $0xa20] sm:$0xff]  }
 0x3bc   : > { %9494 = vmatprep.subr.bf16.mxu1 %v10914_v0  ;;  %9514 = vmatprep.subr.bf16.mxu0 %v10914_v0 }
 0x3bf   : > { %9495 = vmatpush3.bf16.msra.mxu1 %v10463_v7  ;;  %9515 = vmatpush3.bf16.msra.mxu0 %v10464_v8  ;;  %v10498_v7 = vld [vmem:[#allocation8 + $0xa60] sm:$0xff]   ;;  %v10499_v8 = vld [vmem:[#allocation8 + $0xa28] sm:$0xff]  }
 0x3c0   : > { %9496 = vmatprep.subr.bf16.mxu1 %v10914_v0  ;;  %9516 = vmatprep.subr.bf16.mxu0 %v10914_v0 }
 0x3c3   : > { %9497 = vmatpush3.bf16.msra.mxu1 %v10465_v9  ;;  %9517 = vmatpush3.bf16.msra.mxu0 %v10466_v10  ;;  %v10500_v9 = vld [vmem:[#allocation8 + $0xa68] sm:$0xff]  }
 0x3c4   : > { %9498 = vmatprep.subr.bf16.mxu1 %v10914_v0  ;;  %9518 = vmatprep.subr.bf16.mxu0 %v10914_v0 }
 0x3c5   : > { %v2940_v13 = vpop.f32.mrb[44].mxu1  ;;  %v3048_v14 = vpop.f32.mrb[52].mxu0 }
 0x3c6   : > { %v2946_v15 = vadd.f32 %v2940_v13, %v2838_v55  ;;  %v9226_v16 = vpop.f32.mrb[45].mxu1  ;;  %v9246_v17 = vpop.f32.mrb[53].mxu0  ;;  %v10487_v55 = vld [vmem:[#allocation8 + $0x9b8] sm:$0xff]  }
 0x3c7   : > { %v2943_v18 = vpop.f32.mrb[46].mxu1  ;;  %v3051_v19 = vpop.f32.mrb[54].mxu0  ;;  %9499 = vmatpush3.bf16.msra.mxu1 %v10467_v11  ;;  %9519 = vmatpush3.bf16.msra.mxu0 %v10468_v12  ;;  %v10501_v17 = vld [vmem:[#allocation8 + $0xa30] sm:$0xff]  }
 0x3c8   : > { %v3054_v22 = vadd.f32 %v3048_v14, %v2946_v15  ;;  %v9227_v23 = vpop.f32.mrb[47].mxu1  ;;  %v9247_v24 = vpop.f32.mrb[55].mxu0  ;;  %9500 = vmatprep.subr.bf16.mxu1 %v10914_v0  ;;  %9520 = vmatprep.subr.bf16.mxu0 %v10914_v0  ;;  %v10502_v18 = vld [vmem:[#allocation8 + $0xa70] sm:$0xff]  }
 0x3c9   : > { %v10504_v23 = vld [vmem:[#allocation8 + $0xa78] sm:$0xff]   ;;  %v4783_v24 = vld [vmem:[#allocation2 + $0x28] sm:$0x1] }
 0x3ca   : > { %v4784_v29 = vpack.c.bf16 %v4783_v24, %v4783_v24  ;;  %v10538_v24 = vld [vmem:[#allocation8 + $0xbc0] sm:$0xff]  }
 0x3cb   : > { %9501 = vmatpush3.bf16.msra.mxu1 %v10469_v20  ;;  %9521 = vmatpush3.bf16.msra.mxu0 %v10470_v21 }
 0x3cc   : > { %9502 = vmatprep.subr.bf16.mxu1 %v10914_v0  ;;  %9522 = vmatprep.subr.bf16.mxu0 %v10914_v0 }
 0x3cf   : > { %9503 = vmatpush3.bf16.msra.mxu1 %v10471_v25  ;;  %9523 = vmatpush3.bf16.msra.mxu0 %v10472_v26  ;;  %v4891_v25 = vld [vmem:[#allocation2 + $0x29] sm:$0x1] }
 0x3d0   : > { %9528 = vmatprep.subr.bf16.mxu1 %v10914_v0  ;;  %9548 = vmatprep.subr.bf16.mxu0 %v10914_v0  ;;  %v10505_v26 = vld [vmem:[#allocation8 + $0xa80] sm:$0xff]  }
 0x3d2   : > { %9505 = vmatmul.mubr.bf16.vlgmr.msra.gmra.mrb[72].mxu1 %v4352_v32  ;;  %9525 = vmatmul.mubr.bf16.vlgmr.msra.gmra.mrb[80].mxu0 %v4460_v33  ;;  %v10508_v32 = vld [vmem:[#allocation8 + $0xac8] sm:$0xff]   ;;  %v10509_v33 = vld [vmem:[#allocation8 + $0xa90] sm:$0xff]  }
 0x3d3   : > { %9529 = vmatpush3.bf16.msra.mxu1 %v10473_v30  ;;  %9549 = vmatpush3.bf16.msra.mxu0 %v10474_v31  ;;  %v4892_v30 = vpack.c.bf16 %v4891_v25, %v4891_v25  ;;  %v10507_v31 = vld [vmem:[#allocation8 + $0xa88] sm:$0xff]  }
 0x3d4   : > { %9530 = vmatprep.subr.bf16.mxu1 %v10914_v0  ;;  %9550 = vmatprep.subr.bf16.mxu0 %v10914_v0 }
 0x3d5   : > { %9544 = vmatprep.mubr.msk.bf16.mxu1 %vm10915_vm2, %v10914_v0  ;;  %9564 = vmatprep.mubr.msk.bf16.mxu0 %vm10915_vm2, %v10914_v0 }
 0x3d7   : > { %9531 = vmatpush3.bf16.msra.mxu1 %v10475_v34  ;;  %9551 = vmatpush3.bf16.msra.mxu0 %v10476_v35  ;;  %v10510_v34 = vld [vmem:[#allocation8 + $0xad0] sm:$0xff]   ;;  %v10511_v35 = vld [vmem:[#allocation8 + $0xa98] sm:$0xff]  }
 0x3d8   : > { %9532 = vmatprep.subr.bf16.mxu1 %v10914_v0  ;;  %9552 = vmatprep.subr.bf16.mxu0 %v10914_v0 }
 0x3db   : > { %9533 = vmatpush3.bf16.msra.mxu1 %v10477_v36  ;;  %9553 = vmatpush3.bf16.msra.mxu0 %v10478_v37  ;;  %v10512_v36 = vld [vmem:[#allocation8 + $0xad8] sm:$0xff]   ;;  %v10513_v37 = vld [vmem:[#allocation8 + $0xaa0] sm:$0xff]  }
 0x3dc   : > { %9534 = vmatprep.subr.bf16.mxu1 %v10914_v0  ;;  %9554 = vmatprep.subr.bf16.mxu0 %v10914_v0 }
 0x3df   : > { %9535 = vmatpush3.bf16.msra.mxu1 %v10479_v38  ;;  %9555 = vmatpush3.bf16.msra.mxu0 %v10480_v39  ;;  %v10514_v38 = vld [vmem:[#allocation8 + $0xae0] sm:$0xff]   ;;  %v10515_v39 = vld [vmem:[#allocation8 + $0xaa8] sm:$0xff]  }
 0x3e0   : > { %9536 = vmatprep.subr.bf16.mxu1 %v10914_v0  ;;  %9556 = vmatprep.subr.bf16.mxu0 %v10914_v0 }
 0x3e3   : > { %9537 = vmatpush3.bf16.msra.mxu1 %v10481_v40  ;;  %9557 = vmatpush3.bf16.msra.mxu0 %v10482_v41  ;;  %v10516_v40 = vld [vmem:[#allocation8 + $0xae8] sm:$0xff]  }
 0x3e4   : > { %9538 = vmatprep.subr.bf16.mxu1 %v10914_v0  ;;  %9558 = vmatprep.subr.bf16.mxu0 %v10914_v0 }
 0x3e5   : > { %v3156_v44 = vpop.f32.mrb[48].mxu1  ;;  %v3264_v45 = vpop.f32.mrb[56].mxu0 }
 0x3e6   : > { %v3162_v46 = vadd.f32 %v3156_v44, %v3054_v22  ;;  %v9266_v47 = vpop.f32.mrb[49].mxu1  ;;  %v9286_v27 = vpop.f32.mrb[57].mxu0  ;;  %v10503_v22 = vld [vmem:[#allocation8 + $0xa38] sm:$0xff]  }
 0x3e7   : > { %v3159_v48 = vpop.f32.mrb[50].mxu1  ;;  %v3267_v49 = vpop.f32.mrb[58].mxu0  ;;  %9539 = vmatpush3.bf16.msra.mxu1 %v10483_v42  ;;  %9559 = vmatpush3.bf16.msra.mxu0 %v10484_v43  ;;  %v10517_v27 = vld [vmem:[#allocation8 + $0xab0] sm:$0xff]  }
 0x3e8   : > { %v3270_v52 = vadd.f32 %v3264_v45, %v3162_v46  ;;  %v9267_v53 = vpop.f32.mrb[51].mxu1  ;;  %v9287_v54 = vpop.f32.mrb[59].mxu0  ;;  %9540 = vmatprep.subr.bf16.mxu1 %v10914_v0  ;;  %9560 = vmatprep.subr.bf16.mxu0 %v10914_v0  ;;  %v10518_v48 = vld [vmem:[#allocation8 + $0xaf0] sm:$0xff]  }
 0x3e9   : > { %v10520_v53 = vld [vmem:[#allocation8 + $0xaf8] sm:$0xff]   ;;  %v4999_v54 = vld [vmem:[#allocation2 + $0x2a] sm:$0x1] }
 0x3ea   : > { %v5000_v58 = vpack.c.bf16 %v4999_v54, %v4999_v54  ;;  %v10554_v54 = vld [vmem:[#allocation8 + $0xc40] sm:$0xff]  }
 0x3eb   : > { %9541 = vmatpush3.bf16.msra.mxu1 %v10485_v50  ;;  %9561 = vmatpush3.bf16.msra.mxu0 %v10486_v51 }
 0x3ec   : > { %9542 = vmatprep.subr.bf16.mxu1 %v10914_v0  ;;  %9562 = vmatprep.subr.bf16.mxu0 %v10914_v0 }
 0x3ef   : > { %9543 = vmatpush3.bf16.msra.mxu1 %v10487_v55  ;;  %9563 = vmatpush3.bf16.msra.mxu0 %v10488_v56  ;;  %v5107_v55 = vld [vmem:[#allocation2 + $0x2b] sm:$0x1] }
 0x3f0   : > { %9568 = vmatprep.subr.bf16.mxu1 %v10914_v0  ;;  %9588 = vmatprep.subr.bf16.mxu0 %v10914_v0  ;;  %v10521_v56 = vld [vmem:[#allocation8 + $0xb00] sm:$0xff]  }
 0x3f2   : > { %9545 = vmatmul.mubr.bf16.vlgmr.msra.gmra.mrb[76].mxu1 %v4568_v61  ;;  %9565 = vmatmul.mubr.bf16.vlgmr.msra.gmra.mrb[84].mxu0 %v4676_v62  ;;  %v10524_v61 = vld [vmem:[#allocation8 + $0xb48] sm:$0xff]   ;;  %v10525_v62 = vld [vmem:[#allocation8 + $0xb10] sm:$0xff]  }
 0x3f3   : > { %9569 = vmatpush3.bf16.msra.mxu1 %v10489_v59  ;;  %9589 = vmatpush3.bf16.msra.mxu0 %v10490_v60  ;;  %v5108_v59 = vpack.c.bf16 %v5107_v55, %v5107_v55  ;;  %v10523_v60 = vld [vmem:[#allocation8 + $0xb08] sm:$0xff]  }
 0x3f4   : > { %9570 = vmatprep.subr.bf16.mxu1 %v10914_v0  ;;  %9590 = vmatprep.subr.bf16.mxu0 %v10914_v0 }
 0x3f5   : > { %9584 = vmatprep.mubr.msk.bf16.mxu1 %vm10915_vm2, %v10914_v0  ;;  %9604 = vmatprep.mubr.msk.bf16.mxu0 %vm10915_vm2, %v10914_v0 }
 0x3f7   : > { %9571 = vmatpush3.bf16.msra.mxu1 %v10491_v63  ;;  %9591 = vmatpush3.bf16.msra.mxu0 %v10492_v1  ;;  %v10526_v63 = vld [vmem:[#allocation8 + $0xb50] sm:$0xff]   ;;  %v10527_v1 = vld [vmem:[#allocation8 + $0xb18] sm:$0xff]  }
 0x3f8   : > { %9572 = vmatprep.subr.bf16.mxu1 %v10914_v0  ;;  %9592 = vmatprep.subr.bf16.mxu0 %v10914_v0 }
 0x3fb   : > { %9573 = vmatpush3.bf16.msra.mxu1 %v10493_v2  ;;  %9593 = vmatpush3.bf16.msra.mxu0 %v10494_v3  ;;  %v10528_v2 = vld [vmem:[#allocation8 + $0xb58] sm:$0xff]   ;;  %v10529_v3 = vld [vmem:[#allocation8 + $0xb20] sm:$0xff]  }
 0x3fc   : > { %9574 = vmatprep.subr.bf16.mxu1 %v10914_v0  ;;  %9594 = vmatprep.subr.bf16.mxu0 %v10914_v0 }
 0x3ff   : > { %9575 = vmatpush3.bf16.msra.mxu1 %v10495_v4  ;;  %9595 = vmatpush3.bf16.msra.mxu0 %v10496_v5  ;;  %v10530_v4 = vld [vmem:[#allocation8 + $0xb60] sm:$0xff]   ;;  %v10531_v5 = vld [vmem:[#allocation8 + $0xb28] sm:$0xff]  }
 0x400   : > { %9576 = vmatprep.subr.bf16.mxu1 %v10914_v0  ;;  %9596 = vmatprep.subr.bf16.mxu0 %v10914_v0 }
 0x403   : > { %9577 = vmatpush3.bf16.msra.mxu1 %v10497_v6  ;;  %9597 = vmatpush3.bf16.msra.mxu0 %v10498_v7  ;;  %v10532_v6 = vld [vmem:[#allocation8 + $0xb68] sm:$0xff]  }
 0x404   : > { %9578 = vmatprep.subr.bf16.mxu1 %v10914_v0  ;;  %9598 = vmatprep.subr.bf16.mxu0 %v10914_v0 }
 0x405   : > { %v3372_v10 = vpop.f32.mrb[52].mxu1  ;;  %v3480_v11 = vpop.f32.mrb[60].mxu0 }
 0x406   : > { %v3378_v12 = vadd.f32 %v3372_v10, %v3270_v52  ;;  %v9306_v13 = vpop.f32.mrb[53].mxu1  ;;  %v9326_v14 = vpop.f32.mrb[61].mxu0  ;;  %v10519_v52 = vld [vmem:[#allocation8 + $0xab8] sm:$0xff]  }
 0x407   : > { %v3375_v15 = vpop.f32.mrb[54].mxu1  ;;  %v3483_v16 = vpop.f32.mrb[62].mxu0  ;;  %9579 = vmatpush3.bf16.msra.mxu1 %v10499_v8  ;;  %9599 = vmatpush3.bf16.msra.mxu0 %v10500_v9  ;;  %v10533_v14 = vld [vmem:[#allocation8 + $0xb30] sm:$0xff]  }
 0x408   : > { %v3486_v19 = vadd.f32 %v3480_v11, %v3378_v12  ;;  %v9307_v20 = vpop.f32.mrb[55].mxu1  ;;  %v9327_v21 = vpop.f32.mrb[63].mxu0  ;;  %9580 = vmatprep.subr.bf16.mxu1 %v10914_v0  ;;  %9600 = vmatprep.subr.bf16.mxu0 %v10914_v0  ;;  %v10534_v15 = vld [vmem:[#allocation8 + $0xb70] sm:$0xff]  }
 0x409   : > { %v10536_v20 = vld [vmem:[#allocation8 + $0xb78] sm:$0xff]   ;;  %v5215_v21 = vld [vmem:[#allocation2 + $0x2c] sm:$0x1] }
 0x40a   : > { %v5216_v25 = vpack.c.bf16 %v5215_v21, %v5215_v21  ;;  %v10570_v21 = vld [vmem:[#allocation8 + $0xcc0] sm:$0xff]  }
 0x40b   : > { %9581 = vmatpush3.bf16.msra.mxu1 %v10501_v17  ;;  %9601 = vmatpush3.bf16.msra.mxu0 %v10502_v18 }
 0x40c   : > { %9582 = vmatprep.subr.bf16.mxu1 %v10914_v0  ;;  %9602 = vmatprep.subr.bf16.mxu0 %v10914_v0 }
 0x40f   : > { %9583 = vmatpush3.bf16.msra.mxu1 %v10503_v22  ;;  %9603 = vmatpush3.bf16.msra.mxu0 %v10504_v23  ;;  %v5323_v22 = vld [vmem:[#allocation2 + $0x2d] sm:$0x1]  ;;  %v10537_v23 = vld [vmem:[#allocation8 + $0xb80] sm:$0xff]  }
 0x410   : > { %9608 = vmatprep.subr.bf16.mxu1 %v10914_v0  ;;  %9628 = vmatprep.subr.bf16.mxu0 %v10914_v0 }
 0x412   : > { %9585 = vmatmul.mubr.bf16.vlgmr.msra.gmra.mrb[80].mxu1 %v4784_v29  ;;  %9605 = vmatmul.mubr.bf16.vlgmr.msra.gmra.mrb[88].mxu0 %v4892_v30  ;;  %v10540_v29 = vld [vmem:[#allocation8 + $0xbc8] sm:$0xff]   ;;  %v10541_v30 = vld [vmem:[#allocation8 + $0xb90] sm:$0xff]  }
 0x413   : > { %9609 = vmatpush3.bf16.msra.mxu1 %v10505_v26  ;;  %9629 = vmatpush3.bf16.msra.mxu0 %v10506_v28  ;;  %v5324_v26 = vpack.c.bf16 %v5323_v22, %v5323_v22  ;;  %v10539_v28 = vld [vmem:[#allocation8 + $0xb88] sm:$0xff]  }
 0x414   : > { %9610 = vmatprep.subr.bf16.mxu1 %v10914_v0  ;;  %9630 = vmatprep.subr.bf16.mxu0 %v10914_v0 }
 0x415   : > { %9624 = vmatprep.mubr.msk.bf16.mxu1 %vm10915_vm2, %v10914_v0  ;;  %9644 = vmatprep.mubr.msk.bf16.mxu0 %vm10915_vm2, %v10914_v0 }
 0x417   : > { %9611 = vmatpush3.bf16.msra.mxu1 %v10507_v31  ;;  %9631 = vmatpush3.bf16.msra.mxu0 %v10508_v32  ;;  %v10542_v31 = vld [vmem:[#allocation8 + $0xbd0] sm:$0xff]   ;;  %v10543_v32 = vld [vmem:[#allocation8 + $0xb98] sm:$0xff]  }
 0x418   : > { %9612 = vmatprep.subr.bf16.mxu1 %v10914_v0  ;;  %9632 = vmatprep.subr.bf16.mxu0 %v10914_v0 }
 0x41b   : > { %9613 = vmatpush3.bf16.msra.mxu1 %v10509_v33  ;;  %9633 = vmatpush3.bf16.msra.mxu0 %v10510_v34  ;;  %v10544_v33 = vld [vmem:[#allocation8 + $0xbd8] sm:$0xff]   ;;  %v10545_v34 = vld [vmem:[#allocation8 + $0xba0] sm:$0xff]  }
 0x41c   : > { %9614 = vmatprep.subr.bf16.mxu1 %v10914_v0  ;;  %9634 = vmatprep.subr.bf16.mxu0 %v10914_v0 }
 0x41f   : > { %9615 = vmatpush3.bf16.msra.mxu1 %v10511_v35  ;;  %9635 = vmatpush3.bf16.msra.mxu0 %v10512_v36  ;;  %v10546_v35 = vld [vmem:[#allocation8 + $0xbe0] sm:$0xff]   ;;  %v10547_v36 = vld [vmem:[#allocation8 + $0xba8] sm:$0xff]  }
 0x420   : > { %9616 = vmatprep.subr.bf16.mxu1 %v10914_v0  ;;  %9636 = vmatprep.subr.bf16.mxu0 %v10914_v0 }
 0x423   : > { %9617 = vmatpush3.bf16.msra.mxu1 %v10513_v37  ;;  %9637 = vmatpush3.bf16.msra.mxu0 %v10514_v38  ;;  %v10548_v37 = vld [vmem:[#allocation8 + $0xbe8] sm:$0xff]  }
 0x424   : > { %9618 = vmatprep.subr.bf16.mxu1 %v10914_v0  ;;  %9638 = vmatprep.subr.bf16.mxu0 %v10914_v0 }
 0x425   : > { %v3588_v41 = vpop.f32.mrb[56].mxu1  ;;  %v3696_v42 = vpop.f32.mrb[64].mxu0 }
 0x426   : > { %v3594_v43 = vadd.f32 %v3588_v41, %v3486_v19  ;;  %v9346_v44 = vpop.f32.mrb[57].mxu1  ;;  %v9366_v45 = vpop.f32.mrb[65].mxu0  ;;  %v10535_v19 = vld [vmem:[#allocation8 + $0xb38] sm:$0xff]  }
 0x427   : > { %v3591_v46 = vpop.f32.mrb[58].mxu1  ;;  %v3699_v47 = vpop.f32.mrb[66].mxu0  ;;  %9619 = vmatpush3.bf16.msra.mxu1 %v10515_v39  ;;  %9639 = vmatpush3.bf16.msra.mxu0 %v10516_v40  ;;  %v10549_v45 = vld [vmem:[#allocation8 + $0xbb0] sm:$0xff]  }
 0x428   : > { %v3702_v49 = vadd.f32 %v3696_v42, %v3594_v43  ;;  %v9347_v50 = vpop.f32.mrb[59].mxu1  ;;  %v9367_v51 = vpop.f32.mrb[67].mxu0  ;;  %9620 = vmatprep.subr.bf16.mxu1 %v10914_v0  ;;  %9640 = vmatprep.subr.bf16.mxu0 %v10914_v0  ;;  %v10550_v46 = vld [vmem:[#allocation8 + $0xbf0] sm:$0xff]  }
 0x429   : > { %v10552_v50 = vld [vmem:[#allocation8 + $0xbf8] sm:$0xff]   ;;  %v5431_v51 = vld [vmem:[#allocation2 + $0x2e] sm:$0x1] }
 0x42a   : > { %v5432_v55 = vpack.c.bf16 %v5431_v51, %v5431_v51  ;;  %v10586_v51 = vld [vmem:[#allocation8 + $0xd40] sm:$0xff]  }
 0x42b   : > { %9621 = vmatpush3.bf16.msra.mxu1 %v10517_v27  ;;  %9641 = vmatpush3.bf16.msra.mxu0 %v10518_v48 }
 0x42c   : > { %9622 = vmatprep.subr.bf16.mxu1 %v10914_v0  ;;  %9642 = vmatprep.subr.bf16.mxu0 %v10914_v0 }
 0x42f   : > { %9623 = vmatpush3.bf16.msra.mxu1 %v10519_v52  ;;  %9643 = vmatpush3.bf16.msra.mxu0 %v10520_v53  ;;  %v5539_v52 = vld [vmem:[#allocation2 + $0x2f] sm:$0x1]  ;;  %v10553_v53 = vld [vmem:[#allocation8 + $0xc00] sm:$0xff]  }
 0x430   : > { %9648 = vmatprep.subr.bf16.mxu1 %v10914_v0  ;;  %9668 = vmatprep.subr.bf16.mxu0 %v10914_v0 }
 0x432   : > { %9625 = vmatmul.mubr.bf16.vlgmr.msra.gmra.mrb[84].mxu1 %v5000_v58  ;;  %9645 = vmatmul.mubr.bf16.vlgmr.msra.gmra.mrb[92].mxu0 %v5108_v59  ;;  %v10556_v58 = vld [vmem:[#allocation8 + $0xc48] sm:$0xff]   ;;  %v10557_v59 = vld [vmem:[#allocation8 + $0xc10] sm:$0xff]  }
 0x433   : > { %9649 = vmatpush3.bf16.msra.mxu1 %v10521_v56  ;;  %9669 = vmatpush3.bf16.msra.mxu0 %v10522_v57  ;;  %v5540_v56 = vpack.c.bf16 %v5539_v52, %v5539_v52  ;;  %v10555_v57 = vld [vmem:[#allocation8 + $0xc08] sm:$0xff]  }
 0x434   : > { %9650 = vmatprep.subr.bf16.mxu1 %v10914_v0  ;;  %9670 = vmatprep.subr.bf16.mxu0 %v10914_v0 }
 0x435   : > { %9664 = vmatprep.mubr.msk.bf16.mxu1 %vm10915_vm2, %v10914_v0  ;;  %9684 = vmatprep.mubr.msk.bf16.mxu0 %vm10915_vm2, %v10914_v0 }
 0x437   : > { %9651 = vmatpush3.bf16.msra.mxu1 %v10523_v60  ;;  %9671 = vmatpush3.bf16.msra.mxu0 %v10524_v61  ;;  %v10558_v60 = vld [vmem:[#allocation8 + $0xc50] sm:$0xff]   ;;  %v10559_v61 = vld [vmem:[#allocation8 + $0xc18] sm:$0xff]  }
 0x438   : > { %9652 = vmatprep.subr.bf16.mxu1 %v10914_v0  ;;  %9672 = vmatprep.subr.bf16.mxu0 %v10914_v0 }
 0x43b   : > { %9653 = vmatpush3.bf16.msra.mxu1 %v10525_v62  ;;  %9673 = vmatpush3.bf16.msra.mxu0 %v10526_v63  ;;  %v10560_v62 = vld [vmem:[#allocation8 + $0xc58] sm:$0xff]   ;;  %v10561_v63 = vld [vmem:[#allocation8 + $0xc20] sm:$0xff]  }
 0x43c   : > { %9654 = vmatprep.subr.bf16.mxu1 %v10914_v0  ;;  %9674 = vmatprep.subr.bf16.mxu0 %v10914_v0 }
 0x43f   : > { %9655 = vmatpush3.bf16.msra.mxu1 %v10527_v1  ;;  %9675 = vmatpush3.bf16.msra.mxu0 %v10528_v2  ;;  %v10562_v1 = vld [vmem:[#allocation8 + $0xc60] sm:$0xff]   ;;  %v10563_v2 = vld [vmem:[#allocation8 + $0xc28] sm:$0xff]  }
 0x440   : > { %9656 = vmatprep.subr.bf16.mxu1 %v10914_v0  ;;  %9676 = vmatprep.subr.bf16.mxu0 %v10914_v0 }
 0x443   : > { %9657 = vmatpush3.bf16.msra.mxu1 %v10529_v3  ;;  %9677 = vmatpush3.bf16.msra.mxu0 %v10530_v4  ;;  %v10564_v3 = vld [vmem:[#allocation8 + $0xc68] sm:$0xff]  }
 0x444   : > { %9658 = vmatprep.subr.bf16.mxu1 %v10914_v0  ;;  %9678 = vmatprep.subr.bf16.mxu0 %v10914_v0 }
 0x445   : > { %v3804_v7 = vpop.f32.mrb[60].mxu1  ;;  %v3912_v8 = vpop.f32.mrb[68].mxu0 }
 0x446   : > { %v3810_v9 = vadd.f32 %v3804_v7, %v3702_v49  ;;  %v9386_v10 = vpop.f32.mrb[61].mxu1  ;;  %v9406_v11 = vpop.f32.mrb[69].mxu0  ;;  %v10551_v49 = vld [vmem:[#allocation8 + $0xbb8] sm:$0xff]  }
 0x447   : > { %v3807_v12 = vpop.f32.mrb[62].mxu1  ;;  %v3915_v13 = vpop.f32.mrb[70].mxu0  ;;  %9659 = vmatpush3.bf16.msra.mxu1 %v10531_v5  ;;  %9679 = vmatpush3.bf16.msra.mxu0 %v10532_v6  ;;  %v10565_v11 = vld [vmem:[#allocation8 + $0xc30] sm:$0xff]  }
 0x448   : > { %v3918_v16 = vadd.f32 %v3912_v8, %v3810_v9  ;;  %v9387_v17 = vpop.f32.mrb[63].mxu1  ;;  %v9407_v18 = vpop.f32.mrb[71].mxu0  ;;  %9660 = vmatprep.subr.bf16.mxu1 %v10914_v0  ;;  %9680 = vmatprep.subr.bf16.mxu0 %v10914_v0  ;;  %v10566_v12 = vld [vmem:[#allocation8 + $0xc70] sm:$0xff]  }
 0x449   : > { %v10568_v17 = vld [vmem:[#allocation8 + $0xc78] sm:$0xff]   ;;  %v5647_v18 = vld [vmem:[#allocation2 + $0x30] sm:$0x1] }
 0x44a   : > { %v5648_v22 = vpack.c.bf16 %v5647_v18, %v5647_v18  ;;  %v10602_v18 = vld [vmem:[#allocation8 + $0xdc0] sm:$0xff]  }
 0x44b   : > { %9661 = vmatpush3.bf16.msra.mxu1 %v10533_v14  ;;  %9681 = vmatpush3.bf16.msra.mxu0 %v10534_v15 }
 0x44c   : > { %9662 = vmatprep.subr.bf16.mxu1 %v10914_v0  ;;  %9682 = vmatprep.subr.bf16.mxu0 %v10914_v0 }
 0x44f   : > { %9663 = vmatpush3.bf16.msra.mxu1 %v10535_v19  ;;  %9683 = vmatpush3.bf16.msra.mxu0 %v10536_v20  ;;  %v5755_v19 = vld [vmem:[#allocation2 + $0x31] sm:$0x1]  ;;  %v10569_v20 = vld [vmem:[#allocation8 + $0xc80] sm:$0xff]  }
 0x450   : > { %9688 = vmatprep.subr.bf16.mxu1 %v10914_v0  ;;  %9708 = vmatprep.subr.bf16.mxu0 %v10914_v0 }
 0x452   : > { %9665 = vmatmul.mubr.bf16.vlgmr.msra.gmra.mrb[88].mxu1 %v5216_v25  ;;  %9685 = vmatmul.mubr.bf16.vlgmr.msra.gmra.mrb[96].mxu0 %v5324_v26  ;;  %v10572_v25 = vld [vmem:[#allocation8 + $0xcc8] sm:$0xff]   ;;  %v10573_v26 = vld [vmem:[#allocation8 + $0xc90] sm:$0xff]  }
 0x453   : > { %9689 = vmatpush3.bf16.msra.mxu1 %v10537_v23  ;;  %9709 = vmatpush3.bf16.msra.mxu0 %v10538_v24  ;;  %v5756_v23 = vpack.c.bf16 %v5755_v19, %v5755_v19  ;;  %v10571_v24 = vld [vmem:[#allocation8 + $0xc88] sm:$0xff]  }
 0x454   : > { %9690 = vmatprep.subr.bf16.mxu1 %v10914_v0  ;;  %9710 = vmatprep.subr.bf16.mxu0 %v10914_v0 }
 0x455   : > { %9704 = vmatprep.mubr.msk.bf16.mxu1 %vm10915_vm2, %v10914_v0  ;;  %9724 = vmatprep.mubr.msk.bf16.mxu0 %vm10915_vm2, %v10914_v0 }
 0x457   : > { %9691 = vmatpush3.bf16.msra.mxu1 %v10539_v28  ;;  %9711 = vmatpush3.bf16.msra.mxu0 %v10540_v29  ;;  %v10574_v28 = vld [vmem:[#allocation8 + $0xcd0] sm:$0xff]   ;;  %v10575_v29 = vld [vmem:[#allocation8 + $0xc98] sm:$0xff]  }
 0x458   : > { %9692 = vmatprep.subr.bf16.mxu1 %v10914_v0  ;;  %9712 = vmatprep.subr.bf16.mxu0 %v10914_v0 }
 0x45b   : > { %9693 = vmatpush3.bf16.msra.mxu1 %v10541_v30  ;;  %9713 = vmatpush3.bf16.msra.mxu0 %v10542_v31  ;;  %v10576_v30 = vld [vmem:[#allocation8 + $0xcd8] sm:$0xff]   ;;  %v10577_v31 = vld [vmem:[#allocation8 + $0xca0] sm:$0xff]  }
 0x45c   : > { %9694 = vmatprep.subr.bf16.mxu1 %v10914_v0  ;;  %9714 = vmatprep.subr.bf16.mxu0 %v10914_v0 }
 0x45f   : > { %9695 = vmatpush3.bf16.msra.mxu1 %v10543_v32  ;;  %9715 = vmatpush3.bf16.msra.mxu0 %v10544_v33  ;;  %v10578_v32 = vld [vmem:[#allocation8 + $0xce0] sm:$0xff]   ;;  %v10579_v33 = vld [vmem:[#allocation8 + $0xca8] sm:$0xff]  }
 0x460   : > { %9696 = vmatprep.subr.bf16.mxu1 %v10914_v0  ;;  %9716 = vmatprep.subr.bf16.mxu0 %v10914_v0 }
 0x463   : > { %9697 = vmatpush3.bf16.msra.mxu1 %v10545_v34  ;;  %9717 = vmatpush3.bf16.msra.mxu0 %v10546_v35  ;;  %v10580_v34 = vld [vmem:[#allocation8 + $0xce8] sm:$0xff]  }
 0x464   : > { %9698 = vmatprep.subr.bf16.mxu1 %v10914_v0  ;;  %9718 = vmatprep.subr.bf16.mxu0 %v10914_v0 }
 0x465   : > { %v4020_v38 = vpop.f32.mrb[64].mxu1  ;;  %v4128_v39 = vpop.f32.mrb[72].mxu0 }
 0x466   : > { %v4026_v40 = vadd.f32 %v4020_v38, %v3918_v16  ;;  %v9426_v41 = vpop.f32.mrb[65].mxu1  ;;  %v9446_v42 = vpop.f32.mrb[73].mxu0  ;;  %v10567_v16 = vld [vmem:[#allocation8 + $0xc38] sm:$0xff]  }
 0x467   : > { %v4023_v43 = vpop.f32.mrb[66].mxu1  ;;  %v4131_v44 = vpop.f32.mrb[74].mxu0  ;;  %9699 = vmatpush3.bf16.msra.mxu1 %v10547_v36  ;;  %9719 = vmatpush3.bf16.msra.mxu0 %v10548_v37  ;;  %v10581_v42 = vld [vmem:[#allocation8 + $0xcb0] sm:$0xff]  }
 0x468   : > { %v4134_v47 = vadd.f32 %v4128_v39, %v4026_v40  ;;  %v9427_v27 = vpop.f32.mrb[67].mxu1  ;;  %v9447_v48 = vpop.f32.mrb[75].mxu0  ;;  %9700 = vmatprep.subr.bf16.mxu1 %v10914_v0  ;;  %9720 = vmatprep.subr.bf16.mxu0 %v10914_v0  ;;  %v10582_v43 = vld [vmem:[#allocation8 + $0xcf0] sm:$0xff]  }
 0x469   : > { %v10584_v27 = vld [vmem:[#allocation8 + $0xcf8] sm:$0xff]   ;;  %v5863_v48 = vld [vmem:[#allocation2 + $0x32] sm:$0x1] }
 0x46a   : > { %v5864_v52 = vpack.c.bf16 %v5863_v48, %v5863_v48  ;;  %v10618_v48 = vld [vmem:[#allocation8 + $0xe40] sm:$0xff]  }
 0x46b   : > { %9701 = vmatpush3.bf16.msra.mxu1 %v10549_v45  ;;  %9721 = vmatpush3.bf16.msra.mxu0 %v10550_v46 }
 0x46c   : > { %9702 = vmatprep.subr.bf16.mxu1 %v10914_v0  ;;  %9722 = vmatprep.subr.bf16.mxu0 %v10914_v0 }
 0x46f   : > { %9703 = vmatpush3.bf16.msra.mxu1 %v10551_v49  ;;  %9723 = vmatpush3.bf16.msra.mxu0 %v10552_v50  ;;  %v5971_v49 = vld [vmem:[#allocation2 + $0x33] sm:$0x1]  ;;  %v10585_v50 = vld [vmem:[#allocation8 + $0xd00] sm:$0xff]  }
 0x470   : > { %9728 = vmatprep.subr.bf16.mxu1 %v10914_v0  ;;  %9748 = vmatprep.subr.bf16.mxu0 %v10914_v0 }
 0x472   : > { %9705 = vmatmul.mubr.bf16.vlgmr.msra.gmra.mrb[92].mxu1 %v5432_v55  ;;  %9725 = vmatmul.mubr.bf16.vlgmr.msra.gmra.mrb[100].mxu0 %v5540_v56  ;;  %v10588_v55 = vld [vmem:[#allocation8 + $0xd48] sm:$0xff]   ;;  %v10589_v56 = vld [vmem:[#allocation8 + $0xd10] sm:$0xff]  }
 0x473   : > { %9729 = vmatpush3.bf16.msra.mxu1 %v10553_v53  ;;  %9749 = vmatpush3.bf16.msra.mxu0 %v10554_v54  ;;  %v5972_v53 = vpack.c.bf16 %v5971_v49, %v5971_v49  ;;  %v10587_v54 = vld [vmem:[#allocation8 + $0xd08] sm:$0xff]  }
 0x474   : > { %9730 = vmatprep.subr.bf16.mxu1 %v10914_v0  ;;  %9750 = vmatprep.subr.bf16.mxu0 %v10914_v0 }
 0x475   : > { %9744 = vmatprep.mubr.msk.bf16.mxu1 %vm10915_vm2, %v10914_v0  ;;  %9764 = vmatprep.mubr.msk.bf16.mxu0 %vm10915_vm2, %v10914_v0 }
 0x477   : > { %9731 = vmatpush3.bf16.msra.mxu1 %v10555_v57  ;;  %9751 = vmatpush3.bf16.msra.mxu0 %v10556_v58  ;;  %v10590_v57 = vld [vmem:[#allocation8 + $0xd50] sm:$0xff]   ;;  %v10591_v58 = vld [vmem:[#allocation8 + $0xd18] sm:$0xff]  }
 0x478   : > { %9732 = vmatprep.subr.bf16.mxu1 %v10914_v0  ;;  %9752 = vmatprep.subr.bf16.mxu0 %v10914_v0 }
 0x47b   : > { %9733 = vmatpush3.bf16.msra.mxu1 %v10557_v59  ;;  %9753 = vmatpush3.bf16.msra.mxu0 %v10558_v60  ;;  %v10592_v59 = vld [vmem:[#allocation8 + $0xd58] sm:$0xff]   ;;  %v10593_v60 = vld [vmem:[#allocation8 + $0xd20] sm:$0xff]  }
 0x47c   : > { %9734 = vmatprep.subr.bf16.mxu1 %v10914_v0  ;;  %9754 = vmatprep.subr.bf16.mxu0 %v10914_v0 }
 0x47f   : > { %9735 = vmatpush3.bf16.msra.mxu1 %v10559_v61  ;;  %9755 = vmatpush3.bf16.msra.mxu0 %v10560_v62  ;;  %v10594_v61 = vld [vmem:[#allocation8 + $0xd60] sm:$0xff]   ;;  %v10595_v62 = vld [vmem:[#allocation8 + $0xd28] sm:$0xff]  }
 0x480   : > { %9736 = vmatprep.subr.bf16.mxu1 %v10914_v0  ;;  %9756 = vmatprep.subr.bf16.mxu0 %v10914_v0 }
 0x483   : > { %9737 = vmatpush3.bf16.msra.mxu1 %v10561_v63  ;;  %9757 = vmatpush3.bf16.msra.mxu0 %v10562_v1  ;;  %v10596_v63 = vld [vmem:[#allocation8 + $0xd68] sm:$0xff]  }
 0x484   : > { %9738 = vmatprep.subr.bf16.mxu1 %v10914_v0  ;;  %9758 = vmatprep.subr.bf16.mxu0 %v10914_v0 }
 0x485   : > { %v4236_v4 = vpop.f32.mrb[68].mxu1  ;;  %v4344_v5 = vpop.f32.mrb[76].mxu0 }
 0x486   : > { %v4242_v6 = vadd.f32 %v4236_v4, %v4134_v47  ;;  %v9466_v7 = vpop.f32.mrb[69].mxu1  ;;  %v9486_v8 = vpop.f32.mrb[77].mxu0  ;;  %v10583_v47 = vld [vmem:[#allocation8 + $0xcb8] sm:$0xff]  }
 0x487   : > { %v4239_v9 = vpop.f32.mrb[70].mxu1  ;;  %v4347_v10 = vpop.f32.mrb[78].mxu0  ;;  %9739 = vmatpush3.bf16.msra.mxu1 %v10563_v2  ;;  %9759 = vmatpush3.bf16.msra.mxu0 %v10564_v3  ;;  %v10597_v8 = vld [vmem:[#allocation8 + $0xd30] sm:$0xff]  }
 0x488   : > { %v4350_v13 = vadd.f32 %v4344_v5, %v4242_v6  ;;  %v9467_v14 = vpop.f32.mrb[71].mxu1  ;;  %v9487_v15 = vpop.f32.mrb[79].mxu0  ;;  %9740 = vmatprep.subr.bf16.mxu1 %v10914_v0  ;;  %9760 = vmatprep.subr.bf16.mxu0 %v10914_v0  ;;  %v10598_v9 = vld [vmem:[#allocation8 + $0xd70] sm:$0xff]  }
 0x489   : > { %v10600_v14 = vld [vmem:[#allocation8 + $0xd78] sm:$0xff]   ;;  %v6079_v15 = vld [vmem:[#allocation2 + $0x34] sm:$0x1] }
 0x48a   : > { %v6080_v19 = vpack.c.bf16 %v6079_v15, %v6079_v15  ;;  %v10634_v15 = vld [vmem:[#allocation8 + $0xec0] sm:$0xff]  }
 0x48b   : > { %9741 = vmatpush3.bf16.msra.mxu1 %v10565_v11  ;;  %9761 = vmatpush3.bf16.msra.mxu0 %v10566_v12 }
 0x48c   : > { %9742 = vmatprep.subr.bf16.mxu1 %v10914_v0  ;;  %9762 = vmatprep.subr.bf16.mxu0 %v10914_v0 }
 0x48f   : > { %9743 = vmatpush3.bf16.msra.mxu1 %v10567_v16  ;;  %9763 = vmatpush3.bf16.msra.mxu0 %v10568_v17  ;;  %v6187_v16 = vld [vmem:[#allocation2 + $0x35] sm:$0x1]  ;;  %v10601_v17 = vld [vmem:[#allocation8 + $0xd80] sm:$0xff]  }
 0x490   : > { %9768 = vmatprep.subr.bf16.mxu1 %v10914_v0  ;;  %9788 = vmatprep.subr.bf16.mxu0 %v10914_v0 }
 0x492   : > { %9745 = vmatmul.mubr.bf16.vlgmr.msra.gmra.mrb[96].mxu1 %v5648_v22  ;;  %9765 = vmatmul.mubr.bf16.vlgmr.msra.gmra.mrb[104].mxu0 %v5756_v23  ;;  %v10604_v22 = vld [vmem:[#allocation8 + $0xdc8] sm:$0xff]   ;;  %v10605_v23 = vld [vmem:[#allocation8 + $0xd90] sm:$0xff]  }
 0x493   : > { %9769 = vmatpush3.bf16.msra.mxu1 %v10569_v20  ;;  %9789 = vmatpush3.bf16.msra.mxu0 %v10570_v21  ;;  %v6188_v20 = vpack.c.bf16 %v6187_v16, %v6187_v16  ;;  %v10603_v21 = vld [vmem:[#allocation8 + $0xd88] sm:$0xff]  }
 0x494   : > { %9770 = vmatprep.subr.bf16.mxu1 %v10914_v0  ;;  %9790 = vmatprep.subr.bf16.mxu0 %v10914_v0 }
 0x495   : > { %9784 = vmatprep.mubr.msk.bf16.mxu1 %vm10915_vm2, %v10914_v0  ;;  %9804 = vmatprep.mubr.msk.bf16.mxu0 %vm10915_vm2, %v10914_v0 }
 0x497   : > { %9771 = vmatpush3.bf16.msra.mxu1 %v10571_v24  ;;  %9791 = vmatpush3.bf16.msra.mxu0 %v10572_v25  ;;  %v10606_v24 = vld [vmem:[#allocation8 + $0xdd0] sm:$0xff]   ;;  %v10607_v25 = vld [vmem:[#allocation8 + $0xd98] sm:$0xff]  }
 0x498   : > { %9772 = vmatprep.subr.bf16.mxu1 %v10914_v0  ;;  %9792 = vmatprep.subr.bf16.mxu0 %v10914_v0 }
 0x49b   : > { %9773 = vmatpush3.bf16.msra.mxu1 %v10573_v26  ;;  %9793 = vmatpush3.bf16.msra.mxu0 %v10574_v28  ;;  %v10608_v26 = vld [vmem:[#allocation8 + $0xdd8] sm:$0xff]   ;;  %v10609_v28 = vld [vmem:[#allocation8 + $0xda0] sm:$0xff]  }
 0x49c   : > { %9774 = vmatprep.subr.bf16.mxu1 %v10914_v0  ;;  %9794 = vmatprep.subr.bf16.mxu0 %v10914_v0 }
 0x49f   : > { %9775 = vmatpush3.bf16.msra.mxu1 %v10575_v29  ;;  %9795 = vmatpush3.bf16.msra.mxu0 %v10576_v30  ;;  %v10610_v29 = vld [vmem:[#allocation8 + $0xde0] sm:$0xff]   ;;  %v10611_v30 = vld [vmem:[#allocation8 + $0xda8] sm:$0xff]  }
 0x4a0   : > { %9776 = vmatprep.subr.bf16.mxu1 %v10914_v0  ;;  %9796 = vmatprep.subr.bf16.mxu0 %v10914_v0 }
 0x4a3   : > { %9777 = vmatpush3.bf16.msra.mxu1 %v10577_v31  ;;  %9797 = vmatpush3.bf16.msra.mxu0 %v10578_v32  ;;  %v10612_v31 = vld [vmem:[#allocation8 + $0xde8] sm:$0xff]  }
 0x4a4   : > { %9778 = vmatprep.subr.bf16.mxu1 %v10914_v0  ;;  %9798 = vmatprep.subr.bf16.mxu0 %v10914_v0 }
 0x4a5   : > { %v4452_v35 = vpop.f32.mrb[72].mxu1  ;;  %v4560_v36 = vpop.f32.mrb[80].mxu0 }
 0x4a6   : > { %v4458_v37 = vadd.f32 %v4452_v35, %v4350_v13  ;;  %v9506_v38 = vpop.f32.mrb[73].mxu1  ;;  %v9526_v39 = vpop.f32.mrb[81].mxu0  ;;  %v10599_v13 = vld [vmem:[#allocation8 + $0xd38] sm:$0xff]  }
 0x4a7   : > { %v4455_v40 = vpop.f32.mrb[74].mxu1  ;;  %v4563_v41 = vpop.f32.mrb[82].mxu0  ;;  %9779 = vmatpush3.bf16.msra.mxu1 %v10579_v33  ;;  %9799 = vmatpush3.bf16.msra.mxu0 %v10580_v34  ;;  %v10613_v39 = vld [vmem:[#allocation8 + $0xdb0] sm:$0xff]  }
 0x4a8   : > { %v4566_v44 = vadd.f32 %v4560_v36, %v4458_v37  ;;  %v9507_v45 = vpop.f32.mrb[75].mxu1  ;;  %v9527_v46 = vpop.f32.mrb[83].mxu0  ;;  %9780 = vmatprep.subr.bf16.mxu1 %v10914_v0  ;;  %9800 = vmatprep.subr.bf16.mxu0 %v10914_v0  ;;  %v10614_v40 = vld [vmem:[#allocation8 + $0xdf0] sm:$0xff]  }
 0x4a9   : > { %v10616_v45 = vld [vmem:[#allocation8 + $0xdf8] sm:$0xff]   ;;  %v6295_v46 = vld [vmem:[#allocation2 + $0x36] sm:$0x1] }
 0x4aa   : > { %v6296_v49 = vpack.c.bf16 %v6295_v46, %v6295_v46  ;;  %v10650_v46 = vld [vmem:[#allocation8 + $0xf40] sm:$0xff]  }
 0x4ab   : > { %9781 = vmatpush3.bf16.msra.mxu1 %v10581_v42  ;;  %9801 = vmatpush3.bf16.msra.mxu0 %v10582_v43 }
 0x4ac   : > { %9782 = vmatprep.subr.bf16.mxu1 %v10914_v0  ;;  %9802 = vmatprep.subr.bf16.mxu0 %v10914_v0 }
 0x4af   : > { %9783 = vmatpush3.bf16.msra.mxu1 %v10583_v47  ;;  %9803 = vmatpush3.bf16.msra.mxu0 %v10584_v27  ;;  %v6403_v47 = vld [vmem:[#allocation2 + $0x37] sm:$0x1]  ;;  %v10617_v27 = vld [vmem:[#allocation8 + $0xe00] sm:$0xff]  }
 0x4b0   : > { %9808 = vmatprep.subr.bf16.mxu1 %v10914_v0  ;;  %9828 = vmatprep.subr.bf16.mxu0 %v10914_v0 }
 0x4b2   : > { %9785 = vmatmul.mubr.bf16.vlgmr.msra.gmra.mrb[100].mxu1 %v5864_v52  ;;  %9805 = vmatmul.mubr.bf16.vlgmr.msra.gmra.mrb[108].mxu0 %v5972_v53  ;;  %v10620_v52 = vld [vmem:[#allocation8 + $0xe48] sm:$0xff]   ;;  %v10621_v53 = vld [vmem:[#allocation8 + $0xe10] sm:$0xff]  }
 0x4b3   : > { %9809 = vmatpush3.bf16.msra.mxu1 %v10585_v50  ;;  %9829 = vmatpush3.bf16.msra.mxu0 %v10586_v51  ;;  %v6404_v50 = vpack.c.bf16 %v6403_v47, %v6403_v47  ;;  %v10619_v51 = vld [vmem:[#allocation8 + $0xe08] sm:$0xff]  }
 0x4b4   : > { %9810 = vmatprep.subr.bf16.mxu1 %v10914_v0  ;;  %9830 = vmatprep.subr.bf16.mxu0 %v10914_v0 }
 0x4b5   : > { %9824 = vmatprep.mubr.msk.bf16.mxu1 %vm10915_vm2, %v10914_v0  ;;  %9844 = vmatprep.mubr.msk.bf16.mxu0 %vm10915_vm2, %v10914_v0 }
 0x4b7   : > { %9811 = vmatpush3.bf16.msra.mxu1 %v10587_v54  ;;  %9831 = vmatpush3.bf16.msra.mxu0 %v10588_v55  ;;  %v10622_v54 = vld [vmem:[#allocation8 + $0xe50] sm:$0xff]   ;;  %v10623_v55 = vld [vmem:[#allocation8 + $0xe18] sm:$0xff]  }
 0x4b8   : > { %9812 = vmatprep.subr.bf16.mxu1 %v10914_v0  ;;  %9832 = vmatprep.subr.bf16.mxu0 %v10914_v0 }
 0x4bb   : > { %9813 = vmatpush3.bf16.msra.mxu1 %v10589_v56  ;;  %9833 = vmatpush3.bf16.msra.mxu0 %v10590_v57  ;;  %v10624_v56 = vld [vmem:[#allocation8 + $0xe58] sm:$0xff]   ;;  %v10625_v57 = vld [vmem:[#allocation8 + $0xe20] sm:$0xff]  }
 0x4bc   : > { %9814 = vmatprep.subr.bf16.mxu1 %v10914_v0  ;;  %9834 = vmatprep.subr.bf16.mxu0 %v10914_v0 }
 0x4bf   : > { %9815 = vmatpush3.bf16.msra.mxu1 %v10591_v58  ;;  %9835 = vmatpush3.bf16.msra.mxu0 %v10592_v59  ;;  %v10626_v58 = vld [vmem:[#allocation8 + $0xe60] sm:$0xff]   ;;  %v10627_v59 = vld [vmem:[#allocation8 + $0xe28] sm:$0xff]  }
 0x4c0   : > { %9816 = vmatprep.subr.bf16.mxu1 %v10914_v0  ;;  %9836 = vmatprep.subr.bf16.mxu0 %v10914_v0 }
 0x4c3   : > { %9817 = vmatpush3.bf16.msra.mxu1 %v10593_v60  ;;  %9837 = vmatpush3.bf16.msra.mxu0 %v10594_v61  ;;  %v10628_v60 = vld [vmem:[#allocation8 + $0xe68] sm:$0xff]  }
 0x4c4   : > { %9818 = vmatprep.subr.bf16.mxu1 %v10914_v0  ;;  %9838 = vmatprep.subr.bf16.mxu0 %v10914_v0 }
 0x4c5   : > { %v4668_v1 = vpop.f32.mrb[76].mxu1  ;;  %v4776_v2 = vpop.f32.mrb[84].mxu0 }
 0x4c6   : > { %v4674_v3 = vadd.f32 %v4668_v1, %v4566_v44  ;;  %v9546_v4 = vpop.f32.mrb[77].mxu1  ;;  %v9566_v5 = vpop.f32.mrb[85].mxu0  ;;  %v10615_v44 = vld [vmem:[#allocation8 + $0xdb8] sm:$0xff]  }
 0x4c7   : > { %v4671_v6 = vpop.f32.mrb[78].mxu1  ;;  %v4779_v7 = vpop.f32.mrb[86].mxu0  ;;  %9819 = vmatpush3.bf16.msra.mxu1 %v10595_v62  ;;  %9839 = vmatpush3.bf16.msra.mxu0 %v10596_v63  ;;  %v10629_v5 = vld [vmem:[#allocation8 + $0xe30] sm:$0xff]  }
 0x4c8   : > { %v4782_v10 = vadd.f32 %v4776_v2, %v4674_v3  ;;  %v9547_v11 = vpop.f32.mrb[79].mxu1  ;;  %v9567_v12 = vpop.f32.mrb[87].mxu0  ;;  %9820 = vmatprep.subr.bf16.mxu1 %v10914_v0  ;;  %9840 = vmatprep.subr.bf16.mxu0 %v10914_v0  ;;  %v10630_v6 = vld [vmem:[#allocation8 + $0xe70] sm:$0xff]  }
 0x4c9   : > { %v10632_v11 = vld [vmem:[#allocation8 + $0xe78] sm:$0xff]   ;;  %v6511_v12 = vld [vmem:[#allocation2 + $0x38] sm:$0x1] }
 0x4ca   : > { %v6512_v16 = vpack.c.bf16 %v6511_v12, %v6511_v12  ;;  %v10666_v12 = vld [vmem:[#allocation8 + $0xfc0] sm:$0xff]  }
 0x4cb   : > { %9821 = vmatpush3.bf16.msra.mxu1 %v10597_v8  ;;  %9841 = vmatpush3.bf16.msra.mxu0 %v10598_v9 }
 0x4cc   : > { %9822 = vmatprep.subr.bf16.mxu1 %v10914_v0  ;;  %9842 = vmatprep.subr.bf16.mxu0 %v10914_v0 }
 0x4cf   : > { %9823 = vmatpush3.bf16.msra.mxu1 %v10599_v13  ;;  %9843 = vmatpush3.bf16.msra.mxu0 %v10600_v14  ;;  %v6619_v13 = vld [vmem:[#allocation2 + $0x39] sm:$0x1]  ;;  %v10633_v14 = vld [vmem:[#allocation8 + $0xe80] sm:$0xff]  }
 0x4d0   : > { %9848 = vmatprep.subr.bf16.mxu1 %v10914_v0  ;;  %9868 = vmatprep.subr.bf16.mxu0 %v10914_v0 }
 0x4d2   : > { %9825 = vmatmul.mubr.bf16.vlgmr.msra.gmra.mrb[104].mxu1 %v6080_v19  ;;  %9845 = vmatmul.mubr.bf16.vlgmr.msra.gmra.mrb[112].mxu0 %v6188_v20  ;;  %v10636_v19 = vld [vmem:[#allocation8 + $0xec8] sm:$0xff]   ;;  %v10637_v20 = vld [vmem:[#allocation8 + $0xe90] sm:$0xff]  }
 0x4d3   : > { %9849 = vmatpush3.bf16.msra.mxu1 %v10601_v17  ;;  %9869 = vmatpush3.bf16.msra.mxu0 %v10602_v18  ;;  %v6620_v17 = vpack.c.bf16 %v6619_v13, %v6619_v13  ;;  %v10635_v18 = vld [vmem:[#allocation8 + $0xe88] sm:$0xff]  }
 0x4d4   : > { %9850 = vmatprep.subr.bf16.mxu1 %v10914_v0  ;;  %9870 = vmatprep.subr.bf16.mxu0 %v10914_v0 }
 0x4d5   : > { %9864 = vmatprep.mubr.msk.bf16.mxu1 %vm10915_vm2, %v10914_v0  ;;  %9884 = vmatprep.mubr.msk.bf16.mxu0 %vm10915_vm2, %v10914_v0 }
 0x4d7   : > { %9851 = vmatpush3.bf16.msra.mxu1 %v10603_v21  ;;  %9871 = vmatpush3.bf16.msra.mxu0 %v10604_v22  ;;  %v10638_v21 = vld [vmem:[#allocation8 + $0xed0] sm:$0xff]   ;;  %v10639_v22 = vld [vmem:[#allocation8 + $0xe98] sm:$0xff]  }
 0x4d8   : > { %9852 = vmatprep.subr.bf16.mxu1 %v10914_v0  ;;  %9872 = vmatprep.subr.bf16.mxu0 %v10914_v0 }
 0x4db   : > { %9853 = vmatpush3.bf16.msra.mxu1 %v10605_v23  ;;  %9873 = vmatpush3.bf16.msra.mxu0 %v10606_v24  ;;  %v10640_v23 = vld [vmem:[#allocation8 + $0xed8] sm:$0xff]   ;;  %v10641_v24 = vld [vmem:[#allocation8 + $0xea0] sm:$0xff]  }
 0x4dc   : > { %9854 = vmatprep.subr.bf16.mxu1 %v10914_v0  ;;  %9874 = vmatprep.subr.bf16.mxu0 %v10914_v0 }
 0x4df   : > { %9855 = vmatpush3.bf16.msra.mxu1 %v10607_v25  ;;  %9875 = vmatpush3.bf16.msra.mxu0 %v10608_v26  ;;  %v10642_v25 = vld [vmem:[#allocation8 + $0xee0] sm:$0xff]   ;;  %v10643_v26 = vld [vmem:[#allocation8 + $0xea8] sm:$0xff]  }
 0x4e0   : > { %9856 = vmatprep.subr.bf16.mxu1 %v10914_v0  ;;  %9876 = vmatprep.subr.bf16.mxu0 %v10914_v0 }
 0x4e3   : > { %9857 = vmatpush3.bf16.msra.mxu1 %v10609_v28  ;;  %9877 = vmatpush3.bf16.msra.mxu0 %v10610_v29  ;;  %v10644_v28 = vld [vmem:[#allocation8 + $0xee8] sm:$0xff]  }
 0x4e4   : > { %9858 = vmatprep.subr.bf16.mxu1 %v10914_v0  ;;  %9878 = vmatprep.subr.bf16.mxu0 %v10914_v0 }
 0x4e5   : > { %v4884_v32 = vpop.f32.mrb[80].mxu1  ;;  %v4992_v33 = vpop.f32.mrb[88].mxu0 }
 0x4e6   : > { %v4890_v34 = vadd.f32 %v4884_v32, %v4782_v10  ;;  %v9586_v35 = vpop.f32.mrb[81].mxu1  ;;  %v9606_v36 = vpop.f32.mrb[89].mxu0  ;;  %v10631_v10 = vld [vmem:[#allocation8 + $0xe38] sm:$0xff]  }
 0x4e7   : > { %v4887_v37 = vpop.f32.mrb[82].mxu1  ;;  %v4995_v38 = vpop.f32.mrb[90].mxu0  ;;  %9859 = vmatpush3.bf16.msra.mxu1 %v10611_v30  ;;  %9879 = vmatpush3.bf16.msra.mxu0 %v10612_v31  ;;  %v10645_v36 = vld [vmem:[#allocation8 + $0xeb0] sm:$0xff]  }
 0x4e8   : > { %v4998_v41 = vadd.f32 %v4992_v33, %v4890_v34  ;;  %v9587_v42 = vpop.f32.mrb[83].mxu1  ;;  %v9607_v43 = vpop.f32.mrb[91].mxu0  ;;  %9860 = vmatprep.subr.bf16.mxu1 %v10914_v0  ;;  %9880 = vmatprep.subr.bf16.mxu0 %v10914_v0  ;;  %v10646_v37 = vld [vmem:[#allocation8 + $0xef0] sm:$0xff]  }
 0x4e9   : > { %v10648_v42 = vld [vmem:[#allocation8 + $0xef8] sm:$0xff]   ;;  %v6727_v43 = vld [vmem:[#allocation2 + $0x3a] sm:$0x1] }
 0x4ea   : > { %v6728_v47 = vpack.c.bf16 %v6727_v43, %v6727_v43 }
 0x4eb   : > { %9861 = vmatpush3.bf16.msra.mxu1 %v10613_v39  ;;  %9881 = vmatpush3.bf16.msra.mxu0 %v10614_v40 }
 0x4ec   : > { %9862 = vmatprep.subr.bf16.mxu1 %v10914_v0  ;;  %9882 = vmatprep.subr.bf16.mxu0 %v10914_v0 }
 0x4ef   : > { %9863 = vmatpush3.bf16.msra.mxu1 %v10615_v44  ;;  %9883 = vmatpush3.bf16.msra.mxu0 %v10616_v45  ;;  %v6835_v44 = vld [vmem:[#allocation2 + $0x3b] sm:$0x1]  ;;  %v10649_v45 = vld [vmem:[#allocation8 + $0xf00] sm:$0xff]  }
 0x4f0   : > { %9888 = vmatprep.subr.bf16.mxu1 %v10914_v0  ;;  %9908 = vmatprep.subr.bf16.mxu0 %v10914_v0 }
 0x4f2   : > { %9865 = vmatmul.mubr.bf16.vlgmr.msra.gmra.mrb[108].mxu1 %v6296_v49  ;;  %9885 = vmatmul.mubr.bf16.vlgmr.msra.gmra.mrb[116].mxu0 %v6404_v50  ;;  %v10652_v49 = vld [vmem:[#allocation8 + $0xf48] sm:$0xff]   ;;  %v10653_v50 = vld [vmem:[#allocation8 + $0xf10] sm:$0xff]  }
 0x4f3   : > { %9889 = vmatpush3.bf16.msra.mxu1 %v10617_v27  ;;  %9909 = vmatpush3.bf16.msra.mxu0 %v10618_v48  ;;  %v6836_v27 = vpack.c.bf16 %v6835_v44, %v6835_v44  ;;  %v10651_v48 = vld [vmem:[#allocation8 + $0xf08] sm:$0xff]  }
 0x4f4   : > { %9890 = vmatprep.subr.bf16.mxu1 %v10914_v0  ;;  %9910 = vmatprep.subr.bf16.mxu0 %v10914_v0 }
 0x4f5   : > { %9904 = vmatprep.mubr.msk.bf16.mxu1 %vm10915_vm2, %v10914_v0  ;;  %9924 = vmatprep.mubr.msk.bf16.mxu0 %vm10915_vm2, %v10914_v0 }
 0x4f7   : > { %9891 = vmatpush3.bf16.msra.mxu1 %v10619_v51  ;;  %9911 = vmatpush3.bf16.msra.mxu0 %v10620_v52  ;;  %v10654_v51 = vld [vmem:[#allocation8 + $0xf50] sm:$0xff]   ;;  %v10655_v52 = vld [vmem:[#allocation8 + $0xf18] sm:$0xff]  }
 0x4f8   : > { %9892 = vmatprep.subr.bf16.mxu1 %v10914_v0  ;;  %9912 = vmatprep.subr.bf16.mxu0 %v10914_v0 }
 0x4fb   : > { %9893 = vmatpush3.bf16.msra.mxu1 %v10621_v53  ;;  %9913 = vmatpush3.bf16.msra.mxu0 %v10622_v54  ;;  %v10656_v53 = vld [vmem:[#allocation8 + $0xf58] sm:$0xff]   ;;  %v10657_v54 = vld [vmem:[#allocation8 + $0xf20] sm:$0xff]  }
 0x4fc   : > { %9894 = vmatprep.subr.bf16.mxu1 %v10914_v0  ;;  %9914 = vmatprep.subr.bf16.mxu0 %v10914_v0 }
 0x4ff   : > { %9895 = vmatpush3.bf16.msra.mxu1 %v10623_v55  ;;  %9915 = vmatpush3.bf16.msra.mxu0 %v10624_v56  ;;  %v10658_v55 = vld [vmem:[#allocation8 + $0xf60] sm:$0xff]   ;;  %v10659_v56 = vld [vmem:[#allocation8 + $0xf28] sm:$0xff]  }
 0x500   : > { %9896 = vmatprep.subr.bf16.mxu1 %v10914_v0  ;;  %9916 = vmatprep.subr.bf16.mxu0 %v10914_v0 }
 0x503   : > { %9897 = vmatpush3.bf16.msra.mxu1 %v10625_v57  ;;  %9917 = vmatpush3.bf16.msra.mxu0 %v10626_v58  ;;  %v10660_v57 = vld [vmem:[#allocation8 + $0xf68] sm:$0xff]  }
 0x504   : > { %9898 = vmatprep.subr.bf16.mxu1 %v10914_v0  ;;  %9918 = vmatprep.subr.bf16.mxu0 %v10914_v0 }
 0x505   : > { %v5100_v61 = vpop.f32.mrb[84].mxu1  ;;  %v5208_v62 = vpop.f32.mrb[92].mxu0 }
 0x506   : > { %v5106_v63 = vadd.f32 %v5100_v61, %v4998_v41  ;;  %v9626_v1 = vpop.f32.mrb[85].mxu1  ;;  %v9646_v2 = vpop.f32.mrb[93].mxu0  ;;  %v10647_v41 = vld [vmem:[#allocation8 + $0xeb8] sm:$0xff]  }
 0x507   : > { %v5103_v3 = vpop.f32.mrb[86].mxu1  ;;  %v5211_v4 = vpop.f32.mrb[94].mxu0  ;;  %9899 = vmatpush3.bf16.msra.mxu1 %v10627_v59  ;;  %9919 = vmatpush3.bf16.msra.mxu0 %v10628_v60  ;;  %v10661_v2 = vld [vmem:[#allocation8 + $0xf30] sm:$0xff]  }
 0x508   : > { %v5214_v7 = vadd.f32 %v5208_v62, %v5106_v63  ;;  %v9627_v8 = vpop.f32.mrb[87].mxu1  ;;  %v9647_v9 = vpop.f32.mrb[95].mxu0  ;;  %9900 = vmatprep.subr.bf16.mxu1 %v10914_v0  ;;  %9920 = vmatprep.subr.bf16.mxu0 %v10914_v0  ;;  %v10662_v3 = vld [vmem:[#allocation8 + $0xf70] sm:$0xff]  }
 0x509   : > { %v10664_v8 = vld [vmem:[#allocation8 + $0xf78] sm:$0xff]  }
 0x50a   : > { %v6943_v9 = vld [vmem:[#allocation2 + $0x3c] sm:$0x1] }
 0x50b   : > { %9901 = vmatpush3.bf16.msra.mxu1 %v10629_v5  ;;  %9921 = vmatpush3.bf16.msra.mxu0 %v10630_v6  ;;  %v6944_v13 = vpack.c.bf16 %v6943_v9, %v6943_v9 }
 0x50c   : > { %9902 = vmatprep.subr.bf16.mxu1 %v10914_v0  ;;  %9922 = vmatprep.subr.bf16.mxu0 %v10914_v0 }
 0x50f   : > { %9903 = vmatpush3.bf16.msra.mxu1 %v10631_v10  ;;  %9923 = vmatpush3.bf16.msra.mxu0 %v10632_v11  ;;  %v7051_v10 = vld [vmem:[#allocation2 + $0x3d] sm:$0x1]  ;;  %v10665_v11 = vld [vmem:[#allocation8 + $0xf80] sm:$0xff]  }
 0x510   : > { %9928 = vmatprep.subr.bf16.mxu1 %v10914_v0  ;;  %9948 = vmatprep.subr.bf16.mxu0 %v10914_v0 }
 0x512   : > { %9905 = vmatmul.mubr.bf16.vlgmr.msra.gmra.mrb[112].mxu1 %v6512_v16  ;;  %9925 = vmatmul.mubr.bf16.vlgmr.msra.gmra.mrb[120].mxu0 %v6620_v17  ;;  %v10668_v16 = vld [vmem:[#allocation8 + $0xfc8] sm:$0xff]   ;;  %v10669_v17 = vld [vmem:[#allocation8 + $0xf90] sm:$0xff]  }
 0x513   : > { %9929 = vmatpush3.bf16.msra.mxu1 %v10633_v14  ;;  %9949 = vmatpush3.bf16.msra.mxu0 %v10634_v15  ;;  %v7052_v14 = vpack.c.bf16 %v7051_v10, %v7051_v10  ;;  %v10667_v15 = vld [vmem:[#allocation8 + $0xf88] sm:$0xff]  }
 0x514   : > { %9930 = vmatprep.subr.bf16.mxu1 %v10914_v0  ;;  %9950 = vmatprep.subr.bf16.mxu0 %v10914_v0 }
 0x515   : > { %9944 = vmatprep.mubr.msk.bf16.mxu1 %vm10915_vm2, %v10914_v0  ;;  %9964 = vmatprep.mubr.msk.bf16.mxu0 %vm10915_vm2, %v10914_v0 }
 0x517   : > { %9931 = vmatpush3.bf16.msra.mxu1 %v10635_v18  ;;  %9951 = vmatpush3.bf16.msra.mxu0 %v10636_v19  ;;  %v10670_v18 = vld [vmem:[#allocation8 + $0xfd0] sm:$0xff]   ;;  %v10671_v19 = vld [vmem:[#allocation8 + $0xf98] sm:$0xff]  }
 0x518   : > { %9932 = vmatprep.subr.bf16.mxu1 %v10914_v0  ;;  %9952 = vmatprep.subr.bf16.mxu0 %v10914_v0 }
 0x51b   : > { %9933 = vmatpush3.bf16.msra.mxu1 %v10637_v20  ;;  %9953 = vmatpush3.bf16.msra.mxu0 %v10638_v21  ;;  %v10672_v20 = vld [vmem:[#allocation8 + $0xfd8] sm:$0xff]   ;;  %v10673_v21 = vld [vmem:[#allocation8 + $0xfa0] sm:$0xff]  }
 0x51c   : > { %9934 = vmatprep.subr.bf16.mxu1 %v10914_v0  ;;  %9954 = vmatprep.subr.bf16.mxu0 %v10914_v0 }
 0x51f   : > { %9935 = vmatpush3.bf16.msra.mxu1 %v10639_v22  ;;  %9955 = vmatpush3.bf16.msra.mxu0 %v10640_v23  ;;  %v10674_v22 = vld [vmem:[#allocation8 + $0xfe0] sm:$0xff]   ;;  %v10675_v23 = vld [vmem:[#allocation8 + $0xfa8] sm:$0xff]  }
 0x520   : > { %9936 = vmatprep.subr.bf16.mxu1 %v10914_v0  ;;  %9956 = vmatprep.subr.bf16.mxu0 %v10914_v0 }
 0x523   : > { %9937 = vmatpush3.bf16.msra.mxu1 %v10641_v24  ;;  %9957 = vmatpush3.bf16.msra.mxu0 %v10642_v25  ;;  %v10676_v24 = vld [vmem:[#allocation8 + $0xfe8] sm:$0xff]  }
 0x524   : > { %9938 = vmatprep.subr.bf16.mxu1 %v10914_v0  ;;  %9958 = vmatprep.subr.bf16.mxu0 %v10914_v0 }
 0x525   : > { %v5316_v29 = vpop.f32.mrb[88].mxu1  ;;  %v5424_v30 = vpop.f32.mrb[96].mxu0 }
 0x526   : > { %v5322_v31 = vadd.f32 %v5316_v29, %v5214_v7  ;;  %v9666_v32 = vpop.f32.mrb[89].mxu1  ;;  %v9686_v33 = vpop.f32.mrb[97].mxu0  ;;  %v10663_v7 = vld [vmem:[#allocation8 + $0xf38] sm:$0xff]  }
 0x527   : > { %v5319_v34 = vpop.f32.mrb[90].mxu1  ;;  %v5427_v35 = vpop.f32.mrb[98].mxu0  ;;  %9939 = vmatpush3.bf16.msra.mxu1 %v10643_v26  ;;  %9959 = vmatpush3.bf16.msra.mxu0 %v10644_v28  ;;  %v10677_v33 = vld [vmem:[#allocation8 + $0xfb0] sm:$0xff]  }
 0x528   : > { %v5430_v38 = vadd.f32 %v5424_v30, %v5322_v31  ;;  %v9667_v39 = vpop.f32.mrb[91].mxu1  ;;  %v9687_v40 = vpop.f32.mrb[99].mxu0  ;;  %9940 = vmatprep.subr.bf16.mxu1 %v10914_v0  ;;  %9960 = vmatprep.subr.bf16.mxu0 %v10914_v0  ;;  %v10678_v34 = vld [vmem:[#allocation8 + $0xff0] sm:$0xff]  }
 0x529   : > { %v10680_v39 = vld [vmem:[#allocation8 + $0xff8] sm:$0xff]  }
 0x52a   : > { %v7159_v40 = vld [vmem:[#allocation2 + $0x3e] sm:$0x1] }
 0x52b   : > { %9941 = vmatpush3.bf16.msra.mxu1 %v10645_v36  ;;  %9961 = vmatpush3.bf16.msra.mxu0 %v10646_v37 }
 0x52c   : > { %9942 = vmatprep.subr.bf16.mxu1 %v10914_v0  ;;  %9962 = vmatprep.subr.bf16.mxu0 %v10914_v0 }
 0x52f   : > { %9943 = vmatpush3.bf16.msra.mxu1 %v10647_v41  ;;  %9963 = vmatpush3.bf16.msra.mxu0 %v10648_v42  ;;  %v7267_v41 = vld [vmem:[#allocation2 + $0x3f] sm:$0x1]  ;;  %v7160_v42 = vpack.c.bf16 %v7159_v40, %v7159_v40 }
 0x530   : > { %9968 = vmatprep.subr.bf16.mxu1 %v10914_v0  ;;  %9988 = vmatprep.subr.bf16.mxu0 %v10914_v0  ;;  %v7268_v43 = vpack.c.bf16 %v7267_v41, %v7267_v41 }
 0x532   : > { %9945 = vmatmul.mubr.bf16.vlgmr.msra.gmra.mrb[116].mxu1 %v6728_v47  ;;  %9965 = vmatmul.mubr.bf16.vlgmr.msra.gmra.mrb[124].mxu0 %v6836_v27 }
 0x533   : > { %9969 = vmatpush3.bf16.msra.mxu1 %v10649_v45  ;;  %9989 = vmatpush3.bf16.msra.mxu0 %v10650_v46 }
 0x534   : > { %9970 = vmatprep.subr.bf16.mxu1 %v10914_v0  ;;  %9990 = vmatprep.subr.bf16.mxu0 %v10914_v0 }
 0x535   : > { %9984 = vmatprep.mubr.msk.bf16.mxu1 %vm10915_vm2, %v10914_v0  ;;  %10004 = vmatprep.mubr.msk.bf16.mxu0 %vm10915_vm2, %v10914_v0 }
 0x537   : > { %9971 = vmatpush3.bf16.msra.mxu1 %v10651_v48  ;;  %9991 = vmatpush3.bf16.msra.mxu0 %v10652_v49 }
 0x538   : > { %9972 = vmatprep.subr.bf16.mxu1 %v10914_v0  ;;  %9992 = vmatprep.subr.bf16.mxu0 %v10914_v0 }
 0x53b   : > { %9973 = vmatpush3.bf16.msra.mxu1 %v10653_v50  ;;  %9993 = vmatpush3.bf16.msra.mxu0 %v10654_v51 }
 0x53c   : > { %9974 = vmatprep.subr.bf16.mxu1 %v10914_v0  ;;  %9994 = vmatprep.subr.bf16.mxu0 %v10914_v0 }
 0x53f   : > { %9975 = vmatpush3.bf16.msra.mxu1 %v10655_v52  ;;  %9995 = vmatpush3.bf16.msra.mxu0 %v10656_v53 }
 0x540   : > { %9976 = vmatprep.subr.bf16.mxu1 %v10914_v0  ;;  %9996 = vmatprep.subr.bf16.mxu0 %v10914_v0 }
 0x543   : > { %9977 = vmatpush3.bf16.msra.mxu1 %v10657_v54  ;;  %9997 = vmatpush3.bf16.msra.mxu0 %v10658_v55 }
 0x544   : > { %9978 = vmatprep.subr.bf16.mxu1 %v10914_v0  ;;  %9998 = vmatprep.subr.bf16.mxu0 %v10914_v0 }
 0x545   : > { %v5532_v58 = vpop.f32.mrb[92].mxu1  ;;  %v5640_v59 = vpop.f32.mrb[100].mxu0 }
 0x546   : > { %v5538_v60 = vadd.f32 %v5532_v58, %v5430_v38  ;;  %v9706_v61 = vpop.f32.mrb[93].mxu1  ;;  %v9726_v62 = vpop.f32.mrb[101].mxu0  ;;  %v10679_v38 = vld [vmem:[#allocation8 + $0xfb8] sm:$0xff]  }
 0x547   : > { %v5535_v63 = vpop.f32.mrb[94].mxu1  ;;  %v5643_v1 = vpop.f32.mrb[102].mxu0  ;;  %9979 = vmatpush3.bf16.msra.mxu1 %v10659_v56  ;;  %9999 = vmatpush3.bf16.msra.mxu0 %v10660_v57 }
 0x548   : > { %v5646_v4 = vadd.f32 %v5640_v59, %v5538_v60  ;;  %v9707_v5 = vpop.f32.mrb[95].mxu1  ;;  %v9727_v6 = vpop.f32.mrb[103].mxu0  ;;  %9980 = vmatprep.subr.bf16.mxu1 %v10914_v0  ;;  %10000 = vmatprep.subr.bf16.mxu0 %v10914_v0  ;;  %v10681_v63 = vld [vmem:[#allocation9] sm:$0xff]   ;;  %v10682_v1 = vld [vmem:[#allocation9 + $0x8] sm:$0xff]  }
 0x54b   : > { %9981 = vmatpush3.bf16.msra.mxu1 %v10661_v2  ;;  %10001 = vmatpush3.bf16.msra.mxu0 %v10662_v3  ;;  %v10683_v2 = vld [vmem:[#allocation9 + $0x10] sm:$0xff]   ;;  %v10684_v3 = vld [vmem:[#allocation9 + $0x18] sm:$0xff]  }
 0x54c   : > { %9982 = vmatprep.subr.bf16.mxu1 %v10914_v0  ;;  %10002 = vmatprep.subr.bf16.mxu0 %v10914_v0 }
 0x54f   : > { %9983 = vmatpush3.bf16.msra.mxu1 %v10663_v7  ;;  %10003 = vmatpush3.bf16.msra.mxu0 %v10664_v8 }
 0x550   : > { %10008 = vmatprep.subr.bf16.mxu1 %v10914_v0  ;;  %10028 = vmatprep.subr.bf16.mxu0 %v10914_v0 }
 0x552   : > { %9985 = vmatmul.mubr.bf16.vlgmr.msra.gmra.mrb[120].mxu1 %v6944_v13  ;;  %10005 = vmatmul.mubr.bf16.vlgmr.msra.gmra.mrb[128].mxu0 %v7052_v14 }
 0x553   : > { %10009 = vmatpush3.bf16.msra.mxu1 %v10665_v11  ;;  %10029 = vmatpush3.bf16.msra.mxu0 %v10666_v12 }
 0x554   : > { %10010 = vmatprep.subr.bf16.mxu1 %v10914_v0  ;;  %10030 = vmatprep.subr.bf16.mxu0 %v10914_v0 }
 0x555   : > { %10024 = vmatprep.mubr.msk.bf16.mxu1 %vm10915_vm2, %v10914_v0  ;;  %10044 = vmatprep.mubr.msk.bf16.mxu0 %vm10915_vm2, %v10914_v0 }
 0x557   : > { %10011 = vmatpush3.bf16.msra.mxu1 %v10667_v15  ;;  %10031 = vmatpush3.bf16.msra.mxu0 %v10668_v16  ;;  %v10686_v15 = vld [vmem:[#allocation9 + $0x28] sm:$0xff]   ;;  %v10687_v16 = vld [vmem:[#allocation9 + $0x30] sm:$0xff]  }
 0x558   : > { %10012 = vmatprep.subr.bf16.mxu1 %v10914_v0  ;;  %10032 = vmatprep.subr.bf16.mxu0 %v10914_v0 }
 0x55b   : > { %10013 = vmatpush3.bf16.msra.mxu1 %v10669_v17  ;;  %10033 = vmatpush3.bf16.msra.mxu0 %v10670_v18  ;;  %v10688_v17 = vld [vmem:[#allocation9 + $0x38] sm:$0xff]  }
 0x55c   : > { %10014 = vmatprep.subr.bf16.mxu1 %v10914_v0  ;;  %10034 = vmatprep.subr.bf16.mxu0 %v10914_v0 }
 0x55f   : > { %10015 = vmatpush3.bf16.msra.mxu1 %v10671_v19  ;;  %10035 = vmatpush3.bf16.msra.mxu0 %v10672_v20 }
 0x560   : > { %10016 = vmatprep.subr.bf16.mxu1 %v10914_v0  ;;  %10036 = vmatprep.subr.bf16.mxu0 %v10914_v0 }
 0x563   : > { %10017 = vmatpush3.bf16.msra.mxu1 %v10673_v21  ;;  %10037 = vmatpush3.bf16.msra.mxu0 %v10674_v22 }
 0x564   : > { %10018 = vmatprep.subr.bf16.mxu1 %v10914_v0  ;;  %10038 = vmatprep.subr.bf16.mxu0 %v10914_v0 }
 0x565   : > { %v5748_v25 = vpop.f32.mrb[96].mxu1  ;;  %v5856_v26 = vpop.f32.mrb[104].mxu0 }
 0x566   : > { %v5754_v28 = vadd.f32 %v5748_v25, %v5646_v4  ;;  %v9746_v29 = vpop.f32.mrb[97].mxu1  ;;  %v9766_v30 = vpop.f32.mrb[105].mxu0  ;;  %v10685_v4 = vld [vmem:[#allocation9 + $0x20] sm:$0xff]  }
 0x567   : > { %v5751_v31 = vpop.f32.mrb[98].mxu1  ;;  %v5859_v32 = vpop.f32.mrb[106].mxu0  ;;  %10019 = vmatpush3.bf16.msra.mxu1 %v10675_v23  ;;  %10039 = vmatpush3.bf16.msra.mxu0 %v10676_v24 }
 0x568   : > { %v5862_v35 = vadd.f32 %v5856_v26, %v5754_v28  ;;  %v9747_v36 = vpop.f32.mrb[99].mxu1  ;;  %v9767_v37 = vpop.f32.mrb[107].mxu0  ;;  %10020 = vmatprep.subr.bf16.mxu1 %v10914_v0  ;;  %10040 = vmatprep.subr.bf16.mxu0 %v10914_v0 }
 0x56b   : > { %10021 = vmatpush3.bf16.msra.mxu1 %v10677_v33  ;;  %10041 = vmatpush3.bf16.msra.mxu0 %v10678_v34 }
 0x56c   : > { %10022 = vmatprep.subr.bf16.mxu1 %v10914_v0  ;;  %10042 = vmatprep.subr.bf16.mxu0 %v10914_v0 }
 0x56f   : > { %10023 = vmatpush3.bf16.msra.mxu1 %v10679_v38  ;;  %10043 = vmatpush3.bf16.msra.mxu0 %v10680_v39 }
 0x570   : > { %10048 = vmatprep.subr.bf16.mxu1 %v10914_v0 }
 0x572   : > { %10025 = vmatmul.mubr.bf16.vlgmr.msra.gmra.mrb[124].mxu1 %v7160_v42  ;;  %10045 = vmatmul.mubr.bf16.vlgmr.msra.gmra.mrb[132].mxu0 %v7268_v43 }
 0x573   : > { %10064 = vmatprep.mubr.msk.bf16.mxu1 %vm10915_vm2, %v10914_v0  ;;  %10049 = vmatpush3.bf16.msra.mxu1 %v10681_v63 }
 0x574   : > { %10050 = vmatprep.subr.bf16.mxu1 %v10914_v0 }
 0x577   : > { %10051 = vmatpush3.bf16.msra.mxu1 %v10682_v1 }
 0x578   : > { %10052 = vmatprep.subr.bf16.mxu1 %v10914_v0 }
 0x57b   : > { %10053 = vmatpush3.bf16.msra.mxu1 %v10683_v2 }
 0x57c   : > { %10054 = vmatprep.subr.bf16.mxu1 %v10914_v0 }
 0x57f   : > { %10055 = vmatpush3.bf16.msra.mxu1 %v10684_v3 }
 0x580   : > { %10056 = vmatprep.subr.bf16.mxu1 %v10914_v0 }
 0x583   : > { %10057 = vmatpush3.bf16.msra.mxu1 %v10685_v4 }
 0x584   : > { %10058 = vmatprep.subr.bf16.mxu1 %v10914_v0 }
 0x585   : > { %v5964_v44 = vpop.f32.mrb[100].mxu1  ;;  %v6072_v45 = vpop.f32.mrb[108].mxu0 }
 0x586   : > { %v5970_v46 = vadd.f32 %v5964_v44, %v5862_v35  ;;  %v9786_v47 = vpop.f32.mrb[101].mxu1  ;;  %v9806_v27 = vpop.f32.mrb[109].mxu0 }
 0x587   : > { %v5967_v48 = vpop.f32.mrb[102].mxu1  ;;  %v6075_v49 = vpop.f32.mrb[110].mxu0  ;;  %10059 = vmatpush3.bf16.msra.mxu1 %v10686_v15 }
 0x588   : > { %v6078_v50 = vadd.f32 %v6072_v45, %v5970_v46  ;;  %v9787_v51 = vpop.f32.mrb[103].mxu1  ;;  %v9807_v52 = vpop.f32.mrb[111].mxu0  ;;  %10060 = vmatprep.subr.bf16.mxu1 %v10914_v0 }
 0x589   : > { %v7375_v52 = vld [vmem:[#allocation11 + $0x1] sm:$0x1] }
 0x58b   : > { %10061 = vmatpush3.bf16.msra.mxu1 %v10687_v16 }
 0x58c   : > { %10062 = vmatprep.subr.bf16.mxu1 %v10914_v0 }
 0x58f   : > { %10063 = vmatpush3.bf16.msra.mxu1 %v10688_v17 }
 0x5a5   : > { %v6180_v53 = vpop.f32.mrb[104].mxu1  ;;  %v6288_v54 = vpop.f32.mrb[112].mxu0 }
 0x5a6   : > { %v6186_v55 = vadd.f32 %v6180_v53, %v6078_v50  ;;  %v9826_v56 = vpop.f32.mrb[105].mxu1  ;;  %v9846_v57 = vpop.f32.mrb[113].mxu0 }
 0x5a7   : > { %v6183_v58 = vpop.f32.mrb[106].mxu1  ;;  %v6291_v59 = vpop.f32.mrb[114].mxu0 }
 0x5a8   : > { %v6294_v60 = vadd.f32 %v6288_v54, %v6186_v55  ;;  %v9827_v61 = vpop.f32.mrb[107].mxu1  ;;  %v9847_v62 = vpop.f32.mrb[115].mxu0 }
 0x5a9   : > { %v7395_v61 = vld [vmem:[#allocation11 + $0x2] sm:$0x1] }
 0x5c5   : > { %v6396_v5 = vpop.f32.mrb[108].mxu1  ;;  %v6504_v6 = vpop.f32.mrb[116].mxu0 }
 0x5c6   : > { %v6402_v7 = vadd.f32 %v6396_v5, %v6294_v60  ;;  %v9866_v8 = vpop.f32.mrb[109].mxu1  ;;  %v9886_v9 = vpop.f32.mrb[117].mxu0 }
 0x5c7   : > { %v6399_v10 = vpop.f32.mrb[110].mxu1  ;;  %v6507_v11 = vpop.f32.mrb[118].mxu0 }
 0x5c8   : > { %v6510_v12 = vadd.f32 %v6504_v6, %v6402_v7  ;;  %v9867_v13 = vpop.f32.mrb[111].mxu1  ;;  %v9887_v14 = vpop.f32.mrb[119].mxu0 }
 0x5e5   : > { %v6612_v18 = vpop.f32.mrb[112].mxu1  ;;  %v6720_v19 = vpop.f32.mrb[120].mxu0 }
 0x5e6   : > { %v6618_v20 = vadd.f32 %v6612_v18, %v6510_v12  ;;  %v9906_v21 = vpop.f32.mrb[113].mxu1  ;;  %v9926_v22 = vpop.f32.mrb[121].mxu0 }
 0x5e7   : > { %v6615_v23 = vpop.f32.mrb[114].mxu1  ;;  %v6723_v24 = vpop.f32.mrb[122].mxu0 }
 0x5e8   : > { %v6726_v25 = vadd.f32 %v6720_v19, %v6618_v20  ;;  %v9907_v26 = vpop.f32.mrb[115].mxu1  ;;  %v9927_v28 = vpop.f32.mrb[123].mxu0 }
 0x605   : > { %v6828_v29 = vpop.f32.mrb[116].mxu1  ;;  %v6936_v30 = vpop.f32.mrb[124].mxu0 }
 0x606   : > { %v6834_v31 = vadd.f32 %v6828_v29, %v6726_v25  ;;  %v9946_v32 = vpop.f32.mrb[117].mxu1  ;;  %v9966_v33 = vpop.f32.mrb[125].mxu0 }
 0x607   : > { %v6831_v34 = vpop.f32.mrb[118].mxu1  ;;  %v6939_v35 = vpop.f32.mrb[126].mxu0 }
 0x608   : > { %v6942_v36 = vadd.f32 %v6936_v30, %v6834_v31  ;;  %v9947_v0 = vpop.f32.mrb[119].mxu1  ;;  %v9967_v37 = vpop.f32.mrb[127].mxu0 }
 0x625   : > { %v7044_v38 = vpop.f32.mrb[120].mxu1  ;;  %v7152_v39 = vpop.f32.mrb[128].mxu0 }
 0x626   : > { %v7050_v40 = vadd.f32 %v7044_v38, %v6942_v36  ;;  %v9986_v41 = vpop.f32.mrb[121].mxu1  ;;  %v10006_v42 = vpop.f32.mrb[129].mxu0 }
 0x627   : > { %v7047_v43 = vpop.f32.mrb[122].mxu1  ;;  %v7155_v44 = vpop.f32.mrb[130].mxu0 }
 0x628   : > { %v7158_v45 = vadd.f32 %v7152_v39, %v7050_v40  ;;  %v9987_v46 = vpop.f32.mrb[123].mxu1  ;;  %v10007_v47 = vpop.f32.mrb[131].mxu0 }
 0x645   : > { %v7260_v27 = vpop.f32.mrb[124].mxu1  ;;  %v7368_v48 = vpop.f32.mrb[132].mxu0 }
 0x646   : > { %v7266_v49 = vadd.f32 %v7260_v27, %v7158_v45  ;;  %v10026_v50 = vpop.f32.mrb[125].mxu1  ;;  %v10046_v51 = vpop.f32.mrb[133].mxu0 }
 0x647   : > { %v7263_v53 = vpop.f32.mrb[126].mxu1  ;;  %v7371_v54 = vpop.f32.mrb[134].mxu0 }
 0x648   : > { %v7374_v55 = vadd.f32 %v7368_v48, %v7266_v49  ;;  %v10027_v56 = vpop.f32.mrb[127].mxu1  ;;  %v10047_v57 = vpop.f32.mrb[135].mxu0 }
 0x64a   : > { %v7376_v58 = vadd.f32 %v7375_v52, %v7374_v55 }
 0x64c   : > { %v7377_v59 = vmax.f32 %v7376_v58, 0.0 }
 0x64e   : > { %v7378_v60 = vpack.c.bf16 %v7377_v59, %v7377_v59 }
 0x650   : > { %10065 = vmatmul.mubr.bf16.vlgmr.msra.gmra.mrb[128].mxu1 %v7378_v60 }
 0x723   : > { %v7478_v62 = vpop.f32.mrb[128].mxu1 }
 0x724   : > { %v7479_v63 = vadd.f32 %v7478_v62, %v7395_v61  ;;  %v10066_v1 = vpop.f32.mrb[129].mxu1 }
 0x725   : > { %v7481_v2 = vpop.f32.mrb[130].mxu1 }
 0x726   : > { %7484 = vst [vmem:[%s297_s26] sm:$0x1] %v7479_v63  ;;  %v10067_v3 = vpop.f32.mrb[131].mxu1 }
 0x727   : > { %10844 = shalt.err (!%p10841_p13)
}
 0x728   : > { %s10845_s29 = scalar_lea.hbm %s11864_s8, 16  ;;  %s10849_s30 = scalar_lea.hbm %s11913_s5, 32 }
 0x729   : > { %p10846_p9 = scmp.ne.s32.totalorder %s11864_s8, %s10845_s29  ;;  %p10850_p4 = scmp.lt.u32.totalorder %s11864_s8, %s11913_s5 }
 0x72a   : > { %p10851_p8 = scmp.lt.u32.totalorder %s10849_s30, %s10845_s29  ;;  %p10853_p3 = scmp.lt.u32.totalorder %s10845_s29, %s11864_s8 }
 0x72b   : > { %p10847_p0 = pnand %p10846_p9, %p11115_p10 }
 0x72c   : > { %p10852_p6 = por %p10851_p8, %p10850_p4 }
 0x72d   : > { %p10848_p11 = pneg %p10847_p0 }
 0x72e   : > { %p10854_p5 = por %p10853_p3, %p10852_p6 }
 0x730   : > { %p10855_p7 = pnand %p10854_p5, %p10848_p11 }
 0x732   : > { %10858 = shalt.err (!%p10855_p7)
}
 0x733   : > { %10087 = dma.vmem_to_hbm [thread:$0]  (%p11115_p10), %s11866_s23, 16, %s11864_s8, %s7486_s16  }
 0x734 PF: > { %s7510_s24 = sand.u32 1, %s10893_s18   ;;  %p11931_p12 = scmp.ne.s32.totalorder %s11918_s25, 0 }
 0x735   : > { %p11932_p1 = scmp.ge.s32.totalorder %s10905_s21, 2  ;;  %s7511_s26 = scalar_lea.sflag [#allocation5], %s7510_s24 }
 0x737   : > { %p10107_p2 = pnand %p11932_p1, %p11931_p12 }
 0x739   : > { %10888 = dma.done.wait (!%p10107_p2), %s7511_s26, 16  }
 0x73a   : > { %10890 = vsyncadd (!%p10107_p2), %s7511_s26, 4294967280  ;;  %p20_p13 = scmp.ge.s32.totalorder %s11105_s14, 4   ;;  %s11933_s18 = smov %s10897_s19 }
 0x73b   : > { %s11934_s19 = smov %s10901_s20  ;;  %s11935_s20 = smov %s11121_s7 }
 0x73c   : > { %s11936_s21 = smov %s11105_s14  ;;  %22 = sbr.rel (!%p20_p13) target bundleno = 7 (0x7), region = 164 }
 0x743   :  { %7515 = vsyncpa [#allocation4], 1 }
 0x744   :  { %7517 = vsyncpa [#allocation4 + $0x1], 1 }
 0x745   :  { %7518 = vsyncpa [#allocation7], 1 }
 0x746   :  { %7519 = vsyncpa [#allocation10], 1 }
 0x747   :  { %7520 = vsyncpa [#allocation5], 1 }
 0x748   :  { %7522 = vsyncpa [#allocation5 + $0x1], 1 }

</bundles_post_ra>
